<compile_context>
chip_gen: v5e
topology: v5e:2x2
jax: 0.10.0
libtpu: 0.0.40
codegen_flags: <defaults>
</compile_context>

<pallas_src>
import jax
import jax.numpy as jnp
from jax.experimental import pallas as pl
from jax.experimental.pallas import tpu as pltpu


def _round_up(x, m):
    return (x + m - 1) // m * m


# ----------------------------------------------------------------------------- kernel


def textrnn_kernel(x_ref,
                   w_ih0_ref, b_ih0_ref,
                   w_a_ref, b_a_ref,
                   w_b_ref, b_b_ref,
                   w_fc_ref, b_fc_ref,
                   out_ref,
                   h0_ref, h1_ref, gh0_ref):
    c = pl.program_id(1)                     # time-chunk index (inner, "arbitrary")
    tT, Bb, Hp = x_ref.shape
    G3 = w_ih0_ref.shape[1]                  # 3 * Hp, gates packed [r | z | n], Hp lanes each

    @pl.when(c == 0)
    def _init():
        # h0 = h1 = 0;  gh0(0) = 0 @ W_hh0 + b_hh0 = b_hh0 (first G3 lanes of b_a).
        h0_ref[...] = jnp.zeros_like(h0_ref)
        h1_ref[...] = jnp.zeros_like(h1_ref)
        gh0_ref[...] = jnp.broadcast_to(b_a_ref[...][:, 0:G3], gh0_ref.shape)

    # ---- hoisted layer-0 input projection for the whole time chunk: one big MXU matmul ----
    x2d = x_ref[...].reshape(tT * Bb, Hp).astype(jnp.bfloat16)
    gi0 = jnp.dot(x2d, w_ih0_ref[...],
                  preferred_element_type=jnp.float32) + b_ih0_ref[...]

    # hoist bias broadcasts out of the recurrence (JAX does not CSE broadcast_in_dim)
    b_a = jnp.broadcast_to(b_a_ref[...], (Bb, 2 * G3))
    b_b = jnp.broadcast_to(b_b_ref[...], (Bb, G3))

    def gru_gates(gi, gh, h_prev):
        # lane-aligned gate slices (each gate occupies a full Hp = 128-multiple block)
        r = jax.nn.sigmoid(gi[:, 0:Hp] + gh[:, 0:Hp])
        z = jax.nn.sigmoid(gi[:, Hp:2 * Hp] + gh[:, Hp:2 * Hp])
        n = jnp.tanh(gi[:, 2 * Hp:3 * Hp] + r * gh[:, 2 * Hp:3 * Hp])
        return (1.0 - z) * n + z * h_prev

    h0 = h0_ref[...]
    h1 = h1_ref[...]
    gh0 = gh0_ref[...]

    # Static unroll over the chunk (tT <= 8 by construction).  Per-step serial chain:
    # h0 gate math -> dot A; dot B only needs the previous h1, so it overlaps with dot A.
    for t in range(tT):
        h0 = gru_gates(gi0[t * Bb:(t + 1) * Bb, :], gh0, h0)
        # dot A: [gh0(t+1) | gi1(t)] = h0_new @ [W_hh0 | W_ih1] + [b_hh0 | b_ih1]
        ab = jnp.dot(h0.astype(jnp.bfloat16), w_a_ref[...],
                     preferred_element_type=jnp.float32) + b_a
        # dot B (independent): gh1(t) = h1(t) @ W_hh1 + b_hh1
        gh1 = jnp.dot(h1.astype(jnp.bfloat16), w_b_ref[...],
                      preferred_element_type=jnp.float32) + b_b
        h1 = gru_gates(ab[:, G3:2 * G3], gh1, h1)
        gh0 = ab[:, 0:G3]

    h0_ref[...] = h0
    h1_ref[...] = h1
    gh0_ref[...] = gh0

    # logits = fc(relu(H)[:, -1, :]) == fc(relu(h1 at t = T-1)).  Written unconditionally
    # (cheap) so the resident output block is always valid; only the last chunk survives.
    out = jnp.maximum(h1, 0.0).astype(jnp.bfloat16)
    out_ref[...] = jnp.dot(out, w_fc_ref[...],
                           preferred_element_type=jnp.float32) + b_fc_ref[...]


# ----------------------------------------------------------------------------- params & glue


def init_params(key, vocab_size, embedding_dim, class_num):
    D = embedding_dim
    keys = jax.random.split(key, 12)
    s = 1.0 / jnp.sqrt(jnp.float32(D))

    def u(k, shape):
        return jax.random.uniform(k, shape, jnp.float32, -s, s)

    return {
        "embedding": jax.random.normal(keys[0], (vocab_size, D), jnp.float32) * 0.02,
        # GRU layer 0 (pre-transposed: (in, 3H), gate order [r, z, n])
        "w_ih0": u(keys[1], (D, 3 * D)),
        "w_hh0": u(keys[2], (D, 3 * D)),
        "b_ih0": u(keys[3], (1, 3 * D)),
        "b_hh0": u(keys[4], (1, 3 * D)),
        # GRU layer 1
        "w_ih1": u(keys[5], (D, 3 * D)),
        "w_hh1": u(keys[6], (D, 3 * D)),
        "b_ih1": u(keys[7], (1, 3 * D)),
        "b_hh1": u(keys[8], (1, 3 * D)),
        # fc: (D, C), (1, C)
        "w_fc": u(keys[9], (D, class_num)),
        "b_fc": u(keys[10], (1, class_num)),
    }


def prepare_params(params, embedding_dim, class_num):
    """Pad / pack parameters into the lane-aligned kernel layout (done once)."""
    D = embedding_dim
    H = D                              # module fixes hidden == embedding_dim
    Hp = _round_up(H, 128)
    Cp = _round_up(class_num, 128)
    G3 = 3 * Hp

    def pad_gate_w(w, in_dim):         # (in_dim, 3H) -> (Hp, 3Hp), gate g at cols [g*Hp, g*Hp+H)
        out = jnp.zeros((Hp, G3), jnp.float32)
        for g in range(3):
            out = out.at[:in_dim, g * Hp:g * Hp + H].set(w[:, g * H:(g + 1) * H])
        return out

    def pad_gate_b(b):                 # (1, 3H) -> (1, 3Hp)
        out = jnp.zeros((1, G3), jnp.float32)
        for g in range(3):
            out = out.at[:, g * Hp:g * Hp + H].set(b[:, g * H:(g + 1) * H])
        return out

    w_ih0 = pad_gate_w(params["w_ih0"], D)
    w_hh0 = pad_gate_w(params["w_hh0"], H)
    w_ih1 = pad_gate_w(params["w_ih1"], H)
    w_hh1 = pad_gate_w(params["w_hh1"], H)
    b_ih0 = pad_gate_b(params["b_ih0"])
    b_hh0 = pad_gate_b(params["b_hh0"])
    b_ih1 = pad_gate_b(params["b_ih1"])
    b_hh1 = pad_gate_b(params["b_hh1"])

    # Fused, de-zeroed per-step weights (no zero blocks, no block-diagonal padding):
    #   dot A: h0_new @ [W_hh0 | W_ih1] -> [gh0(t+1) | gi1(t)]
    #   dot B: h1     @  W_hh1          ->  gh1(t)
    w_a = jnp.concatenate([w_hh0, w_ih1], axis=1)          # (Hp, 2*G3)
    b_a = jnp.concatenate([b_hh0, b_ih1], axis=1)          # (1, 2*G3)
    w_b = w_hh1                                            # (Hp, G3)
    b_b = b_hh1                                            # (1, G3)

    w_fc = jnp.zeros((Hp, Cp), jnp.float32).at[:H, :class_num].set(params["w_fc"])
    b_fc = jnp.zeros((1, Cp), jnp.float32).at[:, :class_num].set(params["b_fc"])

    bf = jnp.bfloat16
    return {
        "embedding": params["embedding"],
        "w_ih0": w_ih0.astype(bf), "b_ih0": b_ih0,
        "w_a": w_a.astype(bf), "b_a": b_a,
        "w_b": w_b.astype(bf), "b_b": b_b,
        "w_fc": w_fc.astype(bf), "b_fc": b_fc,
    }


def textrnn_forward(x_tokens, attention_mask, pp, class_num):
    # Glue: embedding gather + mask multiply (== x * attention_mask.unsqueeze(2)) + padding.
    emb = pp["embedding"][x_tokens].astype(jnp.float32)                   # (B, T, D)
    B, T, D = emb.shape
    Hp = pp["w_ih0"].shape[0]
    G3 = pp["w_ih0"].shape[1]
    Cp = pp["w_fc"].shape[1]

    xm = emb * attention_mask.astype(jnp.float32)[:, :, None]

    # batch padding / chunking: chunk large batches so v7x's two TensorCores split them.
    if B <= 128:
        Bb = _round_up(max(B, 1), 8)
        Bp = Bb
    else:
        Bb = 128
        Bp = _round_up(B, Bb)
    nb = Bp // Bb

    # time-major, batch padded to sublanes, feature padded to Hp lanes.  T is never padded
    # (extra GRU steps on zero input would change the hidden state).
    xp = jnp.zeros((T, Bp, Hp), jnp.float32)
    xp = xp.at[:, :B, :D].set(jnp.transpose(xm, (1, 0, 2)))

    # time-chunk size: largest divisor of T that is <= 8 (caps the static unroll).
    tT = 1
    for cand in range(min(T, 8), 0, -1):
        if T % cand == 0:
            tT = cand
            break
    nc = T // tT

    # VMEM budget derived from the actual padded buffers (headroom under v7x's 64 MiB).
    weight_bytes = (Hp * G3 + Hp * 2 * G3 + Hp * G3 + Hp * Cp) * 2 \
                   + (G3 + 2 * G3 + G3 + Cp) * 4
    big_weights = weight_bytes > (8 << 20)
    wbuf = 1 if big_weights else 2
    needed = (weight_bytes * wbuf
              + tT * Bb * Hp * 4 * 2              # x chunk (double-buffered)
              + Bb * Cp * 4 * 2                   # out block
              + (2 * Bb * Hp + Bb * G3) * 4       # carried scratch (h0, h1, gh0)
              + tT * Bb * G3 * 4)                 # gi0 live value / spill
    vmem_limit = int(min(max(2 * needed + (8 << 20), 16 << 20), 64 << 20))

    def w_spec(shape):
        # Grid-invariant weights: once they are large, single-buffer them (index_map never
        # changes) so double-buffering does not blow the v7x VMEM budget at scaled D.
        if big_weights:
            return pl.BlockSpec(shape, lambda b, c: (0, 0), pipeline_mode=pl.Buffered(1))
        return pl.BlockSpec(shape, lambda b, c: (0, 0))

    grid_spec = pltpu.PrefetchScalarGridSpec(
        num_scalar_prefetch=0,
        grid=(nb, nc),
        in_specs=[
            pl.BlockSpec((tT, Bb, Hp), lambda b, c: (c, b, 0)),   # x (time- & batch-chunked)
            w_spec((Hp, G3)),                                     # w_ih0
            pl.BlockSpec((1, G3), lambda b, c: (0, 0)),           # b_ih0
            w_spec((Hp, 2 * G3)),                                 # w_a = [W_hh0 | W_ih1]
            pl.BlockSpec((1, 2 * G3), lambda b, c: (0, 0)),       # b_a = [b_hh0 | b_ih1]
            w_spec((Hp, G3)),                                     # w_b = W_hh1
            pl.BlockSpec((1, G3), lambda b, c: (0, 0)),           # b_b = b_hh1
            w_spec((Hp, Cp)),                                     # w_fc
            pl.BlockSpec((1, Cp), lambda b, c: (0, 0)),           # b_fc
        ],
        out_specs=pl.BlockSpec((Bb, Cp), lambda b, c: (b, 0)),
        scratch_shapes=[
            pltpu.VMEM((Bb, Hp), jnp.float32),                    # h0 carried across time chunks
            pltpu.VMEM((Bb, Hp), jnp.float32),                    # h1 carried across time chunks
            pltpu.VMEM((Bb, G3), jnp.float32),                    # gh0 = h0 @ W_hh0 + b_hh0 (carried)
        ],
    )

    out_p = pl.pallas_call(
        textrnn_kernel,
        out_shape=jax.ShapeDtypeStruct((Bp, Cp), jnp.float32),
        grid_spec=grid_spec,
        compiler_params=pltpu.CompilerParams(
            dimension_semantics=("parallel", "arbitrary"),        # batch parallel, time recurrent
            vmem_limit_bytes=vmem_limit,
        ),
    )(xp, pp["w_ih0"], pp["b_ih0"], pp["w_a"], pp["b_a"],
      pp["w_b"], pp["b_b"], pp["w_fc"], pp["b_fc"])

    return out_p[:B, :class_num]


# ----------------------------------------------------------------------------- pure-JAX reference


def textrnn_reference(x_tokens, attention_mask, params):
    D = params["w_ih0"].shape[0]
    hi = jax.lax.Precision.HIGHEST
    emb = params["embedding"][x_tokens].astype(jnp.float32)
    x = emb * attention_mask.astype(jnp.float32)[:, :, None]
    B, T, _ = x.shape

    def cell(x_t, h, w_ih, w_hh, b_ih, b_hh):
        gi = jnp.dot(x_t, w_ih, precision=hi) + b_ih
        gh = jnp.dot(h, w_hh, precision=hi) + b_hh
        r = jax.nn.sigmoid(gi[:, :D] + gh[:, :D])
        z = jax.nn.sigmoid(gi[:, D:2 * D] + gh[:, D:2 * D])
        n = jnp.tanh(gi[:, 2 * D:] + r * gh[:, 2 * D:])
        return (1.0 - z) * n + z * h

    h0 = jnp.zeros((B, D), jnp.float32)
    h1 = jnp.zeros((B, D), jnp.float32)
    for t in range(T):
        h0 = cell(x[:, t, :], h0, params["w_ih0"], params["w_hh0"],
                  params["b_ih0"], params["b_hh0"])
        h1 = cell(h0, h1, params["w_ih1"], params["w_hh1"],
                  params["b_ih1"], params["b_hh1"])
    out = jnp.maximum(h1, 0.0)
    return jnp.dot(out, params["w_fc"], precision=hi) + params["b_fc"]


# ----------------------------------------------------------------------------- main


if __name__ == "__main__":
    # Small shapes consistent with the module: batch=2, seq_len=8, embedding_dim=32, class_num=4.
    B, T, D, C, VOCAB = 2, 8, 32, 4, 50

    key = jax.random.PRNGKey(0)
    k_tok, k_params = jax.random.split(key)

    x_tokens = jax.random.randint(k_tok, (B, T), 0, VOCAB, dtype=jnp.int32)
    # attention mask: first row fully valid, second row has 2 padded positions at the end.
    attention_mask = jnp.array(
        [[1] * T,
         [1] * (T - 2) + [0] * 2],
        dtype=jnp.float32,
    )

    params = init_params(k_params, VOCAB, D, C)
    pp = prepare_params(params, D, C)

    # TODO(synk): the PLMTokenEncoder (BERT) branch of the original module is not implemented;
    # only the EmbeddingLayer path is modeled here.
    fwd = jax.jit(lambda xt, am, p: textrnn_forward(xt, am, p, C))
    logits = fwd(x_tokens, attention_mask, pp)
    jax.block_until_ready(logits)

    ref = textrnn_reference(x_tokens, attention_mask, params)
    err = float(jnp.max(jnp.abs(logits - ref)))

    assert logits.shape == (B, C)
    assert jnp.all(jnp.isfinite(logits))
    # bf16 matmul operands with f32 accumulation vs all-f32 reference: expected err ~1e-3.
    assert err < 2e-2, f"kernel/reference mismatch: max abs err = {err}"
    print("KERNEL_OK")
</pallas_src>

<mosaic_0001>
module attributes {stable_mosaic.version = 11 : i64} {
  func.func @textrnn_kernel(%arg0: i32, %arg1: i32, %arg2: memref<8x8x128xf32, #tpu.memory_space<vmem>>, %arg3: memref<128x384xbf16, #tpu.memory_space<vmem>>, %arg4: memref<1x384xf32, #tpu.memory_space<vmem>>, %arg5: memref<128x768xbf16, #tpu.memory_space<vmem>>, %arg6: memref<1x768xf32, #tpu.memory_space<vmem>>, %arg7: memref<128x384xbf16, #tpu.memory_space<vmem>>, %arg8: memref<1x384xf32, #tpu.memory_space<vmem>>, %arg9: memref<128x128xbf16, #tpu.memory_space<vmem>>, %arg10: memref<1x128xf32, #tpu.memory_space<vmem>>, %arg11: memref<8x128xf32, #tpu.memory_space<vmem>>, %arg12: memref<8x128xf32, #tpu.memory_space<vmem>>, %arg13: memref<8x128xf32, #tpu.memory_space<vmem>>, %arg14: memref<8x384xf32, #tpu.memory_space<vmem>>) attributes {dimension_semantics = [#tpu.dimension_semantics<parallel>, #tpu.dimension_semantics<arbitrary>], iteration_bounds = array<i64: 1, 1>, scalar_prefetch = 0 : i64, scratch_operands = 3 : i64, tpu.core_type = #tpu.core_type<tc>, window_params = [{transform_indices = @transform_0, window_bounds = array<i64: 8, 8, 128>}, {pipeline_mode = #tpu.pipeline_mode<synchronous>, transform_indices = @transform_1, window_bounds = array<i64: 128, 384>}, {pipeline_mode = #tpu.pipeline_mode<synchronous>, transform_indices = @transform_2, window_bounds = array<i64: 1, 384>}, {pipeline_mode = #tpu.pipeline_mode<synchronous>, transform_indices = @transform_3, window_bounds = array<i64: 128, 768>}, {pipeline_mode = #tpu.pipeline_mode<synchronous>, transform_indices = @transform_4, window_bounds = array<i64: 1, 768>}, {pipeline_mode = #tpu.pipeline_mode<synchronous>, transform_indices = @transform_5, window_bounds = array<i64: 128, 384>}, {pipeline_mode = #tpu.pipeline_mode<synchronous>, transform_indices = @transform_6, window_bounds = array<i64: 1, 384>}, {pipeline_mode = #tpu.pipeline_mode<synchronous>, transform_indices = @transform_7, window_bounds = array<i64: 128, 128>}, {pipeline_mode = #tpu.pipeline_mode<synchronous>, transform_indices = @transform_8, window_bounds = array<i64: 1, 128>}, {transform_indices = @transform_9, window_bounds = array<i64: 8, 128>}]} {
    %c0_i32 = arith.constant 0 : i32
    %0 = arith.cmpi eq, %arg1, %c0_i32 : i32
    %1 = arith.extui %0 : i1 to i32
    %c0_i32_0 = arith.constant 0 : i32
    %2 = arith.cmpi ne, %1, %c0_i32_0 : i32
    scf.if %2 {
      %cst_127 = arith.constant 0.000000e+00 : f32
      %536 = vector.broadcast %cst_127 : f32 to vector<8x128xf32>
      %c0_128 = arith.constant 0 : index
      %c0_129 = arith.constant 0 : index
      %537 = vector.load %arg12[%c0_128, %c0_129] : memref<8x128xf32, #tpu.memory_space<vmem>>, vector<8x128xf32>
      tpu.vector_store %arg12[%c0_128, %c0_129], %536 {strides = array<i32>} : memref<8x128xf32, #tpu.memory_space<vmem>>, vector<8x128xf32>,
      %cst_130 = arith.constant 0.000000e+00 : f32
      %538 = vector.broadcast %cst_130 : f32 to vector<8x128xf32>
      %c0_131 = arith.constant 0 : index
      %c0_132 = arith.constant 0 : index
      %539 = vector.load %arg13[%c0_131, %c0_132] : memref<8x128xf32, #tpu.memory_space<vmem>>, vector<8x128xf32>
      tpu.vector_store %arg13[%c0_131, %c0_132], %538 {strides = array<i32>} : memref<8x128xf32, #tpu.memory_space<vmem>>, vector<8x128xf32>,
      %c0_133 = arith.constant 0 : index
      %c0_134 = arith.constant 0 : index
      %540 = vector.load %arg6[%c0_133, %c0_134] : memref<1x768xf32, #tpu.memory_space<vmem>>, vector<1x768xf32>
      %541 = vector.extract_strided_slice %540 {offsets = [0, 0], sizes = [1, 384], strides = [1, 1]} : vector<1x768xf32> to vector<1x384xf32>
      %542 = vector.shape_cast %541 : vector<1x384xf32> to vector<1x384xf32>
      %543 = vector.broadcast %542 : vector<1x384xf32> to vector<8x384xf32>
      %c0_135 = arith.constant 0 : index
      %c0_136 = arith.constant 0 : index
      %544 = vector.load %arg14[%c0_135, %c0_136] : memref<8x384xf32, #tpu.memory_space<vmem>>, vector<8x384xf32>
      tpu.vector_store %arg14[%c0_135, %c0_136], %543 {strides = array<i32>} : memref<8x384xf32, #tpu.memory_space<vmem>>, vector<8x384xf32>,
    } else {
    }
    %c0 = arith.constant 0 : index
    %c0_1 = arith.constant 0 : index
    %c0_2 = arith.constant 0 : index
    %3 = vector.load %arg2[%c0, %c0_1, %c0_2] : memref<8x8x128xf32, #tpu.memory_space<vmem>>, vector<8x8x128xf32>
    %4 = vector.shape_cast %3 : vector<8x8x128xf32> to vector<64x128xf32>
    %5 = arith.truncf %4 : vector<64x128xf32> to vector<64x128xbf16>
    %c0_3 = arith.constant 0 : index
    %c0_4 = arith.constant 0 : index
    %6 = vector.load %arg3[%c0_3, %c0_4] : memref<128x384xbf16, #tpu.memory_space<vmem>>, vector<128x384xbf16>
    %cst = arith.constant dense<0.000000e+00> : vector<64x384xf32>
    %7 = tpu.matmul %5, %6, %cst {dimension_numbers = #tpu.dot_dimension_numbers<[1], [0], [0], [1], [0, 0, 1, 1], [], []>} : vector<64x128xbf16>, vector<128x384xbf16>, vector<64x384xf32> -> vector<64x384xf32>
    %c0_5 = arith.constant 0 : index
    %c0_6 = arith.constant 0 : index
    %8 = vector.load %arg4[%c0_5, %c0_6] : memref<1x384xf32, #tpu.memory_space<vmem>>, vector<1x384xf32>
    %9 = vector.broadcast %8 : vector<1x384xf32> to vector<64x384xf32>
    %10 = arith.addf %7, %9 : vector<64x384xf32>
    %c0_7 = arith.constant 0 : index
    %c0_8 = arith.constant 0 : index
    %11 = vector.load %arg6[%c0_7, %c0_8] : memref<1x768xf32, #tpu.memory_space<vmem>>, vector<1x768xf32>
    %12 = vector.shape_cast %11 : vector<1x768xf32> to vector<1x768xf32>
    %13 = vector.broadcast %12 : vector<1x768xf32> to vector<8x768xf32>
    %c0_9 = arith.constant 0 : index
    %c0_10 = arith.constant 0 : index
    %14 = vector.load %arg8[%c0_9, %c0_10] : memref<1x384xf32, #tpu.memory_space<vmem>>, vector<1x384xf32>
    %15 = vector.shape_cast %14 : vector<1x384xf32> to vector<1x384xf32>
    %16 = vector.broadcast %15 : vector<1x384xf32> to vector<8x384xf32>
    %c0_11 = arith.constant 0 : index
    %c0_12 = arith.constant 0 : index
    %17 = vector.load %arg12[%c0_11, %c0_12] : memref<8x128xf32, #tpu.memory_space<vmem>>, vector<8x128xf32>
    %c0_13 = arith.constant 0 : index
    %c0_14 = arith.constant 0 : index
    %18 = vector.load %arg13[%c0_13, %c0_14] : memref<8x128xf32, #tpu.memory_space<vmem>>, vector<8x128xf32>
    %c0_15 = arith.constant 0 : index
    %c0_16 = arith.constant 0 : index
    %19 = vector.load %arg14[%c0_15, %c0_16] : memref<8x384xf32, #tpu.memory_space<vmem>>, vector<8x384xf32>
    %20 = vector.extract_strided_slice %10 {offsets = [0, 0], sizes = [8, 384], strides = [1, 1]} : vector<64x384xf32> to vector<8x384xf32>
    %21 = vector.extract_strided_slice %20 {offsets = [0, 0], sizes = [8, 128], strides = [1, 1]} : vector<8x384xf32> to vector<8x128xf32>
    %22 = vector.extract_strided_slice %19 {offsets = [0, 0], sizes = [8, 128], strides = [1, 1]} : vector<8x384xf32> to vector<8x128xf32>
    %23 = arith.addf %21, %22 : vector<8x128xf32>
    %24 = arith.negf %23 : vector<8x128xf32>
    %25 = math.exp %24 : vector<8x128xf32>
    %cst_17 = arith.constant 1.000000e+00 : f32
    %26 = vector.broadcast %cst_17 : f32 to vector<8x128xf32>
    %27 = arith.addf %26, %25 : vector<8x128xf32>
    %28 = arith.divf %26, %27 : vector<8x128xf32>
    %29 = vector.extract_strided_slice %20 {offsets = [0, 128], sizes = [8, 128], strides = [1, 1]} : vector<8x384xf32> to vector<8x128xf32>
    %30 = vector.extract_strided_slice %19 {offsets = [0, 128], sizes = [8, 128], strides = [1, 1]} : vector<8x384xf32> to vector<8x128xf32>
    %31 = arith.addf %29, %30 : vector<8x128xf32>
    %32 = arith.negf %31 : vector<8x128xf32>
    %33 = math.exp %32 : vector<8x128xf32>
    %cst_18 = arith.constant 1.000000e+00 : f32
    %34 = vector.broadcast %cst_18 : f32 to vector<8x128xf32>
    %35 = arith.addf %34, %33 : vector<8x128xf32>
    %36 = arith.divf %34, %35 : vector<8x128xf32>
    %37 = vector.extract_strided_slice %20 {offsets = [0, 256], sizes = [8, 128], strides = [1, 1]} : vector<8x384xf32> to vector<8x128xf32>
    %38 = vector.extract_strided_slice %19 {offsets = [0, 256], sizes = [8, 128], strides = [1, 1]} : vector<8x384xf32> to vector<8x128xf32>
    %39 = arith.mulf %28, %38 : vector<8x128xf32>
    %40 = arith.addf %37, %39 : vector<8x128xf32>
    %41 = math.tanh %40 : vector<8x128xf32>
    %cst_19 = arith.constant 1.000000e+00 : f32
    %42 = vector.broadcast %cst_19 : f32 to vector<8x128xf32>
    %43 = arith.subf %42, %36 : vector<8x128xf32>
    %44 = arith.mulf %43, %41 : vector<8x128xf32>
    %45 = arith.mulf %36, %17 : vector<8x128xf32>
    %46 = arith.addf %44, %45 : vector<8x128xf32>
    %47 = arith.truncf %46 : vector<8x128xf32> to vector<8x128xbf16>
    %c0_20 = arith.constant 0 : index
    %c0_21 = arith.constant 0 : index
    %48 = vector.load %arg5[%c0_20, %c0_21] : memref<128x768xbf16, #tpu.memory_space<vmem>>, vector<128x768xbf16>
    %cst_22 = arith.constant dense<0.000000e+00> : vector<8x768xf32>
    %49 = tpu.matmul %47, %48, %cst_22 {dimension_numbers = #tpu.dot_dimension_numbers<[1], [0], [0], [1], [0, 0, 1, 1], [], []>} : vector<8x128xbf16>, vector<128x768xbf16>, vector<8x768xf32> -> vector<8x768xf32>
    %50 = arith.addf %49, %13 : vector<8x768xf32>
    %51 = arith.truncf %18 : vector<8x128xf32> to vector<8x128xbf16>
    %c0_23 = arith.constant 0 : index
    %c0_24 = arith.constant 0 : index
    %52 = vector.load %arg7[%c0_23, %c0_24] : memref<128x384xbf16, #tpu.memory_space<vmem>>, vector<128x384xbf16>
    %cst_25 = arith.constant dense<0.000000e+00> : vector<8x384xf32>
    %53 = tpu.matmul %51, %52, %cst_25 {dimension_numbers = #tpu.dot_dimension_numbers<[1], [0], [0], [1], [0, 0, 1, 1], [], []>} : vector<8x128xbf16>, vector<128x384xbf16>, vector<8x384xf32> -> vector<8x384xf32>
    %54 = arith.addf %53, %16 : vector<8x384xf32>
    %55 = vector.extract_strided_slice %50 {offsets = [0, 384], sizes = [8, 384], strides = [1, 1]} : vector<8x768xf32> to vector<8x384xf32>
    %56 = vector.extract_strided_slice %55 {offsets = [0, 0], sizes = [8, 128], strides = [1, 1]} : vector<8x384xf32> to vector<8x128xf32>
    %57 = vector.extract_strided_slice %54 {offsets = [0, 0], sizes = [8, 128], strides = [1, 1]} : vector<8x384xf32> to vector<8x128xf32>
    %58 = arith.addf %56, %57 : vector<8x128xf32>
    %59 = arith.negf %58 : vector<8x128xf32>
    %60 = math.exp %59 : vector<8x128xf32>
    %cst_26 = arith.constant 1.000000e+00 : f32
    %61 = vector.broadcast %cst_26 : f32 to vector<8x128xf32>
    %62 = arith.addf %61, %60 : vector<8x128xf32>
    %63 = arith.divf %61, %62 : vector<8x128xf32>
    %64 = vector.extract_strided_slice %55 {offsets = [0, 128], sizes = [8, 128], strides = [1, 1]} : vector<8x384xf32> to vector<8x128xf32>
    %65 = vector.extract_strided_slice %54 {offsets = [0, 128], sizes = [8, 128], strides = [1, 1]} : vector<8x384xf32> to vector<8x128xf32>
    %66 = arith.addf %64, %65 : vector<8x128xf32>
    %67 = arith.negf %66 : vector<8x128xf32>
    %68 = math.exp %67 : vector<8x128xf32>
    %cst_27 = arith.constant 1.000000e+00 : f32
    %69 = vector.broadcast %cst_27 : f32 to vector<8x128xf32>
    %70 = arith.addf %69, %68 : vector<8x128xf32>
    %71 = arith.divf %69, %70 : vector<8x128xf32>
    %72 = vector.extract_strided_slice %55 {offsets = [0, 256], sizes = [8, 128], strides = [1, 1]} : vector<8x384xf32> to vector<8x128xf32>
    %73 = vector.extract_strided_slice %54 {offsets = [0, 256], sizes = [8, 128], strides = [1, 1]} : vector<8x384xf32> to vector<8x128xf32>
    %74 = arith.mulf %63, %73 : vector<8x128xf32>
    %75 = arith.addf %72, %74 : vector<8x128xf32>
    %76 = math.tanh %75 : vector<8x128xf32>
    %cst_28 = arith.constant 1.000000e+00 : f32
    %77 = vector.broadcast %cst_28 : f32 to vector<8x128xf32>
    %78 = arith.subf %77, %71 : vector<8x128xf32>
    %79 = arith.mulf %78, %76 : vector<8x128xf32>
    %80 = arith.mulf %71, %18 : vector<8x128xf32>
    %81 = arith.addf %79, %80 : vector<8x128xf32>
    %82 = vector.extract_strided_slice %50 {offsets = [0, 0], sizes = [8, 384], strides = [1, 1]} : vector<8x768xf32> to vector<8x384xf32>
    %83 = vector.extract_strided_slice %10 {offsets = [8, 0], sizes = [8, 384], strides = [1, 1]} : vector<64x384xf32> to vector<8x384xf32>
    %84 = vector.extract_strided_slice %83 {offsets = [0, 0], sizes = [8, 128], strides = [1, 1]} : vector<8x384xf32> to vector<8x128xf32>
    %85 = vector.extract_strided_slice %82 {offsets = [0, 0], sizes = [8, 128], strides = [1, 1]} : vector<8x384xf32> to vector<8x128xf32>
    %86 = arith.addf %84, %85 : vector<8x128xf32>
    %87 = arith.negf %86 : vector<8x128xf32>
    %88 = math.exp %87 : vector<8x128xf32>
    %cst_29 = arith.constant 1.000000e+00 : f32
    %89 = vector.broadcast %cst_29 : f32 to vector<8x128xf32>
    %90 = arith.addf %89, %88 : vector<8x128xf32>
    %91 = arith.divf %89, %90 : vector<8x128xf32>
    %92 = vector.extract_strided_slice %83 {offsets = [0, 128], sizes = [8, 128], strides = [1, 1]} : vector<8x384xf32> to vector<8x128xf32>
    %93 = vector.extract_strided_slice %82 {offsets = [0, 128], sizes = [8, 128], strides = [1, 1]} : vector<8x384xf32> to vector<8x128xf32>
    %94 = arith.addf %92, %93 : vector<8x128xf32>
    %95 = arith.negf %94 : vector<8x128xf32>
    %96 = math.exp %95 : vector<8x128xf32>
    %cst_30 = arith.constant 1.000000e+00 : f32
    %97 = vector.broadcast %cst_30 : f32 to vector<8x128xf32>
    %98 = arith.addf %97, %96 : vector<8x128xf32>
    %99 = arith.divf %97, %98 : vector<8x128xf32>
    %100 = vector.extract_strided_slice %83 {offsets = [0, 256], sizes = [8, 128], strides = [1, 1]} : vector<8x384xf32> to vector<8x128xf32>
    %101 = vector.extract_strided_slice %82 {offsets = [0, 256], sizes = [8, 128], strides = [1, 1]} : vector<8x384xf32> to vector<8x128xf32>
    %102 = arith.mulf %91, %101 : vector<8x128xf32>
    %103 = arith.addf %100, %102 : vector<8x128xf32>
    %104 = math.tanh %103 : vector<8x128xf32>
    %cst_31 = arith.constant 1.000000e+00 : f32
    %105 = vector.broadcast %cst_31 : f32 to vector<8x128xf32>
    %106 = arith.subf %105, %99 : vector<8x128xf32>
    %107 = arith.mulf %106, %104 : vector<8x128xf32>
    %108 = arith.mulf %99, %46 : vector<8x128xf32>
    %109 = arith.addf %107, %108 : vector<8x128xf32>
    %110 = arith.truncf %109 : vector<8x128xf32> to vector<8x128xbf16>
    %c0_32 = arith.constant 0 : index
    %c0_33 = arith.constant 0 : index
    %111 = vector.load %arg5[%c0_32, %c0_33] : memref<128x768xbf16, #tpu.memory_space<vmem>>, vector<128x768xbf16>
    %cst_34 = arith.constant dense<0.000000e+00> : vector<8x768xf32>
    %112 = tpu.matmul %110, %111, %cst_34 {dimension_numbers = #tpu.dot_dimension_numbers<[1], [0], [0], [1], [0, 0, 1, 1], [], []>} : vector<8x128xbf16>, vector<128x768xbf16>, vector<8x768xf32> -> vector<8x768xf32>
    %113 = arith.addf %112, %13 : vector<8x768xf32>
    %114 = arith.truncf %81 : vector<8x128xf32> to vector<8x128xbf16>
    %c0_35 = arith.constant 0 : index
    %c0_36 = arith.constant 0 : index
    %115 = vector.load %arg7[%c0_35, %c0_36] : memref<128x384xbf16, #tpu.memory_space<vmem>>, vector<128x384xbf16>
    %cst_37 = arith.constant dense<0.000000e+00> : vector<8x384xf32>
    %116 = tpu.matmul %114, %115, %cst_37 {dimension_numbers = #tpu.dot_dimension_numbers<[1], [0], [0], [1], [0, 0, 1, 1], [], []>} : vector<8x128xbf16>, vector<128x384xbf16>, vector<8x384xf32> -> vector<8x384xf32>
    %117 = arith.addf %116, %16 : vector<8x384xf32>
    %118 = vector.extract_strided_slice %113 {offsets = [0, 384], sizes = [8, 384], strides = [1, 1]} : vector<8x768xf32> to vector<8x384xf32>
    %119 = vector.extract_strided_slice %118 {offsets = [0, 0], sizes = [8, 128], strides = [1, 1]} : vector<8x384xf32> to vector<8x128xf32>
    %120 = vector.extract_strided_slice %117 {offsets = [0, 0], sizes = [8, 128], strides = [1, 1]} : vector<8x384xf32> to vector<8x128xf32>
    %121 = arith.addf %119, %120 : vector<8x128xf32>
    %122 = arith.negf %121 : vector<8x128xf32>
    %123 = math.exp %122 : vector<8x128xf32>
    %cst_38 = arith.constant 1.000000e+00 : f32
    %124 = vector.broadcast %cst_38 : f32 to vector<8x128xf32>
    %125 = arith.addf %124, %123 : vector<8x128xf32>
    %126 = arith.divf %124, %125 : vector<8x128xf32>
    %127 = vector.extract_strided_slice %118 {offsets = [0, 128], sizes = [8, 128], strides = [1, 1]} : vector<8x384xf32> to vector<8x128xf32>
    %128 = vector.extract_strided_slice %117 {offsets = [0, 128], sizes = [8, 128], strides = [1, 1]} : vector<8x384xf32> to vector<8x128xf32>
    %129 = arith.addf %127, %128 : vector<8x128xf32>
    %130 = arith.negf %129 : vector<8x128xf32>
    %131 = math.exp %130 : vector<8x128xf32>
    %cst_39 = arith.constant 1.000000e+00 : f32
    %132 = vector.broadcast %cst_39 : f32 to vector<8x128xf32>
    %133 = arith.addf %132, %131 : vector<8x128xf32>
    %134 = arith.divf %132, %133 : vector<8x128xf32>
    %135 = vector.extract_strided_slice %118 {offsets = [0, 256], sizes = [8, 128], strides = [1, 1]} : vector<8x384xf32> to vector<8x128xf32>
    %136 = vector.extract_strided_slice %117 {offsets = [0, 256], sizes = [8, 128], strides = [1, 1]} : vector<8x384xf32> to vector<8x128xf32>
    %137 = arith.mulf %126, %136 : vector<8x128xf32>
    %138 = arith.addf %135, %137 : vector<8x128xf32>
    %139 = math.tanh %138 : vector<8x128xf32>
    %cst_40 = arith.constant 1.000000e+00 : f32
    %140 = vector.broadcast %cst_40 : f32 to vector<8x128xf32>
    %141 = arith.subf %140, %134 : vector<8x128xf32>
    %142 = arith.mulf %141, %139 : vector<8x128xf32>
    %143 = arith.mulf %134, %81 : vector<8x128xf32>
    %144 = arith.addf %142, %143 : vector<8x128xf32>
    %145 = vector.extract_strided_slice %113 {offsets = [0, 0], sizes = [8, 384], strides = [1, 1]} : vector<8x768xf32> to vector<8x384xf32>
    %146 = vector.extract_strided_slice %10 {offsets = [16, 0], sizes = [8, 384], strides = [1, 1]} : vector<64x384xf32> to vector<8x384xf32>
    %147 = vector.extract_strided_slice %146 {offsets = [0, 0], sizes = [8, 128], strides = [1, 1]} : vector<8x384xf32> to vector<8x128xf32>
    %148 = vector.extract_strided_slice %145 {offsets = [0, 0], sizes = [8, 128], strides = [1, 1]} : vector<8x384xf32> to vector<8x128xf32>
    %149 = arith.addf %147, %148 : vector<8x128xf32>
    %150 = arith.negf %149 : vector<8x128xf32>
    %151 = math.exp %150 : vector<8x128xf32>
    %cst_41 = arith.constant 1.000000e+00 : f32
    %152 = vector.broadcast %cst_41 : f32 to vector<8x128xf32>
    %153 = arith.addf %152, %151 : vector<8x128xf32>
    %154 = arith.divf %152, %153 : vector<8x128xf32>
    %155 = vector.extract_strided_slice %146 {offsets = [0, 128], sizes = [8, 128], strides = [1, 1]} : vector<8x384xf32> to vector<8x128xf32>
    %156 = vector.extract_strided_slice %145 {offsets = [0, 128], sizes = [8, 128], strides = [1, 1]} : vector<8x384xf32> to vector<8x128xf32>
    %157 = arith.addf %155, %156 : vector<8x128xf32>
    %158 = arith.negf %157 : vector<8x128xf32>
    %159 = math.exp %158 : vector<8x128xf32>
    %cst_42 = arith.constant 1.000000e+00 : f32
    %160 = vector.broadcast %cst_42 : f32 to vector<8x128xf32>
    %161 = arith.addf %160, %159 : vector<8x128xf32>
    %162 = arith.divf %160, %161 : vector<8x128xf32>
    %163 = vector.extract_strided_slice %146 {offsets = [0, 256], sizes = [8, 128], strides = [1, 1]} : vector<8x384xf32> to vector<8x128xf32>
    %164 = vector.extract_strided_slice %145 {offsets = [0, 256], sizes = [8, 128], strides = [1, 1]} : vector<8x384xf32> to vector<8x128xf32>
    %165 = arith.mulf %154, %164 : vector<8x128xf32>
    %166 = arith.addf %163, %165 : vector<8x128xf32>
    %167 = math.tanh %166 : vector<8x128xf32>
    %cst_43 = arith.constant 1.000000e+00 : f32
    %168 = vector.broadcast %cst_43 : f32 to vector<8x128xf32>
    %169 = arith.subf %168, %162 : vector<8x128xf32>
    %170 = arith.mulf %169, %167 : vector<8x128xf32>
    %171 = arith.mulf %162, %109 : vector<8x128xf32>
    %172 = arith.addf %170, %171 : vector<8x128xf32>
    %173 = arith.truncf %172 : vector<8x128xf32> to vector<8x128xbf16>
    %c0_44 = arith.constant 0 : index
    %c0_45 = arith.constant 0 : index
    %174 = vector.load %arg5[%c0_44, %c0_45] : memref<128x768xbf16, #tpu.memory_space<vmem>>, vector<128x768xbf16>
    %cst_46 = arith.constant dense<0.000000e+00> : vector<8x768xf32>
    %175 = tpu.matmul %173, %174, %cst_46 {dimension_numbers = #tpu.dot_dimension_numbers<[1], [0], [0], [1], [0, 0, 1, 1], [], []>} : vector<8x128xbf16>, vector<128x768xbf16>, vector<8x768xf32> -> vector<8x768xf32>
    %176 = arith.addf %175, %13 : vector<8x768xf32>
    %177 = arith.truncf %144 : vector<8x128xf32> to vector<8x128xbf16>
    %c0_47 = arith.constant 0 : index
    %c0_48 = arith.constant 0 : index
    %178 = vector.load %arg7[%c0_47, %c0_48] : memref<128x384xbf16, #tpu.memory_space<vmem>>, vector<128x384xbf16>
    %cst_49 = arith.constant dense<0.000000e+00> : vector<8x384xf32>
    %179 = tpu.matmul %177, %178, %cst_49 {dimension_numbers = #tpu.dot_dimension_numbers<[1], [0], [0], [1], [0, 0, 1, 1], [], []>} : vector<8x128xbf16>, vector<128x384xbf16>, vector<8x384xf32> -> vector<8x384xf32>
    %180 = arith.addf %179, %16 : vector<8x384xf32>
    %181 = vector.extract_strided_slice %176 {offsets = [0, 384], sizes = [8, 384], strides = [1, 1]} : vector<8x768xf32> to vector<8x384xf32>
    %182 = vector.extract_strided_slice %181 {offsets = [0, 0], sizes = [8, 128], strides = [1, 1]} : vector<8x384xf32> to vector<8x128xf32>
    %183 = vector.extract_strided_slice %180 {offsets = [0, 0], sizes = [8, 128], strides = [1, 1]} : vector<8x384xf32> to vector<8x128xf32>
    %184 = arith.addf %182, %183 : vector<8x128xf32>
    %185 = arith.negf %184 : vector<8x128xf32>
    %186 = math.exp %185 : vector<8x128xf32>
    %cst_50 = arith.constant 1.000000e+00 : f32
    %187 = vector.broadcast %cst_50 : f32 to vector<8x128xf32>
    %188 = arith.addf %187, %186 : vector<8x128xf32>
    %189 = arith.divf %187, %188 : vector<8x128xf32>
    %190 = vector.extract_strided_slice %181 {offsets = [0, 128], sizes = [8, 128], strides = [1, 1]} : vector<8x384xf32> to vector<8x128xf32>
    %191 = vector.extract_strided_slice %180 {offsets = [0, 128], sizes = [8, 128], strides = [1, 1]} : vector<8x384xf32> to vector<8x128xf32>
    %192 = arith.addf %190, %191 : vector<8x128xf32>
    %193 = arith.negf %192 : vector<8x128xf32>
    %194 = math.exp %193 : vector<8x128xf32>
    %cst_51 = arith.constant 1.000000e+00 : f32
    %195 = vector.broadcast %cst_51 : f32 to vector<8x128xf32>
    %196 = arith.addf %195, %194 : vector<8x128xf32>
    %197 = arith.divf %195, %196 : vector<8x128xf32>
    %198 = vector.extract_strided_slice %181 {offsets = [0, 256], sizes = [8, 128], strides = [1, 1]} : vector<8x384xf32> to vector<8x128xf32>
    %199 = vector.extract_strided_slice %180 {offsets = [0, 256], sizes = [8, 128], strides = [1, 1]} : vector<8x384xf32> to vector<8x128xf32>
    %200 = arith.mulf %189, %199 : vector<8x128xf32>
    %201 = arith.addf %198, %200 : vector<8x128xf32>
    %202 = math.tanh %201 : vector<8x128xf32>
    %cst_52 = arith.constant 1.000000e+00 : f32
    %203 = vector.broadcast %cst_52 : f32 to vector<8x128xf32>
    %204 = arith.subf %203, %197 : vector<8x128xf32>
    %205 = arith.mulf %204, %202 : vector<8x128xf32>
    %206 = arith.mulf %197, %144 : vector<8x128xf32>
    %207 = arith.addf %205, %206 : vector<8x128xf32>
    %208 = vector.extract_strided_slice %176 {offsets = [0, 0], sizes = [8, 384], strides = [1, 1]} : vector<8x768xf32> to vector<8x384xf32>
    %209 = vector.extract_strided_slice %10 {offsets = [24, 0], sizes = [8, 384], strides = [1, 1]} : vector<64x384xf32> to vector<8x384xf32>
    %210 = vector.extract_strided_slice %209 {offsets = [0, 0], sizes = [8, 128], strides = [1, 1]} : vector<8x384xf32> to vector<8x128xf32>
    %211 = vector.extract_strided_slice %208 {offsets = [0, 0], sizes = [8, 128], strides = [1, 1]} : vector<8x384xf32> to vector<8x128xf32>
    %212 = arith.addf %210, %211 : vector<8x128xf32>
    %213 = arith.negf %212 : vector<8x128xf32>
    %214 = math.exp %213 : vector<8x128xf32>
    %cst_53 = arith.constant 1.000000e+00 : f32
    %215 = vector.broadcast %cst_53 : f32 to vector<8x128xf32>
    %216 = arith.addf %215, %214 : vector<8x128xf32>
    %217 = arith.divf %215, %216 : vector<8x128xf32>
    %218 = vector.extract_strided_slice %209 {offsets = [0, 128], sizes = [8, 128], strides = [1, 1]} : vector<8x384xf32> to vector<8x128xf32>
    %219 = vector.extract_strided_slice %208 {offsets = [0, 128], sizes = [8, 128], strides = [1, 1]} : vector<8x384xf32> to vector<8x128xf32>
    %220 = arith.addf %218, %219 : vector<8x128xf32>
    %221 = arith.negf %220 : vector<8x128xf32>
    %222 = math.exp %221 : vector<8x128xf32>
    %cst_54 = arith.constant 1.000000e+00 : f32
    %223 = vector.broadcast %cst_54 : f32 to vector<8x128xf32>
    %224 = arith.addf %223, %222 : vector<8x128xf32>
    %225 = arith.divf %223, %224 : vector<8x128xf32>
    %226 = vector.extract_strided_slice %209 {offsets = [0, 256], sizes = [8, 128], strides = [1, 1]} : vector<8x384xf32> to vector<8x128xf32>
    %227 = vector.extract_strided_slice %208 {offsets = [0, 256], sizes = [8, 128], strides = [1, 1]} : vector<8x384xf32> to vector<8x128xf32>
    %228 = arith.mulf %217, %227 : vector<8x128xf32>
    %229 = arith.addf %226, %228 : vector<8x128xf32>
    %230 = math.tanh %229 : vector<8x128xf32>
    %cst_55 = arith.constant 1.000000e+00 : f32
    %231 = vector.broadcast %cst_55 : f32 to vector<8x128xf32>
    %232 = arith.subf %231, %225 : vector<8x128xf32>
    %233 = arith.mulf %232, %230 : vector<8x128xf32>
    %234 = arith.mulf %225, %172 : vector<8x128xf32>
    %235 = arith.addf %233, %234 : vector<8x128xf32>
    %236 = arith.truncf %235 : vector<8x128xf32> to vector<8x128xbf16>
    %c0_56 = arith.constant 0 : index
    %c0_57 = arith.constant 0 : index
    %237 = vector.load %arg5[%c0_56, %c0_57] : memref<128x768xbf16, #tpu.memory_space<vmem>>, vector<128x768xbf16>
    %cst_58 = arith.constant dense<0.000000e+00> : vector<8x768xf32>
    %238 = tpu.matmul %236, %237, %cst_58 {dimension_numbers = #tpu.dot_dimension_numbers<[1], [0], [0], [1], [0, 0, 1, 1], [], []>} : vector<8x128xbf16>, vector<128x768xbf16>, vector<8x768xf32> -> vector<8x768xf32>
    %239 = arith.addf %238, %13 : vector<8x768xf32>
    %240 = arith.truncf %207 : vector<8x128xf32> to vector<8x128xbf16>
    %c0_59 = arith.constant 0 : index
    %c0_60 = arith.constant 0 : index
    %241 = vector.load %arg7[%c0_59, %c0_60] : memref<128x384xbf16, #tpu.memory_space<vmem>>, vector<128x384xbf16>
    %cst_61 = arith.constant dense<0.000000e+00> : vector<8x384xf32>
    %242 = tpu.matmul %240, %241, %cst_61 {dimension_numbers = #tpu.dot_dimension_numbers<[1], [0], [0], [1], [0, 0, 1, 1], [], []>} : vector<8x128xbf16>, vector<128x384xbf16>, vector<8x384xf32> -> vector<8x384xf32>
    %243 = arith.addf %242, %16 : vector<8x384xf32>
    %244 = vector.extract_strided_slice %239 {offsets = [0, 384], sizes = [8, 384], strides = [1, 1]} : vector<8x768xf32> to vector<8x384xf32>
    %245 = vector.extract_strided_slice %244 {offsets = [0, 0], sizes = [8, 128], strides = [1, 1]} : vector<8x384xf32> to vector<8x128xf32>
    %246 = vector.extract_strided_slice %243 {offsets = [0, 0], sizes = [8, 128], strides = [1, 1]} : vector<8x384xf32> to vector<8x128xf32>
    %247 = arith.addf %245, %246 : vector<8x128xf32>
    %248 = arith.negf %247 : vector<8x128xf32>
    %249 = math.exp %248 : vector<8x128xf32>
    %cst_62 = arith.constant 1.000000e+00 : f32
    %250 = vector.broadcast %cst_62 : f32 to vector<8x128xf32>
    %251 = arith.addf %250, %249 : vector<8x128xf32>
    %252 = arith.divf %250, %251 : vector<8x128xf32>
    %253 = vector.extract_strided_slice %244 {offsets = [0, 128], sizes = [8, 128], strides = [1, 1]} : vector<8x384xf32> to vector<8x128xf32>
    %254 = vector.extract_strided_slice %243 {offsets = [0, 128], sizes = [8, 128], strides = [1, 1]} : vector<8x384xf32> to vector<8x128xf32>
    %255 = arith.addf %253, %254 : vector<8x128xf32>
    %256 = arith.negf %255 : vector<8x128xf32>
    %257 = math.exp %256 : vector<8x128xf32>
    %cst_63 = arith.constant 1.000000e+00 : f32
    %258 = vector.broadcast %cst_63 : f32 to vector<8x128xf32>
    %259 = arith.addf %258, %257 : vector<8x128xf32>
    %260 = arith.divf %258, %259 : vector<8x128xf32>
    %261 = vector.extract_strided_slice %244 {offsets = [0, 256], sizes = [8, 128], strides = [1, 1]} : vector<8x384xf32> to vector<8x128xf32>
    %262 = vector.extract_strided_slice %243 {offsets = [0, 256], sizes = [8, 128], strides = [1, 1]} : vector<8x384xf32> to vector<8x128xf32>
    %263 = arith.mulf %252, %262 : vector<8x128xf32>
    %264 = arith.addf %261, %263 : vector<8x128xf32>
    %265 = math.tanh %264 : vector<8x128xf32>
    %cst_64 = arith.constant 1.000000e+00 : f32
    %266 = vector.broadcast %cst_64 : f32 to vector<8x128xf32>
    %267 = arith.subf %266, %260 : vector<8x128xf32>
    %268 = arith.mulf %267, %265 : vector<8x128xf32>
    %269 = arith.mulf %260, %207 : vector<8x128xf32>
    %270 = arith.addf %268, %269 : vector<8x128xf32>
    %271 = vector.extract_strided_slice %239 {offsets = [0, 0], sizes = [8, 384], strides = [1, 1]} : vector<8x768xf32> to vector<8x384xf32>
    %272 = vector.extract_strided_slice %10 {offsets = [32, 0], sizes = [8, 384], strides = [1, 1]} : vector<64x384xf32> to vector<8x384xf32>
    %273 = vector.extract_strided_slice %272 {offsets = [0, 0], sizes = [8, 128], strides = [1, 1]} : vector<8x384xf32> to vector<8x128xf32>
    %274 = vector.extract_strided_slice %271 {offsets = [0, 0], sizes = [8, 128], strides = [1, 1]} : vector<8x384xf32> to vector<8x128xf32>
    %275 = arith.addf %273, %274 : vector<8x128xf32>
    %276 = arith.negf %275 : vector<8x128xf32>
    %277 = math.exp %276 : vector<8x128xf32>
    %cst_65 = arith.constant 1.000000e+00 : f32
    %278 = vector.broadcast %cst_65 : f32 to vector<8x128xf32>
    %279 = arith.addf %278, %277 : vector<8x128xf32>
    %280 = arith.divf %278, %279 : vector<8x128xf32>
    %281 = vector.extract_strided_slice %272 {offsets = [0, 128], sizes = [8, 128], strides = [1, 1]} : vector<8x384xf32> to vector<8x128xf32>
    %282 = vector.extract_strided_slice %271 {offsets = [0, 128], sizes = [8, 128], strides = [1, 1]} : vector<8x384xf32> to vector<8x128xf32>
    %283 = arith.addf %281, %282 : vector<8x128xf32>
    %284 = arith.negf %283 : vector<8x128xf32>
    %285 = math.exp %284 : vector<8x128xf32>
    %cst_66 = arith.constant 1.000000e+00 : f32
    %286 = vector.broadcast %cst_66 : f32 to vector<8x128xf32>
    %287 = arith.addf %286, %285 : vector<8x128xf32>
    %288 = arith.divf %286, %287 : vector<8x128xf32>
    %289 = vector.extract_strided_slice %272 {offsets = [0, 256], sizes = [8, 128], strides = [1, 1]} : vector<8x384xf32> to vector<8x128xf32>
    %290 = vector.extract_strided_slice %271 {offsets = [0, 256], sizes = [8, 128], strides = [1, 1]} : vector<8x384xf32> to vector<8x128xf32>
    %291 = arith.mulf %280, %290 : vector<8x128xf32>
    %292 = arith.addf %289, %291 : vector<8x128xf32>
    %293 = math.tanh %292 : vector<8x128xf32>
    %cst_67 = arith.constant 1.000000e+00 : f32
    %294 = vector.broadcast %cst_67 : f32 to vector<8x128xf32>
    %295 = arith.subf %294, %288 : vector<8x128xf32>
    %296 = arith.mulf %295, %293 : vector<8x128xf32>
    %297 = arith.mulf %288, %235 : vector<8x128xf32>
    %298 = arith.addf %296, %297 : vector<8x128xf32>
    %299 = arith.truncf %298 : vector<8x128xf32> to vector<8x128xbf16>
    %c0_68 = arith.constant 0 : index
    %c0_69 = arith.constant 0 : index
    %300 = vector.load %arg5[%c0_68, %c0_69] : memref<128x768xbf16, #tpu.memory_space<vmem>>, vector<128x768xbf16>
    %cst_70 = arith.constant dense<0.000000e+00> : vector<8x768xf32>
    %301 = tpu.matmul %299, %300, %cst_70 {dimension_numbers = #tpu.dot_dimension_numbers<[1], [0], [0], [1], [0, 0, 1, 1], [], []>} : vector<8x128xbf16>, vector<128x768xbf16>, vector<8x768xf32> -> vector<8x768xf32>
    %302 = arith.addf %301, %13 : vector<8x768xf32>
    %303 = arith.truncf %270 : vector<8x128xf32> to vector<8x128xbf16>
    %c0_71 = arith.constant 0 : index
    %c0_72 = arith.constant 0 : index
    %304 = vector.load %arg7[%c0_71, %c0_72] : memref<128x384xbf16, #tpu.memory_space<vmem>>, vector<128x384xbf16>
    %cst_73 = arith.constant dense<0.000000e+00> : vector<8x384xf32>
    %305 = tpu.matmul %303, %304, %cst_73 {dimension_numbers = #tpu.dot_dimension_numbers<[1], [0], [0], [1], [0, 0, 1, 1], [], []>} : vector<8x128xbf16>, vector<128x384xbf16>, vector<8x384xf32> -> vector<8x384xf32>
    %306 = arith.addf %305, %16 : vector<8x384xf32>
    %307 = vector.extract_strided_slice %302 {offsets = [0, 384], sizes = [8, 384], strides = [1, 1]} : vector<8x768xf32> to vector<8x384xf32>
    %308 = vector.extract_strided_slice %307 {offsets = [0, 0], sizes = [8, 128], strides = [1, 1]} : vector<8x384xf32> to vector<8x128xf32>
    %309 = vector.extract_strided_slice %306 {offsets = [0, 0], sizes = [8, 128], strides = [1, 1]} : vector<8x384xf32> to vector<8x128xf32>
    %310 = arith.addf %308, %309 : vector<8x128xf32>
    %311 = arith.negf %310 : vector<8x128xf32>
    %312 = math.exp %311 : vector<8x128xf32>
    %cst_74 = arith.constant 1.000000e+00 : f32
    %313 = vector.broadcast %cst_74 : f32 to vector<8x128xf32>
    %314 = arith.addf %313, %312 : vector<8x128xf32>
    %315 = arith.divf %313, %314 : vector<8x128xf32>
    %316 = vector.extract_strided_slice %307 {offsets = [0, 128], sizes = [8, 128], strides = [1, 1]} : vector<8x384xf32> to vector<8x128xf32>
    %317 = vector.extract_strided_slice %306 {offsets = [0, 128], sizes = [8, 128], strides = [1, 1]} : vector<8x384xf32> to vector<8x128xf32>
    %318 = arith.addf %316, %317 : vector<8x128xf32>
    %319 = arith.negf %318 : vector<8x128xf32>
    %320 = math.exp %319 : vector<8x128xf32>
    %cst_75 = arith.constant 1.000000e+00 : f32
    %321 = vector.broadcast %cst_75 : f32 to vector<8x128xf32>
    %322 = arith.addf %321, %320 : vector<8x128xf32>
    %323 = arith.divf %321, %322 : vector<8x128xf32>
    %324 = vector.extract_strided_slice %307 {offsets = [0, 256], sizes = [8, 128], strides = [1, 1]} : vector<8x384xf32> to vector<8x128xf32>
    %325 = vector.extract_strided_slice %306 {offsets = [0, 256], sizes = [8, 128], strides = [1, 1]} : vector<8x384xf32> to vector<8x128xf32>
    %326 = arith.mulf %315, %325 : vector<8x128xf32>
    %327 = arith.addf %324, %326 : vector<8x128xf32>
    %328 = math.tanh %327 : vector<8x128xf32>
    %cst_76 = arith.constant 1.000000e+00 : f32
    %329 = vector.broadcast %cst_76 : f32 to vector<8x128xf32>
    %330 = arith.subf %329, %323 : vector<8x128xf32>
    %331 = arith.mulf %330, %328 : vector<8x128xf32>
    %332 = arith.mulf %323, %270 : vector<8x128xf32>
    %333 = arith.addf %331, %332 : vector<8x128xf32>
    %334 = vector.extract_strided_slice %302 {offsets = [0, 0], sizes = [8, 384], strides = [1, 1]} : vector<8x768xf32> to vector<8x384xf32>
    %335 = vector.extract_strided_slice %10 {offsets = [40, 0], sizes = [8, 384], strides = [1, 1]} : vector<64x384xf32> to vector<8x384xf32>
    %336 = vector.extract_strided_slice %335 {offsets = [0, 0], sizes = [8, 128], strides = [1, 1]} : vector<8x384xf32> to vector<8x128xf32>
    %337 = vector.extract_strided_slice %334 {offsets = [0, 0], sizes = [8, 128], strides = [1, 1]} : vector<8x384xf32> to vector<8x128xf32>
    %338 = arith.addf %336, %337 : vector<8x128xf32>
    %339 = arith.negf %338 : vector<8x128xf32>
    %340 = math.exp %339 : vector<8x128xf32>
    %cst_77 = arith.constant 1.000000e+00 : f32
    %341 = vector.broadcast %cst_77 : f32 to vector<8x128xf32>
    %342 = arith.addf %341, %340 : vector<8x128xf32>
    %343 = arith.divf %341, %342 : vector<8x128xf32>
    %344 = vector.extract_strided_slice %335 {offsets = [0, 128], sizes = [8, 128], strides = [1, 1]} : vector<8x384xf32> to vector<8x128xf32>
    %345 = vector.extract_strided_slice %334 {offsets = [0, 128], sizes = [8, 128], strides = [1, 1]} : vector<8x384xf32> to vector<8x128xf32>
    %346 = arith.addf %344, %345 : vector<8x128xf32>
    %347 = arith.negf %346 : vector<8x128xf32>
    %348 = math.exp %347 : vector<8x128xf32>
    %cst_78 = arith.constant 1.000000e+00 : f32
    %349 = vector.broadcast %cst_78 : f32 to vector<8x128xf32>
    %350 = arith.addf %349, %348 : vector<8x128xf32>
    %351 = arith.divf %349, %350 : vector<8x128xf32>
    %352 = vector.extract_strided_slice %335 {offsets = [0, 256], sizes = [8, 128], strides = [1, 1]} : vector<8x384xf32> to vector<8x128xf32>
    %353 = vector.extract_strided_slice %334 {offsets = [0, 256], sizes = [8, 128], strides = [1, 1]} : vector<8x384xf32> to vector<8x128xf32>
    %354 = arith.mulf %343, %353 : vector<8x128xf32>
    %355 = arith.addf %352, %354 : vector<8x128xf32>
    %356 = math.tanh %355 : vector<8x128xf32>
    %cst_79 = arith.constant 1.000000e+00 : f32
    %357 = vector.broadcast %cst_79 : f32 to vector<8x128xf32>
    %358 = arith.subf %357, %351 : vector<8x128xf32>
    %359 = arith.mulf %358, %356 : vector<8x128xf32>
    %360 = arith.mulf %351, %298 : vector<8x128xf32>
    %361 = arith.addf %359, %360 : vector<8x128xf32>
    %362 = arith.truncf %361 : vector<8x128xf32> to vector<8x128xbf16>
    %c0_80 = arith.constant 0 : index
    %c0_81 = arith.constant 0 : index
    %363 = vector.load %arg5[%c0_80, %c0_81] : memref<128x768xbf16, #tpu.memory_space<vmem>>, vector<128x768xbf16>
    %cst_82 = arith.constant dense<0.000000e+00> : vector<8x768xf32>
    %364 = tpu.matmul %362, %363, %cst_82 {dimension_numbers = #tpu.dot_dimension_numbers<[1], [0], [0], [1], [0, 0, 1, 1], [], []>} : vector<8x128xbf16>, vector<128x768xbf16>, vector<8x768xf32> -> vector<8x768xf32>
    %365 = arith.addf %364, %13 : vector<8x768xf32>
    %366 = arith.truncf %333 : vector<8x128xf32> to vector<8x128xbf16>
    %c0_83 = arith.constant 0 : index
    %c0_84 = arith.constant 0 : index
    %367 = vector.load %arg7[%c0_83, %c0_84] : memref<128x384xbf16, #tpu.memory_space<vmem>>, vector<128x384xbf16>
    %cst_85 = arith.constant dense<0.000000e+00> : vector<8x384xf32>
    %368 = tpu.matmul %366, %367, %cst_85 {dimension_numbers = #tpu.dot_dimension_numbers<[1], [0], [0], [1], [0, 0, 1, 1], [], []>} : vector<8x128xbf16>, vector<128x384xbf16>, vector<8x384xf32> -> vector<8x384xf32>
    %369 = arith.addf %368, %16 : vector<8x384xf32>
    %370 = vector.extract_strided_slice %365 {offsets = [0, 384], sizes = [8, 384], strides = [1, 1]} : vector<8x768xf32> to vector<8x384xf32>
    %371 = vector.extract_strided_slice %370 {offsets = [0, 0], sizes = [8, 128], strides = [1, 1]} : vector<8x384xf32> to vector<8x128xf32>
    %372 = vector.extract_strided_slice %369 {offsets = [0, 0], sizes = [8, 128], strides = [1, 1]} : vector<8x384xf32> to vector<8x128xf32>
    %373 = arith.addf %371, %372 : vector<8x128xf32>
    %374 = arith.negf %373 : vector<8x128xf32>
    %375 = math.exp %374 : vector<8x128xf32>
    %cst_86 = arith.constant 1.000000e+00 : f32
    %376 = vector.broadcast %cst_86 : f32 to vector<8x128xf32>
    %377 = arith.addf %376, %375 : vector<8x128xf32>
    %378 = arith.divf %376, %377 : vector<8x128xf32>
    %379 = vector.extract_strided_slice %370 {offsets = [0, 128], sizes = [8, 128], strides = [1, 1]} : vector<8x384xf32> to vector<8x128xf32>
    %380 = vector.extract_strided_slice %369 {offsets = [0, 128], sizes = [8, 128], strides = [1, 1]} : vector<8x384xf32> to vector<8x128xf32>
    %381 = arith.addf %379, %380 : vector<8x128xf32>
    %382 = arith.negf %381 : vector<8x128xf32>
    %383 = math.exp %382 : vector<8x128xf32>
    %cst_87 = arith.constant 1.000000e+00 : f32
    %384 = vector.broadcast %cst_87 : f32 to vector<8x128xf32>
    %385 = arith.addf %384, %383 : vector<8x128xf32>
    %386 = arith.divf %384, %385 : vector<8x128xf32>
    %387 = vector.extract_strided_slice %370 {offsets = [0, 256], sizes = [8, 128], strides = [1, 1]} : vector<8x384xf32> to vector<8x128xf32>
    %388 = vector.extract_strided_slice %369 {offsets = [0, 256], sizes = [8, 128], strides = [1, 1]} : vector<8x384xf32> to vector<8x128xf32>
    %389 = arith.mulf %378, %388 : vector<8x128xf32>
    %390 = arith.addf %387, %389 : vector<8x128xf32>
    %391 = math.tanh %390 : vector<8x128xf32>
    %cst_88 = arith.constant 1.000000e+00 : f32
    %392 = vector.broadcast %cst_88 : f32 to vector<8x128xf32>
    %393 = arith.subf %392, %386 : vector<8x128xf32>
    %394 = arith.mulf %393, %391 : vector<8x128xf32>
    %395 = arith.mulf %386, %333 : vector<8x128xf32>
    %396 = arith.addf %394, %395 : vector<8x128xf32>
    %397 = vector.extract_strided_slice %365 {offsets = [0, 0], sizes = [8, 384], strides = [1, 1]} : vector<8x768xf32> to vector<8x384xf32>
    %398 = vector.extract_strided_slice %10 {offsets = [48, 0], sizes = [8, 384], strides = [1, 1]} : vector<64x384xf32> to vector<8x384xf32>
    %399 = vector.extract_strided_slice %398 {offsets = [0, 0], sizes = [8, 128], strides = [1, 1]} : vector<8x384xf32> to vector<8x128xf32>
    %400 = vector.extract_strided_slice %397 {offsets = [0, 0], sizes = [8, 128], strides = [1, 1]} : vector<8x384xf32> to vector<8x128xf32>
    %401 = arith.addf %399, %400 : vector<8x128xf32>
    %402 = arith.negf %401 : vector<8x128xf32>
    %403 = math.exp %402 : vector<8x128xf32>
    %cst_89 = arith.constant 1.000000e+00 : f32
    %404 = vector.broadcast %cst_89 : f32 to vector<8x128xf32>
    %405 = arith.addf %404, %403 : vector<8x128xf32>
    %406 = arith.divf %404, %405 : vector<8x128xf32>
    %407 = vector.extract_strided_slice %398 {offsets = [0, 128], sizes = [8, 128], strides = [1, 1]} : vector<8x384xf32> to vector<8x128xf32>
    %408 = vector.extract_strided_slice %397 {offsets = [0, 128], sizes = [8, 128], strides = [1, 1]} : vector<8x384xf32> to vector<8x128xf32>
    %409 = arith.addf %407, %408 : vector<8x128xf32>
    %410 = arith.negf %409 : vector<8x128xf32>
    %411 = math.exp %410 : vector<8x128xf32>
    %cst_90 = arith.constant 1.000000e+00 : f32
    %412 = vector.broadcast %cst_90 : f32 to vector<8x128xf32>
    %413 = arith.addf %412, %411 : vector<8x128xf32>
    %414 = arith.divf %412, %413 : vector<8x128xf32>
    %415 = vector.extract_strided_slice %398 {offsets = [0, 256], sizes = [8, 128], strides = [1, 1]} : vector<8x384xf32> to vector<8x128xf32>
    %416 = vector.extract_strided_slice %397 {offsets = [0, 256], sizes = [8, 128], strides = [1, 1]} : vector<8x384xf32> to vector<8x128xf32>
    %417 = arith.mulf %406, %416 : vector<8x128xf32>
    %418 = arith.addf %415, %417 : vector<8x128xf32>
    %419 = math.tanh %418 : vector<8x128xf32>
    %cst_91 = arith.constant 1.000000e+00 : f32
    %420 = vector.broadcast %cst_91 : f32 to vector<8x128xf32>
    %421 = arith.subf %420, %414 : vector<8x128xf32>
    %422 = arith.mulf %421, %419 : vector<8x128xf32>
    %423 = arith.mulf %414, %361 : vector<8x128xf32>
    %424 = arith.addf %422, %423 : vector<8x128xf32>
    %425 = arith.truncf %424 : vector<8x128xf32> to vector<8x128xbf16>
    %c0_92 = arith.constant 0 : index
    %c0_93 = arith.constant 0 : index
    %426 = vector.load %arg5[%c0_92, %c0_93] : memref<128x768xbf16, #tpu.memory_space<vmem>>, vector<128x768xbf16>
    %cst_94 = arith.constant dense<0.000000e+00> : vector<8x768xf32>
    %427 = tpu.matmul %425, %426, %cst_94 {dimension_numbers = #tpu.dot_dimension_numbers<[1], [0], [0], [1], [0, 0, 1, 1], [], []>} : vector<8x128xbf16>, vector<128x768xbf16>, vector<8x768xf32> -> vector<8x768xf32>
    %428 = arith.addf %427, %13 : vector<8x768xf32>
    %429 = arith.truncf %396 : vector<8x128xf32> to vector<8x128xbf16>
    %c0_95 = arith.constant 0 : index
    %c0_96 = arith.constant 0 : index
    %430 = vector.load %arg7[%c0_95, %c0_96] : memref<128x384xbf16, #tpu.memory_space<vmem>>, vector<128x384xbf16>
    %cst_97 = arith.constant dense<0.000000e+00> : vector<8x384xf32>
    %431 = tpu.matmul %429, %430, %cst_97 {dimension_numbers = #tpu.dot_dimension_numbers<[1], [0], [0], [1], [0, 0, 1, 1], [], []>} : vector<8x128xbf16>, vector<128x384xbf16>, vector<8x384xf32> -> vector<8x384xf32>
    %432 = arith.addf %431, %16 : vector<8x384xf32>
    %433 = vector.extract_strided_slice %428 {offsets = [0, 384], sizes = [8, 384], strides = [1, 1]} : vector<8x768xf32> to vector<8x384xf32>
    %434 = vector.extract_strided_slice %433 {offsets = [0, 0], sizes = [8, 128], strides = [1, 1]} : vector<8x384xf32> to vector<8x128xf32>
    %435 = vector.extract_strided_slice %432 {offsets = [0, 0], sizes = [8, 128], strides = [1, 1]} : vector<8x384xf32> to vector<8x128xf32>
    %436 = arith.addf %434, %435 : vector<8x128xf32>
    %437 = arith.negf %436 : vector<8x128xf32>
    %438 = math.exp %437 : vector<8x128xf32>
    %cst_98 = arith.constant 1.000000e+00 : f32
    %439 = vector.broadcast %cst_98 : f32 to vector<8x128xf32>
    %440 = arith.addf %439, %438 : vector<8x128xf32>
    %441 = arith.divf %439, %440 : vector<8x128xf32>
    %442 = vector.extract_strided_slice %433 {offsets = [0, 128], sizes = [8, 128], strides = [1, 1]} : vector<8x384xf32> to vector<8x128xf32>
    %443 = vector.extract_strided_slice %432 {offsets = [0, 128], sizes = [8, 128], strides = [1, 1]} : vector<8x384xf32> to vector<8x128xf32>
    %444 = arith.addf %442, %443 : vector<8x128xf32>
    %445 = arith.negf %444 : vector<8x128xf32>
    %446 = math.exp %445 : vector<8x128xf32>
    %cst_99 = arith.constant 1.000000e+00 : f32
    %447 = vector.broadcast %cst_99 : f32 to vector<8x128xf32>
    %448 = arith.addf %447, %446 : vector<8x128xf32>
    %449 = arith.divf %447, %448 : vector<8x128xf32>
    %450 = vector.extract_strided_slice %433 {offsets = [0, 256], sizes = [8, 128], strides = [1, 1]} : vector<8x384xf32> to vector<8x128xf32>
    %451 = vector.extract_strided_slice %432 {offsets = [0, 256], sizes = [8, 128], strides = [1, 1]} : vector<8x384xf32> to vector<8x128xf32>
    %452 = arith.mulf %441, %451 : vector<8x128xf32>
    %453 = arith.addf %450, %452 : vector<8x128xf32>
    %454 = math.tanh %453 : vector<8x128xf32>
    %cst_100 = arith.constant 1.000000e+00 : f32
    %455 = vector.broadcast %cst_100 : f32 to vector<8x128xf32>
    %456 = arith.subf %455, %449 : vector<8x128xf32>
    %457 = arith.mulf %456, %454 : vector<8x128xf32>
    %458 = arith.mulf %449, %396 : vector<8x128xf32>
    %459 = arith.addf %457, %458 : vector<8x128xf32>
    %460 = vector.extract_strided_slice %428 {offsets = [0, 0], sizes = [8, 384], strides = [1, 1]} : vector<8x768xf32> to vector<8x384xf32>
    %461 = vector.extract_strided_slice %10 {offsets = [56, 0], sizes = [8, 384], strides = [1, 1]} : vector<64x384xf32> to vector<8x384xf32>
    %462 = vector.extract_strided_slice %461 {offsets = [0, 0], sizes = [8, 128], strides = [1, 1]} : vector<8x384xf32> to vector<8x128xf32>
    %463 = vector.extract_strided_slice %460 {offsets = [0, 0], sizes = [8, 128], strides = [1, 1]} : vector<8x384xf32> to vector<8x128xf32>
    %464 = arith.addf %462, %463 : vector<8x128xf32>
    %465 = arith.negf %464 : vector<8x128xf32>
    %466 = math.exp %465 : vector<8x128xf32>
    %cst_101 = arith.constant 1.000000e+00 : f32
    %467 = vector.broadcast %cst_101 : f32 to vector<8x128xf32>
    %468 = arith.addf %467, %466 : vector<8x128xf32>
    %469 = arith.divf %467, %468 : vector<8x128xf32>
    %470 = vector.extract_strided_slice %461 {offsets = [0, 128], sizes = [8, 128], strides = [1, 1]} : vector<8x384xf32> to vector<8x128xf32>
    %471 = vector.extract_strided_slice %460 {offsets = [0, 128], sizes = [8, 128], strides = [1, 1]} : vector<8x384xf32> to vector<8x128xf32>
    %472 = arith.addf %470, %471 : vector<8x128xf32>
    %473 = arith.negf %472 : vector<8x128xf32>
    %474 = math.exp %473 : vector<8x128xf32>
    %cst_102 = arith.constant 1.000000e+00 : f32
    %475 = vector.broadcast %cst_102 : f32 to vector<8x128xf32>
    %476 = arith.addf %475, %474 : vector<8x128xf32>
    %477 = arith.divf %475, %476 : vector<8x128xf32>
    %478 = vector.extract_strided_slice %461 {offsets = [0, 256], sizes = [8, 128], strides = [1, 1]} : vector<8x384xf32> to vector<8x128xf32>
    %479 = vector.extract_strided_slice %460 {offsets = [0, 256], sizes = [8, 128], strides = [1, 1]} : vector<8x384xf32> to vector<8x128xf32>
    %480 = arith.mulf %469, %479 : vector<8x128xf32>
    %481 = arith.addf %478, %480 : vector<8x128xf32>
    %482 = math.tanh %481 : vector<8x128xf32>
    %cst_103 = arith.constant 1.000000e+00 : f32
    %483 = vector.broadcast %cst_103 : f32 to vector<8x128xf32>
    %484 = arith.subf %483, %477 : vector<8x128xf32>
    %485 = arith.mulf %484, %482 : vector<8x128xf32>
    %486 = arith.mulf %477, %424 : vector<8x128xf32>
    %487 = arith.addf %485, %486 : vector<8x128xf32>
    %488 = arith.truncf %487 : vector<8x128xf32> to vector<8x128xbf16>
    %c0_104 = arith.constant 0 : index
    %c0_105 = arith.constant 0 : index
    %489 = vector.load %arg5[%c0_104, %c0_105] : memref<128x768xbf16, #tpu.memory_space<vmem>>, vector<128x768xbf16>
    %cst_106 = arith.constant dense<0.000000e+00> : vector<8x768xf32>
    %490 = tpu.matmul %488, %489, %cst_106 {dimension_numbers = #tpu.dot_dimension_numbers<[1], [0], [0], [1], [0, 0, 1, 1], [], []>} : vector<8x128xbf16>, vector<128x768xbf16>, vector<8x768xf32> -> vector<8x768xf32>
    %491 = arith.addf %490, %13 : vector<8x768xf32>
    %492 = arith.truncf %459 : vector<8x128xf32> to vector<8x128xbf16>
    %c0_107 = arith.constant 0 : index
    %c0_108 = arith.constant 0 : index
    %493 = vector.load %arg7[%c0_107, %c0_108] : memref<128x384xbf16, #tpu.memory_space<vmem>>, vector<128x384xbf16>
    %cst_109 = arith.constant dense<0.000000e+00> : vector<8x384xf32>
    %494 = tpu.matmul %492, %493, %cst_109 {dimension_numbers = #tpu.dot_dimension_numbers<[1], [0], [0], [1], [0, 0, 1, 1], [], []>} : vector<8x128xbf16>, vector<128x384xbf16>, vector<8x384xf32> -> vector<8x384xf32>
    %495 = arith.addf %494, %16 : vector<8x384xf32>
    %496 = vector.extract_strided_slice %491 {offsets = [0, 384], sizes = [8, 384], strides = [1, 1]} : vector<8x768xf32> to vector<8x384xf32>
    %497 = vector.extract_strided_slice %496 {offsets = [0, 0], sizes = [8, 128], strides = [1, 1]} : vector<8x384xf32> to vector<8x128xf32>
    %498 = vector.extract_strided_slice %495 {offsets = [0, 0], sizes = [8, 128], strides = [1, 1]} : vector<8x384xf32> to vector<8x128xf32>
    %499 = arith.addf %497, %498 : vector<8x128xf32>
    %500 = arith.negf %499 : vector<8x128xf32>
    %501 = math.exp %500 : vector<8x128xf32>
    %cst_110 = arith.constant 1.000000e+00 : f32
    %502 = vector.broadcast %cst_110 : f32 to vector<8x128xf32>
    %503 = arith.addf %502, %501 : vector<8x128xf32>
    %504 = arith.divf %502, %503 : vector<8x128xf32>
    %505 = vector.extract_strided_slice %496 {offsets = [0, 128], sizes = [8, 128], strides = [1, 1]} : vector<8x384xf32> to vector<8x128xf32>
    %506 = vector.extract_strided_slice %495 {offsets = [0, 128], sizes = [8, 128], strides = [1, 1]} : vector<8x384xf32> to vector<8x128xf32>
    %507 = arith.addf %505, %506 : vector<8x128xf32>
    %508 = arith.negf %507 : vector<8x128xf32>
    %509 = math.exp %508 : vector<8x128xf32>
    %cst_111 = arith.constant 1.000000e+00 : f32
    %510 = vector.broadcast %cst_111 : f32 to vector<8x128xf32>
    %511 = arith.addf %510, %509 : vector<8x128xf32>
    %512 = arith.divf %510, %511 : vector<8x128xf32>
    %513 = vector.extract_strided_slice %496 {offsets = [0, 256], sizes = [8, 128], strides = [1, 1]} : vector<8x384xf32> to vector<8x128xf32>
    %514 = vector.extract_strided_slice %495 {offsets = [0, 256], sizes = [8, 128], strides = [1, 1]} : vector<8x384xf32> to vector<8x128xf32>
    %515 = arith.mulf %504, %514 : vector<8x128xf32>
    %516 = arith.addf %513, %515 : vector<8x128xf32>
    %517 = math.tanh %516 : vector<8x128xf32>
    %cst_112 = arith.constant 1.000000e+00 : f32
    %518 = vector.broadcast %cst_112 : f32 to vector<8x128xf32>
    %519 = arith.subf %518, %512 : vector<8x128xf32>
    %520 = arith.mulf %519, %517 : vector<8x128xf32>
    %521 = arith.mulf %512, %459 : vector<8x128xf32>
    %522 = arith.addf %520, %521 : vector<8x128xf32>
    %523 = vector.extract_strided_slice %491 {offsets = [0, 0], sizes = [8, 384], strides = [1, 1]} : vector<8x768xf32> to vector<8x384xf32>
    %c0_113 = arith.constant 0 : index
    %c0_114 = arith.constant 0 : index
    %524 = vector.load %arg12[%c0_113, %c0_114] : memref<8x128xf32, #tpu.memory_space<vmem>>, vector<8x128xf32>
    tpu.vector_store %arg12[%c0_113, %c0_114], %487 {strides = array<i32>} : memref<8x128xf32, #tpu.memory_space<vmem>>, vector<8x128xf32>,
    %c0_115 = arith.constant 0 : index
    %c0_116 = arith.constant 0 : index
    %525 = vector.load %arg13[%c0_115, %c0_116] : memref<8x128xf32, #tpu.memory_space<vmem>>, vector<8x128xf32>
    tpu.vector_store %arg13[%c0_115, %c0_116], %522 {strides = array<i32>} : memref<8x128xf32, #tpu.memory_space<vmem>>, vector<8x128xf32>,
    %c0_117 = arith.constant 0 : index
    %c0_118 = arith.constant 0 : index
    %526 = vector.load %arg14[%c0_117, %c0_118] : memref<8x384xf32, #tpu.memory_space<vmem>>, vector<8x384xf32>
    tpu.vector_store %arg14[%c0_117, %c0_118], %523 {strides = array<i32>} : memref<8x384xf32, #tpu.memory_space<vmem>>, vector<8x384xf32>,
    %cst_119 = arith.constant 0.000000e+00 : f32
    %527 = vector.broadcast %cst_119 : f32 to vector<8x128xf32>
    %528 = arith.maximumf %522, %527 : vector<8x128xf32>
    %529 = arith.truncf %528 : vector<8x128xf32> to vector<8x128xbf16>
    %c0_120 = arith.constant 0 : index
    %c0_121 = arith.constant 0 : index
    %530 = vector.load %arg9[%c0_120, %c0_121] : memref<128x128xbf16, #tpu.memory_space<vmem>>, vector<128x128xbf16>
    %cst_122 = arith.constant dense<0.000000e+00> : vector<8x128xf32>
    %531 = tpu.matmul %529, %530, %cst_122 {dimension_numbers = #tpu.dot_dimension_numbers<[1], [0], [0], [1], [0, 0, 1, 1], [], []>} : vector<8x128xbf16>, vector<128x128xbf16>, vector<8x128xf32> -> vector<8x128xf32>
    %c0_123 = arith.constant 0 : index
    %c0_124 = arith.constant 0 : index
    %532 = vector.load %arg10[%c0_123, %c0_124] : memref<1x128xf32, #tpu.memory_space<vmem>>, vector<1x128xf32>
    %533 = vector.broadcast %532 : vector<1x128xf32> to vector<8x128xf32>
    %534 = arith.addf %531, %533 : vector<8x128xf32>
    %c0_125 = arith.constant 0 : index
    %c0_126 = arith.constant 0 : index
    %535 = vector.load %arg11[%c0_125, %c0_126] : memref<8x128xf32, #tpu.memory_space<vmem>>, vector<8x128xf32>
    tpu.vector_store %arg11[%c0_125, %c0_126], %534 {strides = array<i32>} : memref<8x128xf32, #tpu.memory_space<vmem>>, vector<8x128xf32>,
    return
  }
  func.func @transform_0(%arg0: i32, %arg1: i32) -> (i32, i32, i32) {
    %c0_i32 = arith.constant 0 : i32
    %c0_i32_0 = arith.constant 0 : i32
    return %arg1, %arg0, %c0_i32 : i32, i32, i32
  }
  func.func @transform_1(%arg0: i32, %arg1: i32) -> (i32, i32) {
    %c0_i32 = arith.constant 0 : i32
    %c0_i32_0 = arith.constant 0 : i32
    %c0_i32_1 = arith.constant 0 : i32
    return %c0_i32, %c0_i32_0 : i32, i32
  }
  func.func @transform_2(%arg0: i32, %arg1: i32) -> (i32, i32) {
    %c0_i32 = arith.constant 0 : i32
    %c0_i32_0 = arith.constant 0 : i32
    %c0_i32_1 = arith.constant 0 : i32
    return %c0_i32, %c0_i32_0 : i32, i32
  }
  func.func @transform_3(%arg0: i32, %arg1: i32) -> (i32, i32) {
    %c0_i32 = arith.constant 0 : i32
    %c0_i32_0 = arith.constant 0 : i32
    %c0_i32_1 = arith.constant 0 : i32
    return %c0_i32, %c0_i32_0 : i32, i32
  }
  func.func @transform_4(%arg0: i32, %arg1: i32) -> (i32, i32) {
    %c0_i32 = arith.constant 0 : i32
    %c0_i32_0 = arith.constant 0 : i32
    %c0_i32_1 = arith.constant 0 : i32
    return %c0_i32, %c0_i32_0 : i32, i32
  }
  func.func @transform_5(%arg0: i32, %arg1: i32) -> (i32, i32) {
    %c0_i32 = arith.constant 0 : i32
    %c0_i32_0 = arith.constant 0 : i32
    %c0_i32_1 = arith.constant 0 : i32
    return %c0_i32, %c0_i32_0 : i32, i32
  }
  func.func @transform_6(%arg0: i32, %arg1: i32) -> (i32, i32) {
    %c0_i32 = arith.constant 0 : i32
    %c0_i32_0 = arith.constant 0 : i32
    %c0_i32_1 = arith.constant 0 : i32
    return %c0_i32, %c0_i32_0 : i32, i32
  }
  func.func @transform_7(%arg0: i32, %arg1: i32) -> (i32, i32) {
    %c0_i32 = arith.constant 0 : i32
    %c0_i32_0 = arith.constant 0 : i32
    %c0_i32_1 = arith.constant 0 : i32
    return %c0_i32, %c0_i32_0 : i32, i32
  }
  func.func @transform_8(%arg0: i32, %arg1: i32) -> (i32, i32) {
    %c0_i32 = arith.constant 0 : i32
    %c0_i32_0 = arith.constant 0 : i32
    %c0_i32_1 = arith.constant 0 : i32
    return %c0_i32, %c0_i32_0 : i32, i32
  }
  func.func @transform_9(%arg0: i32, %arg1: i32) -> (i32, i32) {
    %c0_i32 = arith.constant 0 : i32
    %c0_i32_0 = arith.constant 0 : i32
    return %arg0, %c0_i32 : i32, i32
  }
}

</mosaic_0001>

<bundles_post_ra>
// kernel: _lambda_.1
= control target key start
LH: loop header
LB: loop body
LE: loop exit
PB: predicated region body
PF: predicated region fallthrough
CT: control target
= control target key end

     0   :  { %14 = vsyncpa [#allocation6], 0  ;;  %s4737_s0 = inlined_call_operand.vmem [shape: f32[8,8,128], index: 0, kind: input, shape index: {}]   ;;  %s4738_s1 = inlined_call_operand.vmem [shape: bf16[128,384], index: 1, kind: input, shape index: {}]   ;;  %s4739_s2 = inlined_call_operand.vmem [shape: f32[1,384], index: 2, kind: input, shape index: {}]   ;;  %s4740_s3 = inlined_call_operand.hbm [shape: bf16[128,768], index: 3, kind: input, shape index: {}]   ;;  %s4741_s4 = inlined_call_operand.vmem [shape: f32[1,768], index: 4, kind: input, shape index: {}]   ;;  %s4742_s5 = inlined_call_operand.hbm [shape: bf16[128,384], index: 5, kind: input, shape index: {}]   ;;  %s4743_s6 = inlined_call_operand.vmem [shape: f32[1,384], index: 6, kind: input, shape index: {}]   ;;  %s4744_s7 = inlined_call_operand.vmem [shape: bf16[128,128], index: 7, kind: input, shape index: {}]   ;;  %s4745_s8 = inlined_call_operand.vmem [shape: f32[1,128], index: 8, kind: input, shape index: {}]   ;;  %s4746_s9 = inlined_call_operand.vmem [shape: f32[8,128], index: 9, kind: output, shape index: {}]  }
   0x1   :  { %s26_s11 = sshll.u32 %s4740_s3, 4  ;;  %s27_s11 = int_to_ptr.hbm [resolvable:$true] %s26_s11 }
   0x2   :  { %15 = vsyncpa [#allocation8], 0  ;;  %s3394_s12 = smov [#allocation5]   ;;  %s41_s16 = sshll.u32 %s4742_s5, 4  ;;  %s42_s16 = int_to_ptr.hbm [resolvable:$true] %s41_s16 }
   0x3   :  { %s28_s13 = sshll.u32 %s3394_s12, 4  ;;  %s3395_s17 = smov 384   ;;  %s29_s13 = int_to_ptr.vmem [resolvable:$true] %s28_s13 }
   0x4   :  { %s3396_s18 = smov 24   ;;  %s3397_s19 = smov [#allocation7]  }
   0x5   :  { %34 = dma.hbm_to_vmem [thread:$0]  %s27_s11, 6144, %s29_s13, [#allocation6], %s3395_s17, %s3395_s17, %s3396_s18  }
   0x6   :  { %s43_s20 = sshll.u32 %s3397_s19, 4  ;;  %s3398_s21 = smov 192   ;;  %s44_s20 = int_to_ptr.vmem [resolvable:$true] %s43_s20 }
   0x7   :  { %s3399_s22 = smov 12  }
   0x8   :  { %49 = dma.hbm_to_vmem [thread:$0]  %s42_s16, 3072, %s44_s20, [#allocation8], %s3398_s21, %s3398_s21, %s3399_s22  }
   0x9   :  { %3390 = dma.done.wait [#allocation6], 6144  }
   0xa   :  { %3391 = vsyncadd [#allocation6], 4294961152 }
   0xb   :  { %3392 = dma.done.wait [#allocation8], 3072  }
   0xc   :  { %3393 = vsyncadd [#allocation8], 4294964224  ;;  %v2708_v0 = vld [vmem:[%s4738_s1 + $0xa8] sm:$0xf]  ;;  %v3092_v1 = vld [vmem:[%s4738_s1 + $0xb0] sm:$0xf0] }
   0xd   :  { %v3091_v2 = vld [vmem:[%s4738_s1 + $0xac] sm:$0xf]  ;;  %v2709_v3 = vor.u32 %v3092_v1, %v2708_v0  ;;  %v2710_v4 = vld [vmem:[%s4738_s1 + $0xb4] sm:$0xf0]  ;;  %v2696_v5 = vld [vmem:[%s4738_s1 + $0x90] sm:$0xf] }
   0xe   :  { %v3089_v6 = vld [vmem:[%s4738_s1 + $0x98] sm:$0xf0]  ;;  %v2713_v7 = vor.u32 %v3091_v2, %v2710_v4  ;;  %v3088_v8 = vld [vmem:[%s4738_s1 + $0x94] sm:$0xf]  ;;  %v2698_v9 = vld [vmem:[%s4738_s1 + $0x9c] sm:$0xf0] }
   0xf   :  { %261 = vmatpush.bf16.msra.mxu0 %v2709_v3  ;;  %v2697_v10 = vor.u32 %v3089_v6, %v2696_v5  ;;  %v2701_v11 = vor.u32 %v3088_v8, %v2698_v9  ;;  %v2684_v12 = vld [vmem:[%s4738_s1 + $0x78] sm:$0xf]  ;;  %v3086_v13 = vld [vmem:[%s4738_s1 + $0x80] sm:$0xf0]  ;;  %v3085_v14 = vld [vmem:[%s4738_s1 + $0x7c] sm:$0xf] }
  0x10   :  { %290 = vmatpush.bf16.msra.mxu1 %v2713_v7  ;;  %v2686_v15 = vld [vmem:[%s4738_s1 + $0x84] sm:$0xf0]  ;;  %v2716_v16 = vld [vmem:[%s4738_s1 + $0xb0] sm:$0xf]  ;;  %v2685_v17 = vor.u32 %v3086_v13, %v2684_v12  ;;  %v3093_v18 = vld [vmem:[%s4738_s1 + $0xb8] sm:$0xf0] }
  0x11   :  { %v2689_v19 = vor.u32 %v3085_v14, %v2686_v15  ;;  %v2672_v20 = vld [vmem:[%s4738_s1 + $0x60] sm:$0xf]  ;;  %v3083_v21 = vld [vmem:[%s4738_s1 + $0x68] sm:$0xf0]  ;;  %v2717_v22 = vor.u32 %v3093_v18, %v2716_v16  ;;  %v2704_v23 = vld [vmem:[%s4738_s1 + $0x98] sm:$0xf] }
  0x12   :  { %v3082_v24 = vld [vmem:[%s4738_s1 + $0x64] sm:$0xf]  ;;  %v2674_v25 = vld [vmem:[%s4738_s1 + $0x6c] sm:$0xf0]  ;;  %v2673_v28 = vor.u32 %v3083_v21, %v2672_v20  ;;  %v2692_v29 = vld [vmem:[%s4738_s1 + $0x80] sm:$0xf] }
  0x13   :  { %262 = vmatpush.bf16.msra.mxu0 %v2697_v10  ;;  %v3090_v26 = vld [vmem:[%s4738_s1 + $0xa0] sm:$0xf0]  ;;  %319 = vmatpush.bf16.msra.mxu2 %v2717_v22  ;;  %v3087_v30 = vld [vmem:[%s4738_s1 + $0x88] sm:$0xf0]  ;;  %v2677_v31 = vor.u32 %v3082_v24, %v2674_v25  ;;  %v2660_v32 = vld [vmem:[%s4738_s1 + $0x48] sm:$0xf] }
  0x14   :  { %291 = vmatpush.bf16.msra.mxu1 %v2701_v11  ;;  %v2705_v27 = vor.u32 %v3090_v26, %v2704_v23  ;;  %v3080_v33 = vld [vmem:[%s4738_s1 + $0x50] sm:$0xf0]  ;;  %v3079_v34 = vld [vmem:[%s4738_s1 + $0x4c] sm:$0xf]  ;;  %v2662_v35 = vld [vmem:[%s4738_s1 + $0x54] sm:$0xf0]  ;;  %v2693_v37 = vor.u32 %v3087_v30, %v2692_v29 }
  0x15   :  { %v2648_v36 = vld [vmem:[%s4738_s1 + $0x30] sm:$0xf]  ;;  %v2661_v38 = vor.u32 %v3080_v33, %v2660_v32  ;;  %v3077_v39 = vld [vmem:[%s4738_s1 + $0x38] sm:$0xf0]  ;;  %v2680_v40 = vld [vmem:[%s4738_s1 + $0x68] sm:$0xf]  ;;  %v2665_v42 = vor.u32 %v3079_v34, %v2662_v35 }
  0x16   :  { %v3084_v41 = vld [vmem:[%s4738_s1 + $0x70] sm:$0xf0]  ;;  %v2650_v44 = vld [vmem:[%s4738_s1 + $0x3c] sm:$0xf0]  ;;  %v2890_v45 = vld [vmem:[#allocation5 + $0x150] sm:$0xf]  ;;  %v2649_v51 = vor.u32 %v3077_v39, %v2648_v36 }
  0x17   :  { %263 = vmatpush.bf16.msra.mxu0 %v2685_v17  ;;  %320 = vmatpush.bf16.msra.mxu2 %v2705_v27  ;;  %v3076_v43 = vld [vmem:[%s4738_s1 + $0x34] sm:$0xf]  ;;  %v3139_v46 = vld [vmem:[#allocation5 + $0x164] sm:$0xf0]  ;;  %v2866_v47 = vld [vmem:[#allocation5 + $0x120] sm:$0xf]  ;;  %v2681_v49 = vor.u32 %v3084_v41, %v2680_v40 }
  0x18   :  { %292 = vmatpush.bf16.msra.mxu1 %v2689_v19  ;;  %v3133_v48 = vld [vmem:[#allocation5 + $0x134] sm:$0xf0]  ;;  %v3553_v50 = vor.u32 %v3139_v46, %v2890_v45  ;;  %v2668_v52 = vld [vmem:[%s4738_s1 + $0x50] sm:$0xf]  ;;  %v3081_v53 = vld [vmem:[%s4738_s1 + $0x58] sm:$0xf0]  ;;  %v2653_v54 = vor.u32 %v3076_v43, %v2650_v44 }
  0x19   :  { %v2636_v55 = vld [vmem:[%s4738_s1 + $0x18] sm:$0xf]  ;;  %v3074_v56 = vld [vmem:[%s4738_s1 + $0x20] sm:$0xf0]  ;;  %v3568_v57 = vor.u32 %v3133_v48, %v2866_v47  ;;  %v3073_v58 = vld [vmem:[%s4738_s1 + $0x1c] sm:$0xf]  ;;  %v2669_v60 = vor.u32 %v3081_v53, %v2668_v52 }
  0x1a   :  { %711 = vmatpush.bf16.msra.mxu3 %v3553_v50  ;;  %v2638_v59 = vld [vmem:[%s4738_s1 + $0x24] sm:$0xf0]  ;;  %v2637_v61 = vor.u32 %v3074_v56, %v2636_v55  ;;  %v2656_v62 = vld [vmem:[%s4738_s1 + $0x38] sm:$0xf]  ;;  %v3078_v63 = vld [vmem:[%s4738_s1 + $0x40] sm:$0xf0] }
  0x1b   :  { %264 = vmatpush.bf16.msra.mxu0 %v2673_v28  ;;  %321 = vmatpush.bf16.msra.mxu2 %v2693_v37  ;;  %v2641_v0 = vor.u32 %v3073_v58, %v2638_v59  ;;  %v2624_v1 = vld [vmem:[%s4738_s1] sm:$0xf]  ;;  %v3071_v2 = vld [vmem:[%s4738_s1 + $0x8] sm:$0xf0]  ;;  %v3070_v3 = vld [vmem:[%s4738_s1 + $0x4] sm:$0xf]  ;;  %v2657_v6 = vor.u32 %v3078_v63, %v2656_v62 }
  0x1c   :  { %293 = vmatpush.bf16.msra.mxu1 %v2677_v31  ;;  %v2626_v4 = vld [vmem:[%s4738_s1 + $0xc] sm:$0xf0]  ;;  %v81_v5 = vld [vmem:[%s4737_s0] sm:$0xff]  ;;  %v2625_v7 = vor.u32 %v3071_v2, %v2624_v1  ;;  %v82_v8 = vld [vmem:[%s4737_s0 + $0x8] sm:$0xff] }
  0x1d   :  { %v2644_v9 = vld [vmem:[%s4738_s1 + $0x20] sm:$0xf]  ;;  %v3075_v10 = vld [vmem:[%s4738_s1 + $0x28] sm:$0xf0]  ;;  %v2629_v11 = vor.u32 %v3070_v3, %v2626_v4  ;;  %v89_v12 = vpack.c.bf16 %v82_v8, %v81_v5  ;;  %v2632_v14 = vld [vmem:[%s4738_s1 + $0x8] sm:$0xf] }
  0x1e   :  { %712 = vmatpush.bf16.msra.mxu3 %v3568_v57  ;;  %v2645_v13 = vor.u32 %v3075_v10, %v2644_v9  ;;  %v3072_v15 = vld [vmem:[%s4738_s1 + $0x10] sm:$0xf0]  ;;  %v2842_v17 = vld [vmem:[#allocation5 + $0xf0] sm:$0xf]  ;;  %v3127_v18 = vld [vmem:[#allocation5 + $0x104] sm:$0xf0] }
  0x1f   :  { %265 = vmatpush.bf16.msra.mxu0 %v2661_v38  ;;  %322 = vmatpush.bf16.msra.mxu2 %v2681_v49  ;;  %v2633_v16 = vor.u32 %v3072_v15, %v2632_v14  ;;  %v3613_v19 = vor.u32 %v3127_v18, %v2842_v17  ;;  %v83_v20 = vld [vmem:[%s4737_s0 + $0x10] sm:$0xff]  ;;  %v84_v21 = vld [vmem:[%s4737_s0 + $0x18] sm:$0xff]  ;;  %v2818_v23 = vld [vmem:[#allocation5 + $0xc0] sm:$0xf] }
  0x20   :  { %294 = vmatpush.bf16.msra.mxu1 %v2665_v42  ;;  %v90_v22 = vpack.c.bf16 %v84_v21, %v83_v20  ;;  %v3121_v24 = vld [vmem:[#allocation5 + $0xd4] sm:$0xf0]  ;;  %v3140_v27 = vld [vmem:[#allocation5 + $0x16c] sm:$0xf0]  ;;  %v3137_v28 = vld [vmem:[#allocation5 + $0x15c] sm:$0xf] }
  0x21   :  { %v3622_v25 = vor.u32 %v3121_v24, %v2818_v23  ;;  %v2898_v26 = vld [vmem:[#allocation5 + $0x158] sm:$0xf]  ;;  %v2900_v30 = vld [vmem:[#allocation5 + $0x170] sm:$0xf0]  ;;  %v2794_v32 = vld [vmem:[#allocation5 + $0x90] sm:$0xf] }
  0x22   :  { %713 = vmatpush.bf16.msra.mxu3 %v3613_v19  ;;  %v3624_v29 = vor.u32 %v3140_v27, %v2898_v26  ;;  %v3627_v31 = vor.u32 %v3137_v28, %v2900_v30  ;;  %v3115_v33 = vld [vmem:[#allocation5 + $0xa4] sm:$0xf0]  ;;  %v3134_v36 = vld [vmem:[#allocation5 + $0x13c] sm:$0xf0]  ;;  %v3131_v37 = vld [vmem:[#allocation5 + $0x12c] sm:$0xf] }
  0x23   :  { %266 = vmatpush.bf16.msra.mxu0 %v2649_v51  ;;  %323 = vmatpush.bf16.msra.mxu2 %v2669_v60  ;;  %v3631_v34 = vor.u32 %v3115_v33, %v2794_v32  ;;  %v2874_v35 = vld [vmem:[#allocation5 + $0x128] sm:$0xf]  ;;  %v2876_v39 = vld [vmem:[#allocation5 + $0x140] sm:$0xf0]  ;;  %v2770_v41 = vld [vmem:[#allocation5 + $0x60] sm:$0xf] }
  0x24   :  { %295 = vmatpush.bf16.msra.mxu1 %v2653_v54  ;;  %4866 = vst [vmem:[#allocation11_spill] sm:$0xff] %v3627_v31  ;;  %v3633_v38 = vor.u32 %v3134_v36, %v2874_v35  ;;  %v3636_v40 = vor.u32 %v3131_v37, %v2876_v39  ;;  %v3109_v42 = vld [vmem:[#allocation5 + $0x74] sm:$0xf0]  ;;  %v3128_v45 = vld [vmem:[#allocation5 + $0x10c] sm:$0xf0]  ;;  %v85_v54 = vld [vmem:[%s4737_s0 + $0x20] sm:$0xff] }
  0x25   :  { %v3640_v43 = vor.u32 %v3109_v42, %v2770_v41  ;;  %v2850_v44 = vld [vmem:[#allocation5 + $0xf8] sm:$0xf]  ;;  %v3125_v46 = vld [vmem:[#allocation5 + $0xfc] sm:$0xf]  ;;  %v2852_v48 = vld [vmem:[#allocation5 + $0x110] sm:$0xf0] }
  0x26   :  { %714 = vmatpush.bf16.msra.mxu3 %v3622_v25  ;;  %4867 = vst [vmem:[#allocation12_spill] sm:$0xff] %v3636_v40  ;;  %v3642_v47 = vor.u32 %v3128_v45, %v2850_v44  ;;  %v3645_v49 = vor.u32 %v3125_v46, %v2852_v48  ;;  %v2746_v51 = vld [vmem:[#allocation5 + $0x30] sm:$0xf]  ;;  %v3103_v52 = vld [vmem:[#allocation5 + $0x44] sm:$0xf0] }
  0x27   :  { %267 = vmatpush.bf16.msra.mxu0 %v2637_v61  ;;  %324 = vmatpush.bf16.msra.mxu2 %v2657_v6  ;;  %v3649_v53 = vor.u32 %v3103_v52, %v2746_v51  ;;  %v86_v55 = vld [vmem:[%s4737_s0 + $0x28] sm:$0xff]  ;;  %v3122_v59 = vld [vmem:[#allocation5 + $0xdc] sm:$0xf0]  ;;  %v2828_v61 = vld [vmem:[#allocation5 + $0xe0] sm:$0xf0] }
  0x28   :  { %296 = vmatpush.bf16.msra.mxu1 %v2641_v0  ;;  %4868 = vst [vmem:[#allocation13_spill] sm:$0xff] %v3645_v49  ;;  %v2826_v56 = vld [vmem:[#allocation5 + $0xc8] sm:$0xf]  ;;  %v91_v58 = vpack.c.bf16 %v86_v55, %v85_v54  ;;  %v3119_v60 = vld [vmem:[#allocation5 + $0xcc] sm:$0xf] }
  0x29   :  { %4869 = vst [vmem:[#allocation14_spill] sm:$0xff] %v3649_v53  ;;  %v3658_v62 = vor.u32 %v3122_v59, %v2826_v56  ;;  %v3660_v63 = vor.u32 %v3119_v60, %v2828_v61  ;;  %v2906_v0 = vld [vmem:[#allocation5 + $0x160] sm:$0xf]  ;;  %v3141_v1 = vld [vmem:[#allocation5 + $0x174] sm:$0xf0] }
  0x2a   :  { %715 = vmatpush.bf16.msra.mxu3 %v3631_v34  ;;  %v3662_v2 = vor.u32 %v3141_v1, %v2906_v0  ;;  %v2722_v3 = vld [vmem:[#allocation5] sm:$0xf]  ;;  %v3097_v4 = vld [vmem:[#allocation5 + $0x14] sm:$0xf0]  ;;  %v3136_v6 = vld [vmem:[#allocation5 + $0x154] sm:$0xf] }
  0x2b   :  { %268 = vmatpush.bf16.msra.mxu0 %v2625_v7  ;;  %325 = vmatpush.bf16.msra.mxu2 %v2645_v13  ;;  %4870 = vst [vmem:[#allocation15_spill] sm:$0xff] %v3660_v63  ;;  %v3665_v5 = vor.u32 %v3097_v4, %v2722_v3  ;;  %v2892_v7 = vld [vmem:[#allocation5 + $0x168] sm:$0xf0]  ;;  %v2802_v8 = vld [vmem:[#allocation5 + $0x98] sm:$0xf]  ;;  %v87_v0 = vld [vmem:[%s4737_s0 + $0x30] sm:$0xff] }
  0x2c   :  { %297 = vmatpush.bf16.msra.mxu1 %v2629_v11  ;;  %4871 = vst [vmem:[#allocation16_spill] sm:$0xff] %v3662_v2  ;;  %v3669_v9 = vor.u32 %v3136_v6, %v2892_v7  ;;  %v3116_v10 = vld [vmem:[#allocation5 + $0xac] sm:$0xf0]  ;;  %v3113_v11 = vld [vmem:[#allocation5 + $0x9c] sm:$0xf] }
  0x2d   :  { %4872 = vst [vmem:[#allocation17_spill] sm:$0xff] %v3665_v5  ;;  %v3672_v13 = vor.u32 %v3116_v10, %v2802_v8  ;;  %v2882_v15 = vld [vmem:[#allocation5 + $0x130] sm:$0xf]  ;;  %v3679_v17 = vld [vmem:[%s4739_s2] sm:$0x7]  ;;  %v88_v1 = vld [vmem:[%s4737_s0 + $0x38] sm:$0xff] }
  0x2e   :  { %269 = vmatmul.bf16.vlgmr.msra.gmra.mxu0 %v89_v12  ;;  %716 = vmatpush.bf16.msra.mxu3 %v3640_v43  ;;  %v3130_v20 = vld [vmem:[#allocation5 + $0x124] sm:$0xf]  ;;  %v2868_v21 = vld [vmem:[#allocation5 + $0x138] sm:$0xf0]  ;;  %v3110_v24 = vld [vmem:[#allocation5 + $0x7c] sm:$0xf0]  ;;  %v92_v7 = vpack.c.bf16 %v88_v1, %v87_v0 }
  0x2f   :  { %298 = vmatmul.bf16.vlgmr.msra.gmra.mxu1 %v89_v12  ;;  %326 = vmatpush.bf16.msra.mxu2 %v2633_v16  ;;  %v3135_v16 = vld [vmem:[#allocation5 + $0x144] sm:$0xf0]  ;;  %v3687_v23 = vor.u32 %v3130_v20, %v2868_v21  ;;  %v3107_v26 = vld [vmem:[#allocation5 + $0x6c] sm:$0xf]  ;;  %v2780_v27 = vld [vmem:[#allocation5 + $0x80] sm:$0xf0] }
  0x30   :  { %737 = vmatpush.bf16.msrb.mxu0 %v3624_v29  ;;  %750 = vmatpush.bf16.msrb.mxu1 %v3627_v31  ;;  %v3682_v18 = vor.u32 %v3135_v16, %v2882_v15  ;;  %v3691_v30 = vor.u32 %v3107_v26, %v2780_v27  ;;  %v2858_v32 = vld [vmem:[#allocation5 + $0x100] sm:$0xf]  ;;  %v3129_v33 = vld [vmem:[#allocation5 + $0x114] sm:$0xf0]  ;;  %v3702_v37 = vperm.slane %v3679_v17, 0  ;;  %v3705_v39 = vperm.slane %v3679_v17, 1 }
  0x31   :  { %v3696_v35 = vld [vmem:[%s4741_s4] sm:$0x3f]  ;;  %v3699_v36 = vor.u32 %v3129_v33, %v2858_v32  ;;  %v3124_v41 = vld [vmem:[#allocation5 + $0xf4] sm:$0xf]  ;;  %v2844_v42 = vld [vmem:[#allocation5 + $0x108] sm:$0xf0] }
  0x32   :  { %327 = vmatmul.bf16.vlgmr.msra.gmra.mxu2 %v89_v12  ;;  %717 = vmatpush.bf16.msra.mxu3 %v3649_v53  ;;  %v2804_v12 = vld [vmem:[#allocation5 + $0xb0] sm:$0xf0]  ;;  %4874 = vst [vmem:[#allocation19_spill] sm:$0xff] %v3682_v18  ;;  %v3710_v44 = vor.u32 %v3124_v41, %v2844_v42  ;;  %v2754_v45 = vld [vmem:[#allocation5 + $0x38] sm:$0xf]  ;;  %v72_v56 = vperm.slane %v3696_v35, 0 }
  0x33   :  { %763 = vmatpush.bf16.msrb.mxu2 %v3662_v2  ;;  %v3674_v14 = vor.u32 %v3113_v11, %v2804_v12  ;;  %4875 = vst [vmem:[#allocation20_spill] sm:$0xff] %v3691_v30  ;;  %v3104_v46 = vld [vmem:[#allocation5 + $0x4c] sm:$0xf0]  ;;  %v3101_v48 = vld [vmem:[#allocation5 + $0x3c] sm:$0xf]  ;;  %v73_v61 = vperm.slane %v3696_v35, 1 }
  0x34   :  { %738 = vmatpush.bf16.msrb.mxu0 %v3633_v38  ;;  %751 = vmatpush.bf16.msrb.mxu1 %v3636_v40  ;;  %4876 = vst [vmem:[#allocation21_spill] sm:$0xff] %v3699_v36  ;;  %v3712_v51 = vor.u32 %v3104_v46, %v2754_v45  ;;  %v2756_v52 = vld [vmem:[#allocation5 + $0x50] sm:$0xf0]  ;;  %v2834_v54 = vld [vmem:[#allocation5 + $0xd0] sm:$0xf] }
  0x35   :  { %4873 = vst [vmem:[#allocation18_spill] sm:$0xff] %v3674_v14  ;;  %v3123_v55 = vld [vmem:[#allocation5 + $0xe4] sm:$0xf0]  ;;  %v3118_v3 = vld [vmem:[#allocation5 + $0xc4] sm:$0xf] }
  0x36   :  { %718 = vmatpush.bf16.msra.mxu3 %v3665_v5  ;;  %4877 = vst [vmem:[#allocation22_spill] sm:$0xff] %v3702_v37  ;;  %v3718_v59 = vor.u32 %v3123_v55, %v2834_v54  ;;  %v2820_v8 = vld [vmem:[#allocation5 + $0xd8] sm:$0xf0]  ;;  %v2730_v10 = vld [vmem:[#allocation5 + $0x8] sm:$0xf] }
  0x37   :  { %764 = vmatpush.bf16.msrb.mxu2 %v3682_v18  ;;  %4878 = vst [vmem:[#allocation23_spill] sm:$0xff] %v3705_v39  ;;  %v3098_v11 = vld [vmem:[#allocation5 + $0x1c] sm:$0xf0]  ;;  %v3732_v15 = vor.u32 %v3118_v3, %v2820_v8  ;;  %v3095_v20 = vld [vmem:[#allocation5 + $0xc] sm:$0xf] }
  0x38   :  { %739 = vmatpush.bf16.msrb.mxu0 %v3642_v47  ;;  %752 = vmatpush.bf16.msrb.mxu1 %v3645_v49  ;;  %4879 = vst [vmem:[#allocation24_spill] sm:$0xff] %v3712_v51  ;;  %v3734_v16 = vor.u32 %v3098_v11, %v2730_v10  ;;  %v2732_v21 = vld [vmem:[#allocation5 + $0x20] sm:$0xf0]  ;;  %v3117_v27 = vld [vmem:[#allocation5 + $0xb4] sm:$0xf0] }
  0x39   :  { %4881 = vst [vmem:[#allocation26_spill] sm:$0xff] %v3718_v59  ;;  %v3736_v26 = vor.u32 %v3095_v20, %v2732_v21  ;;  %v2998_v32 = vld [vmem:[#allocation7 + $0xa8] sm:$0xf]  ;;  %v3164_v33 = vld [vmem:[#allocation7 + $0xb0] sm:$0xf0] }
  0x3a   :  { %724 = vmatpush.bf16.msrb.mxu3 %v3669_v9  ;;  %4882 = vst [vmem:[#allocation27_spill] sm:$0xff] %v3734_v16  ;;  %v3741_v45 = vor.u32 %v3164_v33, %v2998_v32  ;;  %v3163_v46 = vld [vmem:[#allocation7 + $0xac] sm:$0xf]  ;;  %v3111_v1 = vld [vmem:[#allocation5 + $0x84] sm:$0xf0] }
  0x3b   :  { %765 = vmatpush.bf16.msrb.mxu2 %v3699_v36  ;;  %4883 = vst [vmem:[#allocation28_spill] sm:$0xff] %v3736_v26  ;;  %v2986_v3 = vld [vmem:[#allocation7 + $0x90] sm:$0xf]  ;;  %v2988_v8 = vld [vmem:[#allocation7 + $0x9c] sm:$0xf0] }
  0x3c   :  { %740 = vmatpush.bf16.msrb.mxu0 %v3658_v62  ;;  %753 = vmatpush.bf16.msrb.mxu1 %v3660_v63  ;;  %4885 = vst [vmem:[#allocation30_spill] sm:$0xff] %v3741_v45  ;;  %v2772_v20 = vld [vmem:[#allocation5 + $0x78] sm:$0xf0]  ;;  %v3158_v33 = vld [vmem:[#allocation7 + $0x80] sm:$0xf0] }
  0x3d   :  { %v3145_v18 = vld [vmem:[#allocation7 + $0x1c] sm:$0xf]  ;;  %v2928_v2 = vld [vmem:[#allocation7 + $0x24] sm:$0xf0]  ;;  %v3142_v53 = vld [vmem:[#allocation7 + $0x4] sm:$0xf] }
  0x3e   :  { %274 = vmatmul.bf16.gmra.mxu0 %v90_v22  ;;  %725 = vmatpush.bf16.msrb.mxu3 %v3687_v23 }
  0x3f   :  { %303 = vmatmul.bf16.gmra.mxu1 %v90_v22  ;;  %766 = vmatpush.bf16.msrb.mxu2 %v3718_v59  ;;  %v3813_v59 = vperm.slane %v3679_v17, 2 }
  0x40   :  { %741 = vmatpush.bf16.msrb.mxu0 %v3672_v13  ;;  %754 = vmatpush.bf16.msrb.mxu1 %v3674_v14 }
  0x41   :  { %4901 = vst [vmem:[#allocation46_spill] sm:$0xff] %v3813_v59 }
  0x42   :  { %332 = vmatmul.bf16.gmra.mxu2 %v90_v22  ;;  %v2778_v22 = vld [vmem:[#allocation5 + $0x68] sm:$0xf]  ;;  %726 = vmatpush.bf16.msrb.mxu3 %v3710_v44 }
  0x43   :  { %v3689_v28 = vor.u32 %v3110_v24, %v2778_v22  ;;  %v2810_v22 = vld [vmem:[#allocation5 + $0xa0] sm:$0xf] }
  0x44   :  { %755 = vmatpush.bf16.msrb.mxu1 %v3691_v30  ;;  %v3739_v42 = vor.u32 %v3117_v27, %v2810_v22  ;;  %v2762_v22 = vld [vmem:[#allocation5 + $0x40] sm:$0xf]  ;;  %v2974_v27 = vld [vmem:[#allocation7 + $0x78] sm:$0xf] }
  0x45   :  { %742 = vmatpush.bf16.msrb.mxu0 %v3689_v28 }
  0x46   :  { %727 = vmatpush.bf16.msrb.mxu3 %v3732_v15  ;;  %4884 = vst [vmem:[#allocation29_spill] sm:$0xff] %v3739_v42  ;;  %767 = vmatpush.bf16.msrb.mxu2 %v3739_v42 }
  0x49   :  { %743 = vmatpush.bf16.msrb.mxu0 %v3712_v51 }
  0x4d   :  { %744 = vmatpush.bf16.msrb.mxu0 %v3734_v16 }
  0x4e   :  { %279 = vmatmul.bf16.gmra.mxu0 %v91_v58 }
  0x4f   :  { %308 = vmatmul.bf16.gmra.mxu1 %v91_v58 }
  0x51   :  { %950 = vmatpush.bf16.msra.mxu0 %v3741_v45 }
  0x52   :  { %337 = vmatmul.bf16.gmra.mxu2 %v91_v58  ;;  %v3716_v58 = vor.u32 %v3101_v48, %v2756_v52  ;;  %v3000_v48 = vld [vmem:[#allocation7 + $0xb4] sm:$0xf0]  ;;  %v3112_v52 = vld [vmem:[#allocation5 + $0x94] sm:$0xf] }
  0x53   :  { %v3745_v55 = vor.u32 %v3163_v46, %v3000_v48  ;;  %v2976_v46 = vld [vmem:[#allocation7 + $0x84] sm:$0xf0]  ;;  %v3766_v48 = vor.u32 %v3158_v33, %v2974_v27  ;;  %v3154_v27 = vld [vmem:[#allocation7 + $0x64] sm:$0xf]  ;;  %v2964_v33 = vld [vmem:[#allocation7 + $0x6c] sm:$0xf0] }
  0x54   :  { %4880 = vst [vmem:[#allocation25_spill] sm:$0xff] %v3716_v58  ;;  %756 = vmatpush.bf16.msrb.mxu1 %v3716_v58 }
  0x55   :  { %4886 = vst [vmem:[#allocation31_spill] sm:$0xff] %v3745_v55 }
  0x56   :  { %4891 = vst [vmem:[#allocation36_spill] sm:$0xff] %v3766_v48 }
  0x58   :  { %757 = vmatpush.bf16.msrb.mxu1 %v3736_v26 }
  0x5c   :  { %963 = vmatpush.bf16.msra.mxu1 %v3745_v55 }
  0x5e   :  { %284 = vmatmul.bf16.gmra.mxu0 %v92_v7 }
  0x5f   :  { %313 = vmatmul.bf16.gmra.mxu1 %v92_v7 }
  0x62   :  { %342 = vmatmul.bf16.gmra.mxu2 %v92_v7  ;;  %v3160_v7 = vld [vmem:[#allocation7 + $0x94] sm:$0xf] }
  0x63   :  { %v3757_v11 = vor.u32 %v3160_v7, %v2988_v8 }
  0x65   :  { %4889 = vst [vmem:[#allocation34_spill] sm:$0xff] %v3757_v11  ;;  %964 = vmatpush.bf16.msra.mxu1 %v3757_v11 }
  0xab   :  { %v270_v60 = vpop.f32.mrf.mxu0 }
  0xac   :  { %v271_v4 = vadd.f32 %v270_v60, %v3702_v37  ;;  %v299_v6 = vpop.f32.mrf.mxu1  ;;  %v2786_v60 = vld [vmem:[#allocation5 + $0x70] sm:$0xf]  ;;  %v3149_v37 = vld [vmem:[#allocation7 + $0x38] sm:$0xf0] }
  0xad   :  { %v300_v12 = vadd.f32 %v299_v6, %v3705_v39  ;;  %v3161_v6 = vld [vmem:[#allocation7 + $0x98] sm:$0xf0]  ;;  %v2938_v39 = vld [vmem:[#allocation7 + $0x30] sm:$0xf] }
  0xae   :  { %v375_v24 = vadd.f32 %v271_v4, %v72_v56  ;;  %v2796_v56 = vld [vmem:[#allocation5 + $0xa8] sm:$0xf0]  ;;  %v3752_v4 = vor.u32 %v3111_v1, %v2786_v60  ;;  %v3755_v10 = vor.u32 %v3161_v6, %v2986_v3  ;;  %v2738_v1 = vld [vmem:[#allocation5 + $0x10] sm:$0xf]  ;;  %v3099_v3 = vld [vmem:[#allocation5 + $0x24] sm:$0xf0] }
  0xaf   :  { %v395_v41 = vadd.f32 %v300_v12, %v73_v61  ;;  %v3749_v0 = vor.u32 %v3112_v52, %v2796_v56  ;;  %v3106_v12 = vld [vmem:[#allocation5 + $0x64] sm:$0xf]  ;;  %v2748_v56 = vld [vmem:[#allocation5 + $0x48] sm:$0xf0]  ;;  %v2962_v6 = vld [vmem:[#allocation7 + $0x60] sm:$0xf] }
  0xb0   :  { %v2718_v54 = vmul.f32 -1.442695, %v375_v24  ;;  %4887 = vst [vmem:[#allocation32_spill] sm:$0xff] %v3752_v4  ;;  %v3759_v21 = vor.u32 %v3106_v12, %v2772_v20  ;;  %v3105_v24 = vld [vmem:[#allocation5 + $0x54] sm:$0xf0]  ;;  %768 = vmatpush.bf16.msrb.mxu2 %v3752_v4  ;;  %951 = vmatpush.bf16.msra.mxu0 %v3755_v10  ;;  %v3777_v12 = vor.u32 %v3099_v3, %v2738_v1 }
  0xb1   :  { %v2719_v61 = vmul.f32 -1.442695, %v395_v41  ;;  %728 = vmatpush.bf16.msrb.mxu3 %v3749_v0  ;;  %4888 = vst [vmem:[#allocation33_spill] sm:$0xff] %v3755_v10  ;;  %v3763_v32 = vor.u32 %v3105_v24, %v2762_v22  ;;  %v3157_v41 = vld [vmem:[#allocation7 + $0x7c] sm:$0xf] }
  0xb2   :  { %3182 = vpow2.f32 %v2718_v54  ;;  %v3768_v52 = vor.u32 %v3157_v41, %v2976_v46  ;;  %v3100_v54 = vld [vmem:[#allocation5 + $0x34] sm:$0xf]  ;;  %4893 = vst [vmem:[#allocation38_spill] sm:$0xff] %v3777_v12  ;;  %v3155_v20 = vld [vmem:[#allocation7 + $0x68] sm:$0xf0] }
  0xb3   :  { %3184 = vpow2.f32 %v2719_v61  ;;  %4890 = vst [vmem:[#allocation35_spill] sm:$0xff] %v3763_v32  ;;  %v3771_v61 = vor.u32 %v3100_v54, %v2748_v56  ;;  %v3782_v24 = vor.u32 %v3155_v20, %v2962_v6  ;;  %v3094_v41 = vld [vmem:[#allocation5 + $0x4] sm:$0xf]  ;;  %v2724_v46 = vld [vmem:[#allocation5 + $0x18] sm:$0xf0]  ;;  %v3789_v54 = vor.u32 %v3154_v27, %v2964_v33 }
  0xb4   :  { %4892 = vst [vmem:[#allocation37_spill] sm:$0xff] %v3768_v52  ;;  %769 = vmatpush.bf16.msrb.mxu2 %v3763_v32  ;;  %952 = vmatpush.bf16.msra.mxu0 %v3766_v48  ;;  %v3791_v56 = vor.u32 %v3094_v41, %v2724_v46  ;;  %v3152_v1 = vld [vmem:[#allocation7 + $0x50] sm:$0xf0]  ;;  %v3151_v6 = vld [vmem:[#allocation7 + $0x4c] sm:$0xf]  ;;  %v3800_v27 = vor.u32 %v3149_v37, %v2938_v39 }
  0xb5   :  { %729 = vmatpush.bf16.msrb.mxu3 %v3759_v21  ;;  %965 = vmatpush.bf16.msra.mxu1 %v3768_v52  ;;  %4894 = vst [vmem:[#allocation39_spill] sm:$0xff] %v3782_v24  ;;  %v3148_v33 = vld [vmem:[#allocation7 + $0x34] sm:$0xf]  ;;  %v2940_v41 = vld [vmem:[#allocation7 + $0x3c] sm:$0xf0] }
  0xb6   :  { %4895 = vst [vmem:[#allocation40_spill] sm:$0xff] %v3789_v54  ;;  %v2926_v37 = vld [vmem:[#allocation7 + $0x18] sm:$0xf]  ;;  %v3146_v39 = vld [vmem:[#allocation7 + $0x20] sm:$0xf0] }
  0xb7   :  { %4896 = vst [vmem:[#allocation41_spill] sm:$0xff] %v3791_v56  ;;  %v3816_v36 = vor.u32 %v3146_v39, %v2926_v37  ;;  %v3827_v37 = vor.u32 %v3145_v18, %v2928_v2 }
  0xb8   :  { %v3183_v60 = vpop.eup %3182  ;;  %770 = vmatpush.bf16.msrb.mxu2 %v3777_v12  ;;  %953 = vmatpush.bf16.msra.mxu0 %v3782_v24  ;;  %4899 = vst [vmem:[#allocation44_spill] sm:$0xff] %v3800_v27 }
  0xb9   :  { %v3185_v7 = vpop.eup %3184  ;;  %v3773_v8 = vadd.f32 1.0, %v3183_v60  ;;  %730 = vmatpush.bf16.msrb.mxu3 %v3771_v61  ;;  %v2950_v60 = vld [vmem:[#allocation7 + $0x48] sm:$0xf]  ;;  %966 = vmatpush.bf16.msra.mxu1 %v3789_v54  ;;  %4902 = vst [vmem:[#allocation47_spill] sm:$0xff] %v3816_v36  ;;  %v2994_v54 = vld [vmem:[#allocation7 + $0x98] sm:$0xf] }
  0xba   :  { %v3779_v22 = vadd.f32 1.0, %v3185_v7  ;;  %v3795_v3 = vor.u32 %v3152_v1, %v2950_v60  ;;  %v2952_v7 = vld [vmem:[#allocation7 + $0x54] sm:$0xf0]  ;;  %4905 = vst [vmem:[#allocation48_spill] sm:$0xff] %v3827_v37 }
  0xbb   :  { %3186 = vrcp.f32 %v3773_v8  ;;  %v3797_v20 = vor.u32 %v3151_v6, %v2952_v7  ;;  %v391_v1 = vand.u32 2147483648, %v3773_v8  ;;  %v3809_v6 = vor.u32 %v3148_v33, %v2940_v41 }
  0xbc   :  { %3188 = vrcp.f32 %v3779_v22  ;;  %4897 = vst [vmem:[#allocation42_spill] sm:$0xff] %v3795_v3  ;;  %954 = vmatpush.bf16.msra.mxu0 %v3795_v3  ;;  %v74_v7 = vperm.slane %v3696_v35, 2  ;;  %vm385_vm1 = vweird.f32 %v3773_v8  ;;  %v389_v33 = vand.u32 2147483647, %v3773_v8  ;;  %v3006_v35 = vld [vmem:[#allocation7 + $0xb0] sm:$0xf] }
  0xbd   :  { %731 = vmatpush.bf16.msrb.mxu3 %v3791_v56  ;;  %4898 = vst [vmem:[#allocation43_spill] sm:$0xff] %v3797_v20  ;;  %967 = vmatpush.bf16.msra.mxu1 %v3797_v20  ;;  %v392_v17 = vor.u32 1.1754944e-38, %v391_v1  ;;  %v2914_v20 = vld [vmem:[#allocation7] sm:$0xf]  ;;  %v2916_v1 = vld [vmem:[#allocation7 + $0xc] sm:$0xf0]  ;;  %vm405_vm3 = vweird.f32 %v3779_v22 }
  0xbe   :  { %4900 = vst [vmem:[#allocation45_spill] sm:$0xff] %v3809_v6  ;;  %vm390_vm4 = vcmp.eq.f32.partialorder %v389_v33, 8.507059e+37  ;;  %v3156_v33 = vld [vmem:[#allocation7 + $0x70] sm:$0xf0] }
  0xc0   :  { %955 = vmatpush.bf16.msra.mxu0 %v3800_v27 }
  0xc1   :  { %v3187_v12 = vpop.eup %3186  ;;  %968 = vmatpush.bf16.msra.mxu1 %v3809_v6  ;;  %v3162_v6 = vld [vmem:[#allocation7 + $0xa0] sm:$0xf0] }
  0xc2   :  { %v3802_v46 = vpop.eup %3188  ;;  %v381_v32 = vmul.f32 %v3187_v12, %v3773_v8  ;;  %vm386_vm0 = vweird.f32 %v3187_v12  ;;  %v3143_v8 = vld [vmem:[#allocation7 + $0x8] sm:$0xf0] }
  0xc3   :  { %v401_v60 = vmul.f32 %v3802_v46, %v3779_v22  ;;  %vm3822_vm2 = vmor %vm385_vm1, %vm386_vm0  ;;  %vm406_vm5 = vweird.f32 %v3802_v46 }
  0xc4   :  { %v382_v4 = vsub.f32 1.0, %v381_v32  ;;  %v3165_v32 = vld [vmem:[#allocation7 + $0xb8] sm:$0xf0]  ;;  %956 = vmatpush.bf16.msra.mxu0 %v3816_v36  ;;  %vm407_vm6 = vmor %vm405_vm3, %vm406_vm5 }
  0xc5   :  { %v402_v42 = vsub.f32 1.0, %v401_v60  ;;  %v3829_v39 = vor.u32 %v3165_v32, %v3006_v35  ;;  %969 = vmatpush.bf16.msra.mxu1 %v3827_v37  ;;  %v411_v32 = vand.u32 2147483648, %v3779_v22 }
  0xc6   :  { %v383_v5 = vmul.f32 %v3187_v12, %v382_v4  ;;  %v328_v4 = vpop.f32.mrf.mxu2 }
  0xc7   :  { %v403_v41 = vmul.f32 %v3802_v46, %v402_v42  ;;  %4906 = vst [vmem:[#allocation49_spill] sm:$0xff] %v3829_v39  ;;  %v329_v3 = vadd.f32 %v328_v4, %v3813_v59  ;;  %976 = vmatpush.bf16.msra.mxu2 %v3829_v39  ;;  %v3834_v42 = vor.u32 %v3143_v8, %v2914_v20  ;;  %v2982_v8 = vld [vmem:[#allocation7 + $0x80] sm:$0xf]  ;;  %v409_v39 = vand.u32 2147483647, %v3779_v22 }
  0xc8   :  { %v384_v27 = vadd.f32 %v3187_v12, %v383_v5  ;;  %v3839_v5 = vor.u32 %v3162_v6, %v2994_v54  ;;  %v3844_v20 = vor.u32 %v3142_v53, %v2916_v1  ;;  %v412_v6 = vor.u32 1.1754944e-38, %v411_v32  ;;  %v3153_v22 = vld [vmem:[#allocation7 + $0x58] sm:$0xf0] }
  0xc9   :  { %4907 = vst [vmem:[#allocation50_spill] sm:$0xff] %v3834_v42  ;;  %v404_v35 = vadd.f32 %v3802_v46, %v403_v41  ;;  %957 = vmatpush.bf16.msra.mxu0 %v3834_v42  ;;  %vm410_vm7 = vcmp.eq.f32.partialorder %v409_v39, 8.507059e+37  ;;  %v2908_v32 = vld [vmem:[#allocation5 + $0x178] sm:$0xf0] }
  0xca   :  { %v388_v2 = vsel %vm3822_vm2, %v3187_v12, %v384_v27  ;;  %4908 = vst [vmem:[#allocation51_spill] sm:$0xff] %v3844_v20  ;;  %v3159_v12 = vld [vmem:[#allocation7 + $0x88] sm:$0xf0]  ;;  %970 = vmatpush.bf16.msra.mxu1 %v3844_v20 }
  0xcb   :  { %v393_v18 = vsel %vm390_vm4, %v392_v17, %v388_v2  ;;  %977 = vmatpush.bf16.msra.mxu2 %v3839_v5  ;;  %v3852_v27 = vor.u32 %v3159_v12, %v2982_v8  ;;  %v408_v53 = vsel %vm407_vm6, %v3802_v46, %v404_v35  ;;  %v2958_v17 = vld [vmem:[#allocation7 + $0x50] sm:$0xf]  ;;  %v3138_v35 = vld [vmem:[#allocation5 + $0x164] sm:$0xf] }
  0xcc   :  { %v415_v4 = vmul.f32 %v393_v18, %v74_v7  ;;  %v2970_v7 = vld [vmem:[#allocation7 + $0x68] sm:$0xf]  ;;  %v413_v60 = vsel %vm410_vm7, %v412_v6, %v408_v53  ;;  %v3150_v8 = vld [vmem:[#allocation7 + $0x40] sm:$0xf0]  ;;  %v3132_v53 = vld [vmem:[#allocation5 + $0x134] sm:$0xf] }
  0xcd   :  { %v3857_v41 = vor.u32 %v3156_v33, %v2970_v7  ;;  %v418_v1 = vsub.f32 1.0, %v413_v60  ;;  %v420_v18 = vmul.f32 0.0, %v413_v60  ;;  %v2884_v7 = vld [vmem:[#allocation5 + $0x148] sm:$0xf0]  ;;  %v2934_v33 = vld [vmem:[#allocation7 + $0x20] sm:$0xf] }
  0xce   :  { %v416_v54 = vadd.f32 %v415_v4, %v329_v3  ;;  %v3860_v3 = vor.u32 %v3153_v22, %v2958_v17  ;;  %v2946_v4 = vld [vmem:[#allocation7 + $0x38] sm:$0xf]  ;;  %v3147_v60 = vld [vmem:[#allocation7 + $0x28] sm:$0xf0]  ;;  %v3878_v17 = vor.u32 %v3132_v53, %v2884_v7  ;;  %v3126_v22 = vld [vmem:[#allocation5 + $0x104] sm:$0xf] }
  0xcf   :  { %978 = vmatpush.bf16.msra.mxu2 %v3852_v27  ;;  %v3871_v6 = vor.u32 %v3150_v8, %v2946_v4  ;;  %v3120_v4 = vld [vmem:[#allocation5 + $0xd4] sm:$0xf]  ;;  %v2836_v8 = vld [vmem:[#allocation5 + $0xe8] sm:$0xf0]  ;;  %v3114_v7 = vld [vmem:[#allocation5 + $0xa4] sm:$0xf] }
  0xd0   :  { %3190 = vtanh.f32 %v416_v54  ;;  %v3869_v54 = vor.u32 %v3138_v35, %v2908_v32  ;;  %4910 = vst [vmem:[#allocation53_spill] sm:$0xff] %v3878_v17  ;;  %v3894_v53 = vor.u32 %v3120_v4, %v2836_v8  ;;  %v3102_v4 = vld [vmem:[#allocation5 + $0x44] sm:$0xf]  ;;  %v2764_v8 = vld [vmem:[#allocation5 + $0x58] sm:$0xf0] }
  0xd2   :  { %4909 = vst [vmem:[#allocation52_spill] sm:$0xff] %v3869_v54 }
  0xd3   :  { %979 = vmatpush.bf16.msra.mxu2 %v3857_v41  ;;  %4913 = vst [vmem:[#allocation56_spill] sm:$0xff] %v3894_v53 }
  0xd6   :  { %v3191_v46 = vpop.eup %3190 }
  0xd7   :  { %v419_v2 = vmul.f32 %v3191_v46, %v418_v1  ;;  %980 = vmatpush.bf16.msra.mxu2 %v3860_v3  ;;  %v3881_v1 = vor.u32 %v3147_v60, %v2934_v33  ;;  %v2860_v46 = vld [vmem:[#allocation5 + $0x118] sm:$0xf0] }
  0xd8   :  { %v3886_v35 = vor.u32 %v3126_v22, %v2860_v46  ;;  %v2812_v33 = vld [vmem:[#allocation5 + $0xb8] sm:$0xf0]  ;;  %v3108_v22 = vld [vmem:[#allocation5 + $0x74] sm:$0xf]  ;;  %v2788_v46 = vld [vmem:[#allocation5 + $0x88] sm:$0xf0] }
  0xd9   :  { %v3862_v39 = vadd.f32 %v420_v18, %v419_v2  ;;  %v2922_v2 = vld [vmem:[#allocation7 + $0x8] sm:$0xf]  ;;  %v3144_v18 = vld [vmem:[#allocation7 + $0x10] sm:$0xf0]  ;;  %v3901_v60 = vor.u32 %v3114_v7, %v2812_v33  ;;  %v3913_v7 = vor.u32 %v3102_v4, %v2764_v8  ;;  %v4920_v4 = vld [vmem:[#allocation14_spill] sm:$0xff] }
  0xda   :  { %4911 = vst [vmem:[#allocation54_spill] sm:$0xff] %v3886_v35  ;;  %v3889_v32 = vor.u32 %v3144_v18, %v2922_v2  ;;  %v3400_v2 = vmov 0.0|0.0   ;;  %v3907_v18 = vor.u32 %v3108_v22, %v2788_v46  ;;  %v3096_v33 = vld [vmem:[#allocation5 + $0x14] sm:$0xf]  ;;  %v4919_v46 = vld [vmem:[#allocation42_spill] sm:$0xff]  ;;  %v4921_v8 = vld [vmem:[#allocation43_spill] sm:$0xff] }
  0xdb   :  { %v3867_v12 = vpack.c.bf16 %v3862_v39, %v3862_v39  ;;  %981 = vmatpush.bf16.msra.mxu2 %v3871_v6  ;;  %4914 = vst [vmem:[#allocation57_spill] sm:$0xff] %v3901_v60 }
  0xdc   :  { %4912 = vst [vmem:[#allocation55_spill] sm:$0xff] %v3889_v32 }
  0xdd   :  { %719 = vmatmul.bf16.vlgmr.msra.gmra.mxu3 %v3867_v12  ;;  %745 = vmatmul.bf16.vlgmr.msrb.gmra.mxu0 %v3867_v12  ;;  %4915 = vst [vmem:[#allocation58_spill] sm:$0xff] %v3907_v18 }
  0xde   :  { %758 = vmatmul.bf16.vlgmr.msrb.gmra.mxu1 %v3867_v12  ;;  %771 = vmatmul.bf16.vlgmr.msrb.gmra.mxu2 %v3867_v12  ;;  %4916 = vst [vmem:[#allocation59_spill] sm:$0xff] %v3913_v7 }
  0xdf   :  { %776 = vmatpush.bf16.msra.mxu3 %v3869_v54  ;;  %1097 = vmatpush.bf16.msrb.mxu0 %v3669_v9 }
  0xe0   :  { %1110 = vmatpush.bf16.msrb.mxu1 %v3624_v29  ;;  %982 = vmatpush.bf16.msra.mxu2 %v3881_v1 }
  0xe3   :  { %777 = vmatpush.bf16.msra.mxu3 %v3878_v17  ;;  %1098 = vmatpush.bf16.msrb.mxu0 %v3687_v23 }
  0xe4   :  { %1111 = vmatpush.bf16.msrb.mxu1 %v3633_v38  ;;  %983 = vmatpush.bf16.msra.mxu2 %v3889_v32 }
  0xe7   :  { %778 = vmatpush.bf16.msra.mxu3 %v3886_v35  ;;  %1099 = vmatpush.bf16.msrb.mxu0 %v3710_v44 }
  0xe8   :  { %1123 = vmatpush.bf16.msrb.mxu2 %v3627_v31  ;;  %1112 = vmatpush.bf16.msrb.mxu1 %v3642_v47 }
  0xeb   :  { %779 = vmatpush.bf16.msra.mxu3 %v3894_v53  ;;  %1100 = vmatpush.bf16.msrb.mxu0 %v3732_v15 }
  0xec   :  { %1124 = vmatpush.bf16.msrb.mxu2 %v3636_v40  ;;  %1113 = vmatpush.bf16.msrb.mxu1 %v3658_v62 }
  0xed   :  { %732 = vmatmul.bf16.vlgmr.msrb.gmra.mxu3 %v3867_v12  ;;  %958 = vmatmul.bf16.vlgmr.msra.gmra.mxu0 %v3400_v2 }
  0xee   :  { %971 = vmatmul.bf16.vlgmr.msra.gmra.mxu1 %v3400_v2  ;;  %984 = vmatmul.bf16.vlgmr.msra.gmra.mxu2 %v3400_v2  ;;  %v2740_v2 = vld [vmem:[#allocation5 + $0x28] sm:$0xf0] }
  0xef   :  { %780 = vmatpush.bf16.msra.mxu3 %v3901_v60  ;;  %1101 = vmatpush.bf16.msrb.mxu0 %v3749_v0  ;;  %v3919_v22 = vor.u32 %v3096_v33, %v2740_v2  ;;  %v4922_v33 = vld [vmem:[#allocation44_spill] sm:$0xff]  ;;  %v272_v2 = vpop.f32.mrf.mxu0 }
  0xf0   :  { %1125 = vmatpush.bf16.msrb.mxu2 %v3645_v49  ;;  %1114 = vmatpush.bf16.msrb.mxu1 %v3672_v13 }
  0xf1   :  { %4917 = vst [vmem:[#allocation60_spill] sm:$0xff] %v3919_v22 }
  0xf3   :  { %781 = vmatpush.bf16.msra.mxu3 %v3907_v18  ;;  %1102 = vmatpush.bf16.msrb.mxu0 %v3759_v21 }
  0xf4   :  { %1126 = vmatpush.bf16.msrb.mxu2 %v3660_v63  ;;  %1115 = vmatpush.bf16.msrb.mxu1 %v3689_v28 }
  0xf7   :  { %782 = vmatpush.bf16.msra.mxu3 %v3913_v7  ;;  %1103 = vmatpush.bf16.msrb.mxu0 %v3771_v61 }
  0xf8   :  { %1127 = vmatpush.bf16.msrb.mxu2 %v3674_v14  ;;  %1116 = vmatpush.bf16.msrb.mxu1 %v3712_v51 }
  0xfb   :  { %783 = vmatpush.bf16.msra.mxu3 %v3919_v22  ;;  %1104 = vmatpush.bf16.msrb.mxu0 %v3791_v56 }
  0xfc   :  { %1128 = vmatpush.bf16.msrb.mxu2 %v3691_v30  ;;  %1117 = vmatpush.bf16.msrb.mxu1 %v3734_v16  ;;  %v4934_v30 = vld [vmem:[#allocation29_spill] sm:$0xff] }
  0xfe   :  { %784 = vmatmul.bf16.vlgmr.msra.gmra.mxu3 %v3867_v12  ;;  %v4918_v12 = vld [vmem:[#allocation40_spill] sm:$0xff] }
  0xff   :  { %1084 = vmatpush.bf16.msrb.mxu3 %v3553_v50  ;;  %1149 = vmatpush.bf16.msra.mxu0 %v3869_v54 }
 0x100   :  { %1129 = vmatpush.bf16.msrb.mxu2 %v3716_v58  ;;  %1163 = vmatpush.bf16.msra.mxu1 %v3741_v45  ;;  %v3968_v58 = vpop.f32.mrf.mxu0 }
 0x101   :  { %4927 = vst [vmem:[#allocation14_spill] sm:$0xff] %v3968_v58 }
 0x103   :  { %1085 = vmatpush.bf16.msrb.mxu3 %v3568_v57  ;;  %1150 = vmatpush.bf16.msra.mxu0 %v3878_v17  ;;  %v4958_v17 = vld [vmem:[#allocation23_spill] sm:$0xff] }
 0x104   :  { %1130 = vmatpush.bf16.msrb.mxu2 %v3736_v26  ;;  %1164 = vmatpush.bf16.msra.mxu1 %v3755_v10  ;;  %v3964_v26 = vpop.f32.mrf.mxu2 }
 0x107   :  { %1086 = vmatpush.bf16.msrb.mxu3 %v3613_v19  ;;  %1151 = vmatpush.bf16.msra.mxu0 %v3886_v35 }
 0x108   :  { %1176 = vmatpush.bf16.msra.mxu2 %v3745_v55  ;;  %1165 = vmatpush.bf16.msra.mxu1 %v3766_v48  ;;  %v4924_v55 = vld [vmem:[#allocation16_spill] sm:$0xff] }
 0x10b   :  { %1087 = vmatpush.bf16.msrb.mxu3 %v3622_v25  ;;  %1152 = vmatpush.bf16.msra.mxu0 %v3894_v53 }
 0x10c   :  { %1177 = vmatpush.bf16.msra.mxu2 %v3757_v11  ;;  %1166 = vmatpush.bf16.msra.mxu1 %v3782_v24  ;;  %v4923_v11 = vld [vmem:[#allocation17_spill] sm:$0xff]  ;;  %v4027_v24 = vld [vmem:[%s4743_s6] sm:$0x7] }
 0x10d   :  { %v4033_v63 = vperm.slane %v4027_v24, 0 }
 0x10f   :  { %1088 = vmatpush.bf16.msrb.mxu3 %v3631_v34  ;;  %1153 = vmatpush.bf16.msra.mxu0 %v3901_v60  ;;  %4954 = vst [vmem:[#allocation80_spill] sm:$0xff] %v4033_v63 }
 0x110   :  { %1178 = vmatpush.bf16.msra.mxu2 %v3768_v52  ;;  %1167 = vmatpush.bf16.msra.mxu1 %v4919_v46  ;;  %v3957_v52 = vpop.f32.mrf.mxu1 }
 0x113   :  { %1089 = vmatpush.bf16.msrb.mxu3 %v3640_v43  ;;  %1154 = vmatpush.bf16.msra.mxu0 %v3907_v18 }
 0x114   :  { %1179 = vmatpush.bf16.msra.mxu2 %v4918_v12  ;;  %1168 = vmatpush.bf16.msra.mxu1 %v4922_v33  ;;  %v4925_v12 = vld [vmem:[#allocation45_spill] sm:$0xff] }
 0x115   :  { %v4929_v33 = vld [vmem:[#allocation21_spill] sm:$0xff] }
 0x117   :  { %1090 = vmatpush.bf16.msrb.mxu3 %v4920_v4  ;;  %1155 = vmatpush.bf16.msra.mxu0 %v3913_v7 }
 0x118   :  { %1180 = vmatpush.bf16.msra.mxu2 %v4921_v8  ;;  %1169 = vmatpush.bf16.msra.mxu1 %v3816_v36  ;;  %v4926_v8 = vld [vmem:[#allocation19_spill] sm:$0xff]  ;;  %v3971_v7 = vpop.f32.mrf.mxu1  ;;  %v4931_v36 = vld [vmem:[#allocation26_spill] sm:$0xff] }
 0x119   :  { %4928 = vst [vmem:[#allocation61_spill] sm:$0xff] %v3971_v7 }
 0x11b   :  { %1091 = vmatpush.bf16.msrb.mxu3 %v4923_v11  ;;  %1156 = vmatpush.bf16.msra.mxu0 %v3919_v22  ;;  %v3978_v22 = vpop.f32.mrf.mxu0 }
 0x11c   :  { %1181 = vmatpush.bf16.msra.mxu2 %v4925_v12  ;;  %1170 = vmatpush.bf16.msra.mxu1 %v3834_v42  ;;  %v3975_v12 = vpop.f32.mrf.mxu2  ;;  %4932 = vst [vmem:[#allocation63_spill] sm:$0xff] %v3978_v22  ;;  %v4937_v42 = vld [vmem:[#allocation35_spill] sm:$0xff] }
 0x11d   :  { %4930 = vst [vmem:[#allocation62_spill] sm:$0xff] %v3975_v12 }
 0x11f   :  { %1136 = vmatpush.bf16.msra.mxu3 %v4924_v55 }
 0x120   :  { %1182 = vmatpush.bf16.msra.mxu2 %v3827_v37  ;;  %v3980_v18 = vpop.f32.mrf.mxu1  ;;  %v4935_v37 = vld [vmem:[#allocation32_spill] sm:$0xff] }
 0x121   :  { %4933 = vst [vmem:[#allocation64_spill] sm:$0xff] %v3980_v18 }
 0x123   :  { %1137 = vmatpush.bf16.msra.mxu3 %v4926_v8  ;;  %v3987_v7 = vpop.f32.mrf.mxu0 }
 0x124   :  { %1183 = vmatpush.bf16.msra.mxu2 %v3844_v20  ;;  %v3984_v58 = vpop.f32.mrf.mxu2  ;;  %4938 = vst [vmem:[#allocation66_spill] sm:$0xff] %v3987_v7  ;;  %v4940_v20 = vld [vmem:[#allocation38_spill] sm:$0xff] }
 0x125   :  { %4936 = vst [vmem:[#allocation65_spill] sm:$0xff] %v3984_v58 }
 0x127   :  { %1138 = vmatpush.bf16.msra.mxu3 %v4929_v33 }
 0x128   :  { %v3989_v46 = vpop.f32.mrf.mxu1 }
 0x129   :  { %4939 = vst [vmem:[#allocation67_spill] sm:$0xff] %v3989_v46 }
 0x12b   :  { %1139 = vmatpush.bf16.msra.mxu3 %v4931_v36  ;;  %v3994_v60 = vpop.f32.mrf.mxu0 }
 0x12c   :  { %v3992_v12 = vpop.f32.mrf.mxu2  ;;  %4942 = vst [vmem:[#allocation69_spill] sm:$0xff] %v3994_v60 }
 0x12d   :  { %4941 = vst [vmem:[#allocation68_spill] sm:$0xff] %v3992_v12 }
 0x12f   :  { %1140 = vmatpush.bf16.msra.mxu3 %v4934_v30 }
 0x130   :  { %v3996_v22 = vpop.f32.mrf.mxu1 }
 0x131   :  { %4943 = vst [vmem:[#allocation70_spill] sm:$0xff] %v3996_v22  ;;  %v4017_v22 = vld [vmem:[%s4741_s4] sm:$0x3f] }
 0x132   :  { %v4030_v36 = vperm.slane %v4017_v22, 3  ;;  %v4046_v33 = vperm.slane %v4017_v22, 1 }
 0x133   :  { %1141 = vmatpush.bf16.msra.mxu3 %v4935_v37  ;;  %v4000_v30 = vpop.f32.mrf.mxu0 }
 0x134   :  { %v3998_v18 = vpop.f32.mrf.mxu2  ;;  %4945 = vst [vmem:[#allocation72_spill] sm:$0xff] %v4000_v30  ;;  %v4020_v30 = vperm.slane %v4017_v22, 0 }
 0x135   :  { %4944 = vst [vmem:[#allocation71_spill] sm:$0xff] %v3998_v18  ;;  %v4952_v18 = vld [vmem:[#allocation22_spill] sm:$0xff] }
 0x136   :  { %4951 = vst [vmem:[#allocation78_spill] sm:$0xff] %v4020_v30 }
 0x137   :  { %1142 = vmatpush.bf16.msra.mxu3 %v4937_v42  ;;  %4953 = vst [vmem:[#allocation79_spill] sm:$0xff] %v4030_v36 }
 0x138   :  { %v4002_v37 = vpop.f32.mrf.mxu1  ;;  %4957 = vst [vmem:[#allocation83_spill] sm:$0xff] %v4046_v33 }
 0x139   :  { %4946 = vst [vmem:[#allocation73_spill] sm:$0xff] %v4002_v37 }
 0x13b   :  { %1143 = vmatpush.bf16.msra.mxu3 %v4940_v20  ;;  %v4006_v42 = vpop.f32.mrf.mxu0 }
 0x13c   :  { %v4004_v58 = vpop.f32.mrf.mxu2  ;;  %4948 = vst [vmem:[#allocation75_spill] sm:$0xff] %v4006_v42 }
 0x13d   :  { %4947 = vst [vmem:[#allocation74_spill] sm:$0xff] %v4004_v58  ;;  %v273_v58 = vadd.f32 %v272_v2, %v4952_v18  ;;  %v4036_v2 = vperm.slane %v4017_v22, 4 }
 0x13f   :  { %4955 = vst [vmem:[#allocation81_spill] sm:$0xff] %v4036_v2 }
 0x140   :  { %v4008_v7 = vpop.f32.mrf.mxu1 }
 0x141   :  { %4949 = vst [vmem:[#allocation76_spill] sm:$0xff] %v4008_v7 }
 0x144   :  { %v4010_v46 = vpop.f32.mrf.mxu2 }
 0x145   :  { %4950 = vst [vmem:[#allocation77_spill] sm:$0xff] %v4010_v46 }
 0x15a   :  { %v4012_v20 = vpop.f32.mrf.mxu0 }
 0x15b   :  { %v759_v12 = vpop.f32.mrf.mxu1 }
 0x160   :  { %v720_v37 = vpop.f32.mrf.mxu3 }
 0x161   :  { %v721_v42 = vadd.f32 %v720_v37, %v4020_v30  ;;  %v772_v60 = vpop.f32.mrf.mxu2 }
 0x162   :  { %v748_v7 = vpop.f32.mrf.mxu0  ;;  %v773_v18 = vadd.f32 %v772_v60, %v4036_v2 }
 0x163   :  { %v1036_v14 = vadd.f32 %v721_v42, %v273_v58  ;;  %v761_v46 = vpop.f32.mrf.mxu1  ;;  %v4039_v58 = vperm.slane %v4027_v24, 1 }
 0x164   :  { %v760_v46 = vadd.f32 %v759_v12, %v4030_v36  ;;  %v302_v12 = vadd.f32 %v3957_v52, %v4958_v17 }
 0x165   :  { %v3010_v53 = vmul.f32 -1.442695, %v1036_v14  ;;  %4956 = vst [vmem:[#allocation82_spill] sm:$0xff] %v4039_v58 }
 0x167   :  { %3192 = vpow2.f32 %v3010_v53 }
 0x168   :  { %v722_v37 = vpop.f32.mrf.mxu3 }
 0x169   :  { %v774_v42 = vpop.f32.mrf.mxu2 }
 0x16a   :  { %v959_v7 = vpop.f32.mrf.mxu0 }
 0x16b   :  { %v960_v14 = vadd.f32 %v959_v7, %v4033_v63  ;;  %v972_v30 = vpop.f32.mrf.mxu1 }
 0x16c   :  { %v973_v53 = vadd.f32 %v972_v30, %v4039_v58 }
 0x16d   :  { %v3193_v48 = vpop.eup %3192  ;;  %v989_v35 = vadd.f32 %v960_v14, %v760_v46 }
 0x16e   :  { %v1040_v37 = vadd.f32 1.0, %v3193_v48  ;;  %v1009_v49 = vadd.f32 %v973_v53, %v773_v18 }
 0x16f   :  { %v3008_v10 = vmul.f32 -1.442695, %v989_v35 }
 0x170   :  { %3194 = vrcp.f32 %v1040_v37  ;;  %v733_v42 = vpop.f32.mrf.mxu3  ;;  %v3009_v7 = vmul.f32 -1.442695, %v1009_v49  ;;  %v1052_v49 = vand.u32 2147483648, %v1040_v37  ;;  %vm1046_vm9 = vweird.f32 %v1040_v37 }
 0x171   :  { %3196 = vpow2.f32 %v3008_v10  ;;  %v734_v63 = vadd.f32 %v733_v42, %v4046_v33  ;;  %v985_v60 = vpop.f32.mrf.mxu2 }
 0x172   :  { %v961_v2 = vpop.f32.mrf.mxu0  ;;  %3198 = vpow2.f32 %v3009_v7 }
 0x173   :  { %v1056_v30 = vadd.f32 %v734_v63, %v302_v12  ;;  %v974_v46 = vpop.f32.mrf.mxu1  ;;  %v1050_v2 = vand.u32 2147483647, %v1040_v37  ;;  %v4054_v12 = vperm.slane %v4017_v22, 2 }
 0x175   :  { %v3011_v14 = vmul.f32 -1.442695, %v1056_v30  ;;  %4959 = vst [vmem:[#allocation84_spill] sm:$0xff] %v4054_v12  ;;  %v1053_v30 = vor.u32 1.1754944e-38, %v1052_v49  ;;  %vm1051_vm11 = vcmp.eq.f32.partialorder %v1050_v2, 8.507059e+37  ;;  %v4062_v49 = vperm.slane %v4027_v24, 2 }
 0x176   :  { %v3195_v58 = vpop.eup %3194 }
 0x177   :  { %v3197_v36 = vpop.eup %3196  ;;  %v1042_v48 = vmul.f32 %v3195_v58, %v1040_v37  ;;  %3200 = vpow2.f32 %v3011_v14  ;;  %vm1047_vm8 = vweird.f32 %v3195_v58 }
 0x178   :  { %v993_v35 = vadd.f32 1.0, %v3197_v36  ;;  %v735_v18 = vpop.f32.mrf.mxu3  ;;  %v3199_v53 = vpop.eup %3198  ;;  %vm1048_vm10 = vmor %vm1046_vm9, %vm1047_vm8 }
 0x179   :  { %v1043_v8 = vsub.f32 1.0, %v1042_v48  ;;  %v987_v40 = vpop.f32.mrf.mxu2  ;;  %v4051_v52 = vadd.f32 1.0, %v3199_v53  ;;  %v747_v48 = vadd.f32 %v4012_v20, %v4054_v12  ;;  %v986_v12 = vadd.f32 %v985_v60, %v4062_v49 }
 0x17a   :  { %3202 = vrcp.f32 %v993_v35  ;;  %v1005_v2 = vand.u32 2147483648, %v993_v35  ;;  %vm999_vm13 = vweird.f32 %v993_v35 }
 0x17b   :  { %v1044_v10 = vmul.f32 %v3195_v58, %v1043_v8  ;;  %3204 = vrcp.f32 %v4051_v52  ;;  %vm1019_vm5 = vweird.f32 %v4051_v52 }
 0x17c   :  { %v1006_v17 = vor.u32 1.1754944e-38, %v1005_v2 }
 0x17d   :  { %v3201_v42 = vpop.eup %3200  ;;  %v1045_v63 = vadd.f32 %v3195_v58, %v1044_v10 }
 0x17e   :  { %v1060_v7 = vadd.f32 1.0, %v3201_v42 }
 0x17f   :  { %v1049_v36 = vsel %vm1048_vm10, %v3195_v58, %v1045_v63  ;;  %v331_v58 = vadd.f32 %v3964_v26, %v3813_v59 }
 0x180   :  { %v3203_v40 = vpop.eup %3202  ;;  %3206 = vrcp.f32 %v1060_v7  ;;  %v1054_v8 = vsel %vm1051_vm11, %v1053_v30, %v1049_v36  ;;  %v1003_v36 = vand.u32 2147483647, %v993_v35  ;;  %v1070_v24 = vand.u32 2147483647, %v1060_v7 }
 0x181   :  { %v785_v46 = vpop.f32.mrf.mxu3  ;;  %v995_v14 = vmul.f32 %v3203_v40, %v993_v35  ;;  %v1076_v37 = vmul.f32 %v1054_v8, %v747_v48  ;;  %v3205_v53 = vpop.eup %3204  ;;  %vm1000_vm12 = vweird.f32 %v3203_v40  ;;  %vm1066_vm1 = vweird.f32 %v1060_v7 }
 0x182   :  { %v1015_v20 = vmul.f32 %v3205_v53, %v4051_v52  ;;  %vm1001_vm14 = vmor %vm999_vm13, %vm1000_vm12  ;;  %vm1004_vm0 = vcmp.eq.f32.partialorder %v1003_v36, 8.507059e+37  ;;  %v4067_v35 = vperm.slane %v4017_v22, 5  ;;  %vm1071_vm3 = vcmp.eq.f32.partialorder %v1070_v24, 8.507059e+37  ;;  %v4961_v24 = vld [vmem:[#allocation30_spill] sm:$0xff] }
 0x183   :  { %v996_v18 = vsub.f32 1.0, %v995_v14  ;;  %v1077_v30 = vadd.f32 %v1076_v37, %v331_v58  ;;  %vm1020_vm4 = vweird.f32 %v3205_v53  ;;  %v1025_v22 = vand.u32 2147483648, %v4051_v52 }
 0x184   :  { %v1016_v59 = vsub.f32 1.0, %v1015_v20  ;;  %vm1021_vm6 = vmor %vm1019_vm5, %vm1020_vm4 }
 0x185   :  { %v997_v10 = vmul.f32 %v3203_v40, %v996_v18  ;;  %v1072_v18 = vand.u32 2147483648, %v1060_v7  ;;  %3208 = vtanh.f32 %v1077_v30 }
 0x186   :  { %v3207_v33 = vpop.eup %3206 }
 0x187   :  { %v1062_v42 = vmul.f32 %v3207_v33, %v1060_v7  ;;  %v998_v63 = vadd.f32 %v3203_v40, %v997_v10  ;;  %vm1067_vm15 = vweird.f32 %v3207_v33  ;;  %v1073_v37 = vor.u32 1.1754944e-38, %v1072_v18 }
 0x188   :  { %vm1068_vm2 = vmor %vm1066_vm1, %vm1067_vm15 }
 0x189   :  { %v1063_v8 = vsub.f32 1.0, %v1062_v42  ;;  %v787_v14 = vpop.f32.mrf.mxu3  ;;  %v1002_v48 = vsel %vm1001_vm14, %v3203_v40, %v998_v63  ;;  %v1017_v42 = vmul.f32 %v3205_v53, %v1016_v59  ;;  %v786_v63 = vadd.f32 %v785_v46, %v4067_v35 }
 0x18a   :  { %v1007_v10 = vsel %vm1004_vm0, %v1006_v17, %v1002_v48 }
 0x18b   :  { %v1064_v26 = vmul.f32 %v3207_v33, %v1063_v8  ;;  %v1029_v40 = vmul.f32 %v1007_v10, %v986_v12  ;;  %v3209_v8 = vpop.eup %3208  ;;  %v1018_v20 = vadd.f32 %v3205_v53, %v1017_v42  ;;  %v1026_v12 = vor.u32 1.1754944e-38, %v1025_v22  ;;  %v4962_v10 = vld [vmem:[#allocation12_spill] sm:$0xff]  ;;  %v4966_v42 = vld [vmem:[#allocation13_spill] sm:$0xff] }
 0x18c   :  { %v4975_v22 = vld [vmem:[#allocation29_spill] sm:$0xff] }
 0x18d   :  { %v1065_v45 = vadd.f32 %v3207_v33, %v1064_v26  ;;  %v1030_v36 = vadd.f32 %v1029_v40, %v786_v63  ;;  %v4965_v40 = vld [vmem:[#allocation33_spill] sm:$0xff]  ;;  %v4969_v63 = vld [vmem:[#allocation36_spill] sm:$0xff] }
 0x18f   :  { %v1069_v58 = vsel %vm1068_vm2, %v3207_v33, %v1065_v45  ;;  %v1023_v45 = vand.u32 2147483647, %v4051_v52  ;;  %3210 = vtanh.f32 %v1030_v36  ;;  %v1022_v33 = vsel %vm1021_vm6, %v3205_v53, %v1018_v20  ;;  %v4971_v36 = vld [vmem:[#allocation26_spill] sm:$0xff] }
 0x190   :  { %v1074_v60 = vsel %vm1071_vm3, %v1073_v37, %v1069_v58  ;;  %v4963_v37 = vld [vmem:[#allocation19_spill] sm:$0xff]  ;;  %v4964_v58 = vld [vmem:[#allocation53_spill] sm:$0xff]  ;;  %v4974_v20 = vld [vmem:[#allocation18_spill] sm:$0xff] }
 0x191   :  { %v1079_v2 = vsub.f32 1.0, %v1074_v60  ;;  %v1081_v17 = vmul.f32 %v1074_v60, %v3862_v39  ;;  %vm1024_vm7 = vcmp.eq.f32.partialorder %v1023_v45, 8.507059e+37  ;;  %v4960_v39 = vld [vmem:[#allocation49_spill] sm:$0xff] }
 0x192   :  { %v1027_v46 = vsel %vm1024_vm7, %v1026_v12, %v1022_v33  ;;  %v4967_v60 = vld [vmem:[#allocation21_spill] sm:$0xff]  ;;  %v4978_v33 = vld [vmem:[#allocation20_spill] sm:$0xff] }
 0x193   :  { %v1080_v30 = vmul.f32 %v3209_v8, %v1079_v2  ;;  %v1032_v14 = vsub.f32 1.0, %v1027_v46  ;;  %v1034_v48 = vmul.f32 0.0, %v1027_v46  ;;  %v4968_v2 = vld [vmem:[#allocation54_spill] sm:$0xff]  ;;  %v4970_v8 = vld [vmem:[#allocation15_spill] sm:$0xff]  ;;  %v4976_v45 = vld [vmem:[#allocation57_spill] sm:$0xff] }
 0x194   :  { %v4979_v12 = vld [vmem:[#allocation32_spill] sm:$0xff]  ;;  %v4980_v46 = vld [vmem:[#allocation58_spill] sm:$0xff] }
 0x195   :  { %v4071_v7 = vadd.f32 %v1081_v17, %v1080_v30  ;;  %v3211_v52 = vpop.eup %3210  ;;  %v4972_v30 = vld [vmem:[#allocation56_spill] sm:$0xff]  ;;  %v4973_v17 = vld [vmem:[#allocation39_spill] sm:$0xff] }
 0x196   :  { %v1033_v53 = vmul.f32 %v3211_v52, %v1032_v14  ;;  %v4981_v52 = vld [vmem:[#allocation44_spill] sm:$0xff]  ;;  %v4982_v14 = vld [vmem:[#allocation25_spill] sm:$0xff] }
 0x197   :  { %v1083_v59 = vpack.c.bf16 %v4071_v7, %v4071_v7 }
 0x198   :  { %v4088_v18 = vadd.f32 %v1034_v48, %v1033_v53  ;;  %v4983_v53 = vld [vmem:[#allocation35_spill] sm:$0xff] }
 0x199   :  { %1092 = vmatmul.bf16.vlgmr.msrb.gmra.mxu3 %v1083_v59  ;;  %1105 = vmatmul.bf16.vlgmr.msrb.gmra.mxu0 %v1083_v59  ;;  %v4984_v48 = vld [vmem:[#allocation59_spill] sm:$0xff] }
 0x19a   :  { %1118 = vmatmul.bf16.vlgmr.msrb.gmra.mxu1 %v1083_v59  ;;  %1131 = vmatmul.bf16.vlgmr.msrb.gmra.mxu2 %v1083_v59  ;;  %v1162_v26 = vpack.c.bf16 %v4088_v18, %v4088_v18 }
 0x19b   :  { %1189 = vmatpush.bf16.msrb.mxu3 %v4960_v39  ;;  %1297 = vmatpush.bf16.msrb.mxu0 %v3553_v50 }
 0x19c   :  { %1310 = vmatpush.bf16.msrb.mxu1 %v3669_v9  ;;  %1323 = vmatpush.bf16.msrb.mxu2 %v3624_v29 }
 0x19f   :  { %1190 = vmatpush.bf16.msrb.mxu3 %v3839_v5  ;;  %1298 = vmatpush.bf16.msrb.mxu0 %v3568_v57 }
 0x1a0   :  { %1311 = vmatpush.bf16.msrb.mxu1 %v3687_v23  ;;  %1324 = vmatpush.bf16.msrb.mxu2 %v3633_v38 }
 0x1a3   :  { %1191 = vmatpush.bf16.msrb.mxu3 %v3852_v27  ;;  %1299 = vmatpush.bf16.msrb.mxu0 %v3613_v19 }
 0x1a4   :  { %1312 = vmatpush.bf16.msrb.mxu1 %v3710_v44  ;;  %1325 = vmatpush.bf16.msrb.mxu2 %v3642_v47 }
 0x1a7   :  { %1192 = vmatpush.bf16.msrb.mxu3 %v3857_v41  ;;  %1300 = vmatpush.bf16.msrb.mxu0 %v3622_v25 }
 0x1a8   :  { %1313 = vmatpush.bf16.msrb.mxu1 %v3732_v15  ;;  %1326 = vmatpush.bf16.msrb.mxu2 %v3658_v62 }
 0x1a9   :  { %1144 = vmatmul.bf16.vlgmr.msra.gmra.mxu3 %v1083_v59  ;;  %1157 = vmatmul.bf16.vlgmr.msra.gmra.mxu0 %v1083_v59  ;;  %v4977_v59 = vld [vmem:[#allocation42_spill] sm:$0xff] }
 0x1aa   :  { %1171 = vmatmul.bf16.vlgmr.msra.gmra.mxu1 %v1162_v26  ;;  %1184 = vmatmul.bf16.vlgmr.msra.gmra.mxu2 %v1162_v26 }
 0x1ab   :  { %1193 = vmatpush.bf16.msrb.mxu3 %v3860_v3  ;;  %1301 = vmatpush.bf16.msrb.mxu0 %v3631_v34 }
 0x1ac   :  { %1314 = vmatpush.bf16.msrb.mxu1 %v3749_v0  ;;  %1327 = vmatpush.bf16.msrb.mxu2 %v3672_v13 }
 0x1af   :  { %1194 = vmatpush.bf16.msrb.mxu3 %v3871_v6  ;;  %1302 = vmatpush.bf16.msrb.mxu0 %v3640_v43 }
 0x1b0   :  { %1315 = vmatpush.bf16.msrb.mxu1 %v3759_v21  ;;  %1328 = vmatpush.bf16.msrb.mxu2 %v3689_v28 }
 0x1b3   :  { %1195 = vmatpush.bf16.msrb.mxu3 %v3881_v1  ;;  %1303 = vmatpush.bf16.msrb.mxu0 %v4920_v4 }
 0x1b4   :  { %1316 = vmatpush.bf16.msrb.mxu1 %v3771_v61  ;;  %1329 = vmatpush.bf16.msrb.mxu2 %v3712_v51 }
 0x1b7   :  { %1196 = vmatpush.bf16.msrb.mxu3 %v3889_v32  ;;  %1304 = vmatpush.bf16.msrb.mxu0 %v4923_v11 }
 0x1b8   :  { %1317 = vmatpush.bf16.msrb.mxu1 %v3791_v56  ;;  %1330 = vmatpush.bf16.msrb.mxu2 %v3734_v16 }
 0x1ba   :  { %1197 = vmatmul.bf16.vlgmr.msrb.gmra.mxu3 %v1162_v26  ;;  %v4985_v26 = vld [vmem:[#allocation47_spill] sm:$0xff] }
 0x1bb   :  { %1336 = vmatpush.bf16.msra.mxu3 %v3627_v31  ;;  %1349 = vmatpush.bf16.msra.mxu0 %v4924_v55 }
 0x1bc   :  { %1362 = vmatpush.bf16.msra.mxu1 %v3869_v54  ;;  %1376 = vmatpush.bf16.msra.mxu2 %v4961_v24 }
 0x1bf   :  { %1337 = vmatpush.bf16.msra.mxu3 %v4962_v10  ;;  %1350 = vmatpush.bf16.msra.mxu0 %v4963_v37 }
 0x1c0   :  { %1363 = vmatpush.bf16.msra.mxu1 %v4964_v58  ;;  %1377 = vmatpush.bf16.msra.mxu2 %v4965_v40 }
 0x1c3   :  { %1338 = vmatpush.bf16.msra.mxu3 %v4966_v42  ;;  %1351 = vmatpush.bf16.msra.mxu0 %v4967_v60 }
 0x1c4   :  { %1364 = vmatpush.bf16.msra.mxu1 %v4968_v2  ;;  %1378 = vmatpush.bf16.msra.mxu2 %v4969_v63 }
 0x1c7   :  { %1339 = vmatpush.bf16.msra.mxu3 %v4970_v8  ;;  %1352 = vmatpush.bf16.msra.mxu0 %v4971_v36  ;;  %v5001_v8 = vld [vmem:[#allocation22_spill] sm:$0xff] }
 0x1c8   :  { %1365 = vmatpush.bf16.msra.mxu1 %v4972_v30  ;;  %1379 = vmatpush.bf16.msra.mxu2 %v4973_v17  ;;  %v5000_v17 = vld [vmem:[#allocation83_spill] sm:$0xff] }
 0x1cb   :  { %1340 = vmatpush.bf16.msra.mxu3 %v4974_v20  ;;  %1353 = vmatpush.bf16.msra.mxu0 %v4975_v22  ;;  %v4986_v22 = vld [vmem:[#allocation28_spill] sm:$0xff]  ;;  %v4999_v20 = vld [vmem:[#allocation61_spill] sm:$0xff] }
 0x1cc   :  { %1366 = vmatpush.bf16.msra.mxu1 %v4976_v45  ;;  %1380 = vmatpush.bf16.msra.mxu2 %v4977_v59  ;;  %v4987_v45 = vld [vmem:[#allocation38_spill] sm:$0xff]  ;;  %v4988_v59 = vld [vmem:[#allocation31_spill] sm:$0xff] }
 0x1cf   :  { %1341 = vmatpush.bf16.msra.mxu3 %v4978_v33  ;;  %1354 = vmatpush.bf16.msra.mxu0 %v4979_v12  ;;  %v4989_v33 = vld [vmem:[#allocation60_spill] sm:$0xff]  ;;  %v4990_v12 = vld [vmem:[#allocation50_spill] sm:$0xff] }
 0x1d0   :  { %1367 = vmatpush.bf16.msra.mxu1 %v4980_v46  ;;  %1381 = vmatpush.bf16.msra.mxu2 %v4981_v52  ;;  %v4991_v46 = vld [vmem:[#allocation34_spill] sm:$0xff]  ;;  %v4992_v52 = vld [vmem:[#allocation37_spill] sm:$0xff] }
 0x1d3   :  { %1342 = vmatpush.bf16.msra.mxu3 %v4982_v14  ;;  %1355 = vmatpush.bf16.msra.mxu0 %v4983_v53  ;;  %v4993_v14 = vld [vmem:[#allocation40_spill] sm:$0xff]  ;;  %v4994_v53 = vld [vmem:[#allocation43_spill] sm:$0xff] }
 0x1d4   :  { %1368 = vmatpush.bf16.msra.mxu1 %v4984_v48  ;;  %1382 = vmatpush.bf16.msra.mxu2 %v4985_v26  ;;  %v4995_v48 = vld [vmem:[#allocation45_spill] sm:$0xff]  ;;  %v4996_v26 = vld [vmem:[#allocation48_spill] sm:$0xff] }
 0x1d7   :  { %1343 = vmatpush.bf16.msra.mxu3 %v4986_v22  ;;  %1356 = vmatpush.bf16.msra.mxu0 %v4987_v45  ;;  %v4997_v22 = vld [vmem:[#allocation51_spill] sm:$0xff] }
 0x1d8   :  { %1369 = vmatpush.bf16.msra.mxu1 %v4989_v33  ;;  %1383 = vmatpush.bf16.msra.mxu2 %v4990_v12 }
 0x1db   :  { %1389 = vmatpush.bf16.msrb.mxu3 %v4988_v59  ;;  %v4998_v59 = vld [vmem:[#allocation23_spill] sm:$0xff] }
 0x1dc   :  { %v305_v33 = vadd.f32 %v4999_v20, %v4998_v59 }
 0x1df   :  { %1390 = vmatpush.bf16.msrb.mxu3 %v4991_v46 }
 0x1e3   :  { %1391 = vmatpush.bf16.msrb.mxu3 %v4992_v52 }
 0x1e7   :  { %1392 = vmatpush.bf16.msrb.mxu3 %v4993_v14  ;;  %v5002_v14 = vld [vmem:[#allocation14_spill] sm:$0xff] }
 0x1e8   :  { %v276_v63 = vadd.f32 %v5002_v14, %v5001_v8  ;;  %v5005_v14 = vld [vmem:[#allocation80_spill] sm:$0xff] }
 0x1eb   :  { %1393 = vmatpush.bf16.msrb.mxu3 %v4994_v53  ;;  %v5003_v53 = vld [vmem:[#allocation78_spill] sm:$0xff] }
 0x1ef   :  { %1394 = vmatpush.bf16.msrb.mxu3 %v4995_v48 }
 0x1f3   :  { %1395 = vmatpush.bf16.msrb.mxu3 %v4996_v26 }
 0x1f7   :  { %1396 = vmatpush.bf16.msrb.mxu3 %v4997_v22 }
 0x216   :  { %v1106_v45 = vpop.f32.mrf.mxu0 }
 0x217   :  { %v1107_v12 = vadd.f32 %v1106_v45, %v5000_v17  ;;  %v1119_v30 = vpop.f32.mrf.mxu1 }
 0x219   :  { %v1269_v46 = vadd.f32 %v1107_v12, %v305_v33 }
 0x21b   :  { %v3015_v36 = vmul.f32 -1.442695, %v1269_v46  ;;  %v5004_v46 = vld [vmem:[#allocation79_spill] sm:$0xff] }
 0x21c   :  { %v1093_v52 = vpop.f32.mrf.mxu3 }
 0x21d   :  { %3212 = vpow2.f32 %v3015_v36  ;;  %v1094_v48 = vadd.f32 %v1093_v52, %v5003_v53  ;;  %v1132_v2 = vpop.f32.mrf.mxu2 }
 0x21e   :  { %v1108_v26 = vpop.f32.mrf.mxu0  ;;  %v1133_v36 = vadd.f32 %v1132_v2, %v5004_v46 }
 0x21f   :  { %v1249_v60 = vadd.f32 %v1094_v48, %v276_v63  ;;  %v1121_v22 = vpop.f32.mrf.mxu1 }
 0x221   :  { %v3014_v42 = vmul.f32 -1.442695, %v1249_v60 }
 0x223   :  { %v3213_v40 = vpop.eup %3212  ;;  %3214 = vpow2.f32 %v3014_v42 }
 0x224   :  { %v4160_v20 = vadd.f32 1.0, %v3213_v40  ;;  %v1095_v45 = vpop.f32.mrf.mxu3  ;;  %v5006_v40 = vld [vmem:[#allocation81_spill] sm:$0xff] }
 0x225   :  { %v1134_v17 = vpop.f32.mrf.mxu2 }
 0x226   :  { %v4162_v33 = vpop.f32.mrf.mxu0  ;;  %3216 = vrcp.f32 %v4160_v20  ;;  %v5007_v17 = vld [vmem:[#allocation82_spill] sm:$0xff]  ;;  %vm1279_vm13 = vweird.f32 %v4160_v20 }
 0x227   :  { %v1172_v12 = vpop.f32.mrf.mxu1 }
 0x228   :  { %v1173_v52 = vadd.f32 %v1172_v12, %v5005_v14 }
 0x229   :  { %v3215_v53 = vpop.eup %3214 }
 0x22a   :  { %v1253_v26 = vadd.f32 1.0, %v3215_v53  ;;  %v1202_v63 = vadd.f32 %v1173_v52, %v1133_v36 }
 0x22c   :  { %3218 = vrcp.f32 %v1253_v26  ;;  %v1145_v60 = vpop.f32.mrf.mxu3  ;;  %v3217_v22 = vpop.eup %3216  ;;  %v3012_v42 = vmul.f32 -1.442695, %v1202_v63  ;;  %v1265_v24 = vand.u32 2147483648, %v1253_v26  ;;  %vm1259_vm9 = vweird.f32 %v1253_v26 }
 0x22d   :  { %v1146_v48 = vadd.f32 %v1145_v60, %v5006_v40  ;;  %v1185_v45 = vpop.f32.mrf.mxu2  ;;  %v1275_v37 = vmul.f32 %v3217_v22, %v4160_v20  ;;  %vm1280_vm12 = vweird.f32 %v3217_v22 }
 0x22e   :  { %v1186_v59 = vadd.f32 %v1185_v45, %v5007_v17  ;;  %v1160_v8 = vpop.f32.mrf.mxu0  ;;  %3220 = vpow2.f32 %v3012_v42  ;;  %v1263_v45 = vand.u32 2147483647, %v1253_v26  ;;  %v1285_v17 = vand.u32 2147483648, %v4160_v20  ;;  %vm1281_vm14 = vmor %vm1279_vm13, %vm1280_vm12 }
 0x22f   :  { %v1174_v58 = vpop.f32.mrf.mxu1  ;;  %v1276_v53 = vsub.f32 1.0, %v1275_v37 }
 0x230   :  { %v1222_v2 = vadd.f32 %v1186_v59, %v1146_v48  ;;  %v1266_v59 = vor.u32 1.1754944e-38, %v1265_v24  ;;  %v5008_v48 = vld [vmem:[#allocation84_spill] sm:$0xff]  ;;  %vm1264_vm11 = vcmp.eq.f32.partialorder %v1263_v45, 8.507059e+37  ;;  %v1283_v24 = vand.u32 2147483647, %v4160_v20 }
 0x231   :  { %v1277_v8 = vmul.f32 %v3217_v22, %v1276_v53 }
 0x232   :  { %v3219_v46 = vpop.eup %3218  ;;  %v3013_v12 = vmul.f32 -1.442695, %v1222_v2  ;;  %v1120_v2 = vadd.f32 %v1119_v30, %v5008_v48  ;;  %vm1284_vm15 = vcmp.eq.f32.partialorder %v1283_v24, 8.507059e+37 }
 0x233   :  { %v1255_v14 = vmul.f32 %v3219_v46, %v1253_v26  ;;  %vm1260_vm8 = vweird.f32 %v3219_v46 }
 0x234   :  { %3222 = vpow2.f32 %v3013_v12  ;;  %v1147_v36 = vpop.f32.mrf.mxu3  ;;  %v3221_v52 = vpop.eup %3220  ;;  %vm1261_vm10 = vmor %vm1259_vm9, %vm1260_vm8 }
 0x235   :  { %v1256_v10 = vsub.f32 1.0, %v1255_v14  ;;  %v1187_v63 = vpop.f32.mrf.mxu2  ;;  %v1206_v60 = vadd.f32 1.0, %v3221_v52  ;;  %v1278_v36 = vadd.f32 %v3217_v22, %v1277_v8  ;;  %v5010_v52 = vld [vmem:[#allocation62_spill] sm:$0xff]  ;;  %v1286_v8 = vor.u32 1.1754944e-38, %v1285_v17 }
 0x236   :  { %v5009_v63 = vld [vmem:[#allocation46_spill] sm:$0xff] }
 0x237   :  { %v1257_v40 = vmul.f32 %v3219_v46, %v1256_v10  ;;  %3224 = vrcp.f32 %v1206_v60  ;;  %v334_v10 = vadd.f32 %v5010_v52, %v5009_v63  ;;  %v1282_v45 = vsel %vm1281_vm14, %v3217_v22, %v1278_v36 }
 0x238   :  { %vm1212_vm1 = vweird.f32 %v1206_v60 }
 0x239   :  { %v1258_v58 = vadd.f32 %v3219_v46, %v1257_v40 }
 0x23a   :  { %v3223_v42 = vpop.eup %3222 }
 0x23b   :  { %v1262_v37 = vsel %vm1261_vm10, %v3219_v46, %v1258_v58  ;;  %v1226_v12 = vadd.f32 1.0, %v3223_v42  ;;  %v1218_v42 = vand.u32 2147483648, %v1206_v60 }
 0x23c   :  { %v1267_v14 = vsel %vm1264_vm11, %v1266_v59, %v1262_v37  ;;  %v1287_v37 = vsel %vm1284_vm15, %v1286_v8, %v1282_v45  ;;  %v1159_v45 = vadd.f32 %v4162_v33, %v4067_v35 }
 0x23d   :  { %v1289_v53 = vmul.f32 %v1267_v14, %v1120_v2  ;;  %3226 = vrcp.f32 %v1226_v12  ;;  %v1198_v40 = vpop.f32.mrf.mxu3  ;;  %v3225_v26 = vpop.eup %3224  ;;  %v1216_v2 = vand.u32 2147483647, %v1206_v60  ;;  %v1292_v54 = vsub.f32 1.0, %v1287_v37 }
 0x23e   :  { %v1208_v46 = vmul.f32 %v3225_v26, %v1206_v60  ;;  %vm1213_vm0 = vweird.f32 %v3225_v26  ;;  %v1199_v22 = vadd.f32 %v1198_v40, %v4062_v49  ;;  %vm1232_vm5 = vweird.f32 %v1226_v12 }
 0x23f   :  { %v1290_v30 = vadd.f32 %v1289_v53, %v334_v10  ;;  %vm1214_vm2 = vmor %vm1212_vm1, %vm1213_vm0  ;;  %v1219_v10 = vor.u32 1.1754944e-38, %v1218_v42  ;;  %vm1217_vm3 = vcmp.eq.f32.partialorder %v1216_v2, 8.507059e+37 }
 0x240   :  { %v1209_v58 = vsub.f32 1.0, %v1208_v46  ;;  %v1294_v46 = vmul.f32 %v1287_v37, %v4071_v7 }
 0x241   :  { %3228 = vtanh.f32 %v1290_v30 }
 0x242   :  { %v1210_v52 = vmul.f32 %v3225_v26, %v1209_v58  ;;  %v1238_v58 = vand.u32 2147483648, %v1226_v12 }
 0x243   :  { %v3227_v59 = vpop.eup %3226 }
 0x244   :  { %v1228_v14 = vmul.f32 %v3227_v59, %v1226_v12  ;;  %v1211_v63 = vadd.f32 %v3225_v26, %v1210_v52  ;;  %vm1233_vm4 = vweird.f32 %v3227_v59  ;;  %v1236_v52 = vand.u32 2147483647, %v1226_v12 }
 0x245   :  { %v1200_v48 = vpop.f32.mrf.mxu3  ;;  %vm1234_vm6 = vmor %vm1232_vm5, %vm1233_vm4  ;;  %v1239_v7 = vor.u32 1.1754944e-38, %v1238_v58  ;;  %v5025_v58 = vld [vmem:[#allocation18_spill] sm:$0xff] }
 0x246   :  { %v1229_v20 = vsub.f32 1.0, %v1228_v14  ;;  %v1215_v17 = vsel %vm1214_vm2, %v3225_v26, %v1211_v63  ;;  %vm1237_vm7 = vcmp.eq.f32.partialorder %v1236_v52, 8.507059e+37  ;;  %v5012_v14 = vld [vmem:[#allocation30_spill] sm:$0xff]  ;;  %v5027_v52 = vld [vmem:[#allocation57_spill] sm:$0xff] }
 0x247   :  { %v3229_v53 = vpop.eup %3228  ;;  %v1220_v24 = vsel %vm1217_vm3, %v1219_v10, %v1215_v17  ;;  %v5014_v10 = vld [vmem:[#allocation19_spill] sm:$0xff]  ;;  %v5017_v17 = vld [vmem:[#allocation13_spill] sm:$0xff] }
 0x248   :  { %v1230_v36 = vmul.f32 %v3227_v59, %v1229_v20  ;;  %v1293_v30 = vmul.f32 %v3229_v53, %v1292_v54  ;;  %v1242_v8 = vmul.f32 %v1220_v24, %v1199_v22  ;;  %v5013_v20 = vld [vmem:[#allocation12_spill] sm:$0xff]  ;;  %v5015_v53 = vld [vmem:[#allocation53_spill] sm:$0xff]  ;;  %v5019_v24 = vld [vmem:[#allocation54_spill] sm:$0xff] }
 0x249   :  { %v5016_v22 = vld [vmem:[#allocation33_spill] sm:$0xff] }
 0x24a   :  { %v4180_v60 = vadd.f32 %v1294_v46, %v1293_v30  ;;  %v1231_v48 = vadd.f32 %v3227_v59, %v1230_v36  ;;  %v1243_v42 = vadd.f32 %v1242_v8, %v1159_v45  ;;  %v5018_v36 = vld [vmem:[#allocation21_spill] sm:$0xff]  ;;  %v5020_v30 = vld [vmem:[#allocation36_spill] sm:$0xff]  ;;  %v5021_v46 = vld [vmem:[#allocation15_spill] sm:$0xff] }
 0x24b   :  { %v5022_v45 = vld [vmem:[#allocation26_spill] sm:$0xff]  ;;  %v5023_v8 = vld [vmem:[#allocation56_spill] sm:$0xff] }
 0x24c   :  { %v1296_v63 = vpack.c.bf16 %v4180_v60, %v4180_v60  ;;  %3230 = vtanh.f32 %v1243_v42  ;;  %v1235_v54 = vsel %vm1234_vm6, %v3227_v59, %v1231_v48  ;;  %v5024_v48 = vld [vmem:[#allocation39_spill] sm:$0xff]  ;;  %v5026_v42 = vld [vmem:[#allocation29_spill] sm:$0xff] }
 0x24d   :  { %v1240_v33 = vsel %vm1237_vm7, %v1239_v7, %v1235_v54  ;;  %v5029_v54 = vld [vmem:[#allocation20_spill] sm:$0xff] }
 0x24e   :  { %1305 = vmatmul.bf16.vlgmr.msrb.gmra.mxu0 %v1296_v63  ;;  %1318 = vmatmul.bf16.vlgmr.msrb.gmra.mxu1 %v1296_v63  ;;  %v1245_v40 = vsub.f32 1.0, %v1240_v33  ;;  %v1247_v59 = vmul.f32 %v1240_v33, %v4088_v18  ;;  %v5011_v18 = vld [vmem:[#allocation52_spill] sm:$0xff]  ;;  %v5031_v33 = vld [vmem:[#allocation58_spill] sm:$0xff] }
 0x24f   :  { %1331 = vmatmul.bf16.vlgmr.msrb.gmra.mxu2 %v1296_v63  ;;  %1344 = vmatmul.bf16.vlgmr.msra.gmra.mxu3 %v1296_v63  ;;  %v5030_v7 = vld [vmem:[#allocation32_spill] sm:$0xff] }
 0x250   :  { %1402 = vmatpush.bf16.msrb.mxu0 %v4960_v39  ;;  %1510 = vmatpush.bf16.msrb.mxu1 %v3553_v50 }
 0x251   :  { %1523 = vmatpush.bf16.msrb.mxu2 %v3669_v9  ;;  %1536 = vmatpush.bf16.msra.mxu3 %v3624_v29 }
 0x252   :  { %v3231_v12 = vpop.eup %3230 }
 0x253   :  { %v1246_v26 = vmul.f32 %v3231_v12, %v1245_v40  ;;  %v5032_v12 = vld [vmem:[#allocation44_spill] sm:$0xff]  ;;  %v5033_v40 = vld [vmem:[#allocation25_spill] sm:$0xff] }
 0x254   :  { %1403 = vmatpush.bf16.msrb.mxu0 %v3839_v5  ;;  %1511 = vmatpush.bf16.msrb.mxu1 %v3568_v57 }
 0x255   :  { %1524 = vmatpush.bf16.msrb.mxu2 %v3687_v23  ;;  %1537 = vmatpush.bf16.msra.mxu3 %v3633_v38  ;;  %v4195_v37 = vadd.f32 %v1247_v59, %v1246_v26  ;;  %v5034_v26 = vld [vmem:[#allocation35_spill] sm:$0xff] }
 0x256   :  { %v5035_v59 = vld [vmem:[#allocation59_spill] sm:$0xff] }
 0x257   :  { %v1375_v2 = vpack.c.bf16 %v4195_v37, %v4195_v37 }
 0x258   :  { %1404 = vmatpush.bf16.msrb.mxu0 %v3852_v27  ;;  %1512 = vmatpush.bf16.msrb.mxu1 %v3613_v19 }
 0x259   :  { %1525 = vmatpush.bf16.msrb.mxu2 %v3710_v44  ;;  %1538 = vmatpush.bf16.msra.mxu3 %v3642_v47 }
 0x25c   :  { %1405 = vmatpush.bf16.msrb.mxu0 %v3857_v41  ;;  %1513 = vmatpush.bf16.msrb.mxu1 %v3622_v25 }
 0x25d   :  { %1526 = vmatpush.bf16.msrb.mxu2 %v3732_v15  ;;  %1539 = vmatpush.bf16.msra.mxu3 %v3658_v62 }
 0x25e   :  { %1357 = vmatmul.bf16.vlgmr.msra.gmra.mxu0 %v1296_v63  ;;  %1370 = vmatmul.bf16.vlgmr.msra.gmra.mxu1 %v1296_v63  ;;  %v5028_v63 = vld [vmem:[#allocation42_spill] sm:$0xff] }
 0x25f   :  { %1384 = vmatmul.bf16.vlgmr.msra.gmra.mxu2 %v1375_v2  ;;  %1397 = vmatmul.bf16.vlgmr.msrb.gmra.mxu3 %v1375_v2 }
 0x260   :  { %1406 = vmatpush.bf16.msrb.mxu0 %v3860_v3  ;;  %1514 = vmatpush.bf16.msrb.mxu1 %v3631_v34 }
 0x261   :  { %1527 = vmatpush.bf16.msrb.mxu2 %v3749_v0  ;;  %1540 = vmatpush.bf16.msra.mxu3 %v3672_v13 }
 0x264   :  { %1407 = vmatpush.bf16.msrb.mxu0 %v3871_v6  ;;  %1515 = vmatpush.bf16.msrb.mxu1 %v3640_v43 }
 0x265   :  { %1528 = vmatpush.bf16.msrb.mxu2 %v3759_v21  ;;  %1541 = vmatpush.bf16.msra.mxu3 %v3689_v28 }
 0x268   :  { %1408 = vmatpush.bf16.msrb.mxu0 %v3881_v1  ;;  %1516 = vmatpush.bf16.msrb.mxu1 %v4920_v4 }
 0x269   :  { %1529 = vmatpush.bf16.msrb.mxu2 %v3771_v61  ;;  %1542 = vmatpush.bf16.msra.mxu3 %v3712_v51 }
 0x26c   :  { %1409 = vmatpush.bf16.msrb.mxu0 %v3889_v32  ;;  %1517 = vmatpush.bf16.msrb.mxu1 %v4923_v11 }
 0x26d   :  { %1530 = vmatpush.bf16.msrb.mxu2 %v3791_v56  ;;  %1543 = vmatpush.bf16.msra.mxu3 %v3734_v16 }
 0x26f   :  { %1410 = vmatmul.bf16.vlgmr.msrb.gmra.mxu0 %v1375_v2  ;;  %v5036_v2 = vld [vmem:[#allocation47_spill] sm:$0xff] }
 0x270   :  { %1549 = vmatpush.bf16.msra.mxu0 %v3627_v31  ;;  %1562 = vmatpush.bf16.msra.mxu1 %v4924_v55 }
 0x271   :  { %1575 = vmatpush.bf16.msra.mxu2 %v5011_v18  ;;  %1589 = vmatpush.bf16.msrb.mxu3 %v5012_v14 }
 0x274   :  { %1550 = vmatpush.bf16.msra.mxu0 %v5013_v20  ;;  %1563 = vmatpush.bf16.msra.mxu1 %v5014_v10 }
 0x275   :  { %1576 = vmatpush.bf16.msra.mxu2 %v5015_v53  ;;  %1590 = vmatpush.bf16.msrb.mxu3 %v5016_v22 }
 0x278   :  { %1551 = vmatpush.bf16.msra.mxu0 %v5017_v17  ;;  %1564 = vmatpush.bf16.msra.mxu1 %v5018_v36 }
 0x279   :  { %1577 = vmatpush.bf16.msra.mxu2 %v5019_v24  ;;  %1591 = vmatpush.bf16.msrb.mxu3 %v5020_v30 }
 0x27c   :  { %1552 = vmatpush.bf16.msra.mxu0 %v5021_v46  ;;  %1565 = vmatpush.bf16.msra.mxu1 %v5022_v45  ;;  %v5053_v45 = vld [vmem:[#allocation78_spill] sm:$0xff]  ;;  %v5054_v46 = vld [vmem:[#allocation83_spill] sm:$0xff] }
 0x27d   :  { %1578 = vmatpush.bf16.msra.mxu2 %v5023_v8  ;;  %1592 = vmatpush.bf16.msrb.mxu3 %v5024_v48  ;;  %v5052_v8 = vld [vmem:[#allocation64_spill] sm:$0xff] }
 0x280   :  { %1553 = vmatpush.bf16.msra.mxu0 %v5025_v58  ;;  %1566 = vmatpush.bf16.msra.mxu1 %v5026_v42  ;;  %v5037_v42 = vld [vmem:[#allocation28_spill] sm:$0xff]  ;;  %v5049_v58 = vld [vmem:[#allocation22_spill] sm:$0xff] }
 0x281   :  { %1579 = vmatpush.bf16.msra.mxu2 %v5027_v52  ;;  %1593 = vmatpush.bf16.msrb.mxu3 %v5028_v63  ;;  %v5038_v52 = vld [vmem:[#allocation38_spill] sm:$0xff]  ;;  %v5039_v63 = vld [vmem:[#allocation31_spill] sm:$0xff] }
 0x284   :  { %1554 = vmatpush.bf16.msra.mxu0 %v5029_v54  ;;  %1567 = vmatpush.bf16.msra.mxu1 %v5030_v7  ;;  %v5040_v54 = vld [vmem:[#allocation60_spill] sm:$0xff]  ;;  %v5041_v7 = vld [vmem:[#allocation50_spill] sm:$0xff] }
 0x285   :  { %1580 = vmatpush.bf16.msra.mxu2 %v5031_v33  ;;  %1594 = vmatpush.bf16.msrb.mxu3 %v5032_v12  ;;  %v5042_v33 = vld [vmem:[#allocation34_spill] sm:$0xff]  ;;  %v5043_v12 = vld [vmem:[#allocation37_spill] sm:$0xff] }
 0x288   :  { %1555 = vmatpush.bf16.msra.mxu0 %v5033_v40  ;;  %1568 = vmatpush.bf16.msra.mxu1 %v5034_v26  ;;  %v5044_v40 = vld [vmem:[#allocation40_spill] sm:$0xff]  ;;  %v5045_v26 = vld [vmem:[#allocation43_spill] sm:$0xff] }
 0x289   :  { %1581 = vmatpush.bf16.msra.mxu2 %v5035_v59  ;;  %1595 = vmatpush.bf16.msrb.mxu3 %v5036_v2  ;;  %v5046_v59 = vld [vmem:[#allocation45_spill] sm:$0xff]  ;;  %v5047_v2 = vld [vmem:[#allocation48_spill] sm:$0xff] }
 0x28c   :  { %1556 = vmatpush.bf16.msra.mxu0 %v5037_v42  ;;  %1569 = vmatpush.bf16.msra.mxu1 %v5038_v52  ;;  %v5048_v42 = vld [vmem:[#allocation51_spill] sm:$0xff] }
 0x28d   :  { %1582 = vmatpush.bf16.msra.mxu2 %v5040_v54  ;;  %1596 = vmatpush.bf16.msrb.mxu3 %v5041_v7  ;;  %v5050_v54 = vld [vmem:[#allocation63_spill] sm:$0xff] }
 0x28e   :  { %v278_v48 = vadd.f32 %v5050_v54, %v5049_v58  ;;  %v5051_v7 = vld [vmem:[#allocation23_spill] sm:$0xff] }
 0x290   :  { %1602 = vmatpush.bf16.msrb.mxu0 %v5039_v63 }
 0x294   :  { %1603 = vmatpush.bf16.msrb.mxu0 %v5042_v33  ;;  %v307_v33 = vadd.f32 %v5052_v8, %v5051_v7 }
 0x298   :  { %1604 = vmatpush.bf16.msrb.mxu0 %v5043_v12 }
 0x29c   :  { %1605 = vmatpush.bf16.msrb.mxu0 %v5044_v40 }
 0x2a0   :  { %1606 = vmatpush.bf16.msrb.mxu0 %v5045_v26 }
 0x2a4   :  { %1607 = vmatpush.bf16.msrb.mxu0 %v5046_v59 }
 0x2a8   :  { %1608 = vmatpush.bf16.msrb.mxu0 %v5047_v2 }
 0x2ac   :  { %1609 = vmatpush.bf16.msrb.mxu0 %v5048_v42 }
 0x2cb   :  { %v1306_v52 = vpop.f32.mrf.mxu0  ;;  %v1319_v63 = vpop.f32.mrf.mxu1 }
 0x2cc   :  { %v1307_v12 = vadd.f32 %v1306_v52, %v5053_v45  ;;  %v1320_v40 = vadd.f32 %v1319_v63, %v5054_v46 }
 0x2ce   :  { %v1462_v30 = vadd.f32 %v1307_v12, %v278_v48  ;;  %v1482_v26 = vadd.f32 %v1320_v40, %v307_v33 }
 0x2d0   :  { %v3018_v24 = vmul.f32 -1.442695, %v1462_v30  ;;  %v3019_v59 = vmul.f32 -1.442695, %v1482_v26 }
 0x2d2   :  { %3232 = vpow2.f32 %v3018_v24  ;;  %v1332_v2 = vpop.f32.mrf.mxu2  ;;  %v1345_v36 = vpop.f32.mrf.mxu3  ;;  %v5055_v24 = vld [vmem:[#allocation79_spill] sm:$0xff] }
 0x2d3   :  { %3234 = vpow2.f32 %v3019_v59  ;;  %v1308_v42 = vpop.f32.mrf.mxu0  ;;  %v1321_v17 = vpop.f32.mrf.mxu1  ;;  %v1346_v33 = vadd.f32 %v1345_v36, %v5055_v24  ;;  %v5057_v59 = vld [vmem:[#allocation80_spill] sm:$0xff] }
 0x2d4   :  { %v5056_v17 = vld [vmem:[#allocation81_spill] sm:$0xff] }
 0x2d8   :  { %v3233_v22 = vpop.eup %3232 }
 0x2d9   :  { %v3235_v53 = vpop.eup %3234  ;;  %v1466_v54 = vadd.f32 1.0, %v3233_v22 }
 0x2da   :  { %v1486_v58 = vadd.f32 1.0, %v3235_v53  ;;  %v1334_v10 = vpop.f32.mrf.mxu2  ;;  %v1347_v8 = vpop.f32.mrf.mxu3  ;;  %v5058_v53 = vld [vmem:[#allocation82_spill] sm:$0xff] }
 0x2db   :  { %3236 = vrcp.f32 %v1466_v54  ;;  %v1358_v52 = vpop.f32.mrf.mxu0  ;;  %v4267_v7 = vpop.f32.mrf.mxu1  ;;  %v1478_v14 = vand.u32 2147483648, %v1466_v54  ;;  %v1476_v55 = vand.u32 2147483647, %v1466_v54  ;;  %vm1472_vm9 = vweird.f32 %v1466_v54 }
 0x2dc   :  { %3238 = vrcp.f32 %v1486_v58  ;;  %v1359_v26 = vadd.f32 %v1358_v52, %v5056_v17  ;;  %vm1492_vm13 = vweird.f32 %v1486_v58 }
 0x2dd   :  { %v1479_v52 = vor.u32 1.1754944e-38, %v1478_v14  ;;  %vm1477_vm11 = vcmp.eq.f32.partialorder %v1476_v55, 8.507059e+37 }
 0x2e1   :  { %v3237_v48 = vpop.eup %3236 }
 0x2e2   :  { %v3239_v30 = vpop.eup %3238  ;;  %v1468_v63 = vmul.f32 %v3237_v48, %v1466_v54  ;;  %v1385_v12 = vpop.f32.mrf.mxu2  ;;  %vm1473_vm8 = vweird.f32 %v3237_v48  ;;  %v1496_v54 = vand.u32 2147483647, %v1486_v58 }
 0x2e3   :  { %v1398_v40 = vpop.f32.mrf.mxu3  ;;  %v1488_v42 = vmul.f32 %v3239_v30, %v1486_v58  ;;  %v1386_v22 = vadd.f32 %v1385_v12, %v5057_v59  ;;  %v1360_v8 = vpop.f32.mrf.mxu0  ;;  %vm1474_vm10 = vmor %vm1472_vm9, %vm1473_vm8  ;;  %v5059_v12 = vld [vmem:[#allocation84_spill] sm:$0xff]  ;;  %vm1493_vm12 = vweird.f32 %v3239_v30 }
 0x2e4   :  { %v1399_v10 = vadd.f32 %v1398_v40, %v5058_v53  ;;  %v1373_v46 = vpop.f32.mrf.mxu1  ;;  %v1469_v45 = vsub.f32 1.0, %v1468_v63  ;;  %v1333_v40 = vadd.f32 %v1332_v2, %v5059_v12  ;;  %vm1494_vm14 = vmor %vm1492_vm13, %vm1493_vm12  ;;  %vm1497_vm15 = vcmp.eq.f32.partialorder %v1496_v54, 8.507059e+37 }
 0x2e5   :  { %v1489_v20 = vsub.f32 1.0, %v1488_v42  ;;  %v1415_v18 = vadd.f32 %v1386_v22, %v1346_v33  ;;  %v5060_v42 = vld [vmem:[#allocation46_spill] sm:$0xff] }
 0x2e6   :  { %v1435_v16 = vadd.f32 %v1399_v10, %v1359_v26  ;;  %v1470_v56 = vmul.f32 %v3237_v48, %v1469_v45  ;;  %v5061_v26 = vld [vmem:[#allocation65_spill] sm:$0xff] }
 0x2e7   :  { %v1490_v36 = vmul.f32 %v3239_v30, %v1489_v20  ;;  %v3016_v24 = vmul.f32 -1.442695, %v1415_v18  ;;  %v336_v20 = vadd.f32 %v5061_v26, %v5060_v42  ;;  %v1498_v18 = vand.u32 2147483648, %v1486_v58 }
 0x2e8   :  { %v3017_v31 = vmul.f32 -1.442695, %v1435_v16  ;;  %v1471_v11 = vadd.f32 %v3237_v48, %v1470_v56 }
 0x2e9   :  { %3240 = vpow2.f32 %v3016_v24  ;;  %v1491_v45 = vadd.f32 %v3239_v30, %v1490_v36  ;;  %v1499_v55 = vor.u32 1.1754944e-38, %v1498_v18 }
 0x2ea   :  { %v1475_v8 = vsel %vm1474_vm10, %v3237_v48, %v1471_v11  ;;  %3242 = vpow2.f32 %v3017_v31  ;;  %v1387_v46 = vpop.f32.mrf.mxu2 }
 0x2eb   :  { %v1400_v63 = vpop.f32.mrf.mxu3  ;;  %v1480_v33 = vsel %vm1477_vm11, %v1479_v52, %v1475_v8  ;;  %v1495_v2 = vsel %vm1494_vm14, %v3239_v30, %v1491_v45 }
 0x2ec   :  { %v1502_v16 = vmul.f32 %v1480_v33, %v1333_v40  ;;  %v1411_v56 = vpop.f32.mrf.mxu0  ;;  %v1500_v22 = vsel %vm1497_vm15, %v1499_v55, %v1495_v2 }
 0x2ed   :  { %v1505_v36 = vsub.f32 1.0, %v1500_v22  ;;  %v1507_v8 = vmul.f32 %v1500_v22, %v4180_v60  ;;  %v1412_v2 = vadd.f32 %v1411_v56, %v4062_v49 }
 0x2ee   :  { %v1503_v14 = vadd.f32 %v1502_v16, %v336_v20 }
 0x2ef   :  { %v3241_v24 = vpop.eup %3240 }
 0x2f0   :  { %v3243_v11 = vpop.eup %3242  ;;  %3244 = vtanh.f32 %v1503_v14  ;;  %v1419_v31 = vadd.f32 1.0, %v3241_v24 }
 0x2f1   :  { %v1439_v48 = vadd.f32 1.0, %v3243_v11 }
 0x2f2   :  { %3246 = vrcp.f32 %v1419_v31  ;;  %v1431_v18 = vand.u32 2147483648, %v1419_v31  ;;  %v1429_v54 = vand.u32 2147483647, %v1419_v31  ;;  %vm1425_vm1 = vweird.f32 %v1419_v31 }
 0x2f3   :  { %3248 = vrcp.f32 %v1439_v48  ;;  %vm1445_vm5 = vweird.f32 %v1439_v48 }
 0x2f4   :  { %v1413_v10 = vpop.f32.mrf.mxu0  ;;  %v1432_v24 = vor.u32 1.1754944e-38, %v1431_v18  ;;  %vm1430_vm3 = vcmp.eq.f32.partialorder %v1429_v54, 8.507059e+37  ;;  %v5065_v18 = vld [vmem:[#allocation41_spill] sm:$0xff]  ;;  %v5067_v54 = vld [vmem:[#allocation52_spill] sm:$0xff] }
 0x2f6   :  { %v3245_v52 = vpop.eup %3244 }
 0x2f7   :  { %v1506_v40 = vmul.f32 %v3245_v52, %v1505_v36  ;;  %v1451_v36 = vand.u32 2147483648, %v1439_v48  ;;  %v1449_v52 = vand.u32 2147483647, %v1439_v48 }
 0x2f8   :  { %v3247_v58 = vpop.eup %3246 }
 0x2f9   :  { %v3249_v46 = vpop.eup %3248  ;;  %v4277_v63 = vadd.f32 %v1507_v8, %v1506_v40  ;;  %v1421_v30 = vmul.f32 %v3247_v58, %v1419_v31  ;;  %vm1426_vm0 = vweird.f32 %v3247_v58  ;;  %v1372_v31 = vadd.f32 %v4267_v7, %v4067_v35 }
 0x2fa   :  { %v1441_v33 = vmul.f32 %v3249_v46, %v1439_v48  ;;  %vm1427_vm2 = vmor %vm1425_vm1, %vm1426_vm0  ;;  %vm1446_vm4 = vweird.f32 %v3249_v46  ;;  %v1452_v8 = vor.u32 1.1754944e-38, %v1451_v36  ;;  %vm1450_vm7 = vcmp.eq.f32.partialorder %v1449_v52, 8.507059e+37  ;;  %v5077_v36 = vld [vmem:[#allocation15_spill] sm:$0xff]  ;;  %v5078_v52 = vld [vmem:[#allocation26_spill] sm:$0xff] }
 0x2fb   :  { %v1509_v45 = vpack.c.bf16 %v4277_v63, %v4277_v63  ;;  %v1422_v26 = vsub.f32 1.0, %v1421_v30  ;;  %vm1447_vm6 = vmor %vm1445_vm5, %vm1446_vm4 }
 0x2fc   :  { %v1442_v20 = vsub.f32 1.0, %v1441_v33 }
 0x2fd   :  { %v1423_v16 = vmul.f32 %v3247_v58, %v1422_v26  ;;  %1518 = vmatmul.bf16.vlgmr.msrb.gmra.mxu1 %v1509_v45  ;;  %1531 = vmatmul.bf16.vlgmr.msrb.gmra.mxu2 %v1509_v45 }
 0x2fe   :  { %v1443_v14 = vmul.f32 %v3249_v46, %v1442_v20  ;;  %1544 = vmatmul.bf16.vlgmr.msra.gmra.mxu3 %v1509_v45  ;;  %1557 = vmatmul.bf16.vlgmr.msra.gmra.mxu0 %v1509_v45  ;;  %v5064_v20 = vld [vmem:[#allocation16_spill] sm:$0xff] }
 0x2ff   :  { %v1424_v60 = vadd.f32 %v3247_v58, %v1423_v16  ;;  %1615 = vmatpush.bf16.msrb.mxu1 %v4960_v39  ;;  %1723 = vmatpush.bf16.msrb.mxu2 %v3553_v50  ;;  %v5066_v16 = vld [vmem:[#allocation27_spill] sm:$0xff] }
 0x300   :  { %1736 = vmatpush.bf16.msra.mxu3 %v3669_v9  ;;  %1749 = vmatpush.bf16.msra.mxu0 %v3624_v29  ;;  %v1444_v22 = vadd.f32 %v3249_v46, %v1443_v14  ;;  %v5068_v14 = vld [vmem:[#allocation30_spill] sm:$0xff] }
 0x301   :  { %v1428_v11 = vsel %vm1427_vm2, %v3247_v58, %v1424_v60  ;;  %v5069_v60 = vld [vmem:[#allocation12_spill] sm:$0xff] }
 0x302   :  { %v1433_v55 = vsel %vm1430_vm3, %v1432_v24, %v1428_v11  ;;  %v1448_v40 = vsel %vm1447_vm6, %v3249_v46, %v1444_v22  ;;  %v5070_v24 = vld [vmem:[#allocation19_spill] sm:$0xff]  ;;  %v5072_v11 = vld [vmem:[#allocation33_spill] sm:$0xff] }
 0x303   :  { %v1455_v10 = vmul.f32 %v1433_v55, %v1412_v2  ;;  %1616 = vmatpush.bf16.msrb.mxu1 %v3839_v5  ;;  %1724 = vmatpush.bf16.msrb.mxu2 %v3568_v57  ;;  %v1453_v7 = vsel %vm1450_vm7, %v1452_v8, %v1448_v40  ;;  %v5071_v2 = vld [vmem:[#allocation53_spill] sm:$0xff]  ;;  %v5080_v40 = vld [vmem:[#allocation39_spill] sm:$0xff]  ;;  %v5081_v8 = vld [vmem:[#allocation18_spill] sm:$0xff] }
 0x304   :  { %1737 = vmatpush.bf16.msra.mxu3 %v3687_v23  ;;  %1750 = vmatpush.bf16.msra.mxu0 %v3633_v38  ;;  %v1458_v48 = vsub.f32 1.0, %v1453_v7  ;;  %v1460_v30 = vmul.f32 %v1453_v7, %v4195_v37  ;;  %v5062_v37 = vld [vmem:[#allocation17_spill] sm:$0xff] }
 0x305   :  { %v1456_v56 = vadd.f32 %v1455_v10, %v1372_v31  ;;  %v5073_v55 = vld [vmem:[#allocation13_spill] sm:$0xff]  ;;  %v5075_v31 = vld [vmem:[#allocation54_spill] sm:$0xff]  ;;  %v5076_v10 = vld [vmem:[#allocation36_spill] sm:$0xff] }
 0x306   :  { %v5074_v22 = vld [vmem:[#allocation21_spill] sm:$0xff] }
 0x307   :  { %3250 = vtanh.f32 %v1456_v56  ;;  %1617 = vmatpush.bf16.msrb.mxu1 %v3852_v27  ;;  %1725 = vmatpush.bf16.msrb.mxu2 %v3613_v19  ;;  %v5079_v56 = vld [vmem:[#allocation56_spill] sm:$0xff]  ;;  %v5082_v7 = vld [vmem:[#allocation29_spill] sm:$0xff] }
 0x308   :  { %1738 = vmatpush.bf16.msra.mxu3 %v3710_v44  ;;  %1751 = vmatpush.bf16.msra.mxu0 %v3642_v47 }
 0x30b   :  { %1618 = vmatpush.bf16.msrb.mxu1 %v3857_v41  ;;  %1726 = vmatpush.bf16.msrb.mxu2 %v3622_v25 }
 0x30c   :  { %1739 = vmatpush.bf16.msra.mxu3 %v3732_v15  ;;  %1752 = vmatpush.bf16.msra.mxu0 %v3658_v62 }
 0x30d   :  { %v3251_v58 = vpop.eup %3250  ;;  %1570 = vmatmul.bf16.vlgmr.msra.gmra.mxu1 %v1509_v45  ;;  %1583 = vmatmul.bf16.vlgmr.msra.gmra.mxu2 %v1509_v45  ;;  %v5063_v45 = vld [vmem:[#allocation11_spill] sm:$0xff] }
 0x30e   :  { %v1459_v46 = vmul.f32 %v3251_v58, %v1458_v48  ;;  %v5083_v48 = vld [vmem:[#allocation57_spill] sm:$0xff]  ;;  %v5084_v58 = vld [vmem:[#allocation42_spill] sm:$0xff] }
 0x30f   :  { %1619 = vmatpush.bf16.msrb.mxu1 %v3860_v3  ;;  %1727 = vmatpush.bf16.msrb.mxu2 %v3631_v34 }
 0x310   :  { %v4303_v33 = vadd.f32 %v1460_v30, %v1459_v46  ;;  %1740 = vmatpush.bf16.msra.mxu3 %v3749_v0  ;;  %1753 = vmatpush.bf16.msra.mxu0 %v3672_v13  ;;  %v5085_v46 = vld [vmem:[#allocation20_spill] sm:$0xff] }
 0x311   :  { %v5086_v30 = vld [vmem:[#allocation32_spill] sm:$0xff] }
 0x312   :  { %v1588_v26 = vpack.c.bf16 %v4303_v33, %v4303_v33 }
 0x313   :  { %1620 = vmatpush.bf16.msrb.mxu1 %v3871_v6  ;;  %1728 = vmatpush.bf16.msrb.mxu2 %v3640_v43 }
 0x314   :  { %1597 = vmatmul.bf16.vlgmr.msrb.gmra.mxu3 %v1588_v26  ;;  %1610 = vmatmul.bf16.vlgmr.msrb.gmra.mxu0 %v1588_v26 }
 0x315   :  { %1741 = vmatpush.bf16.msra.mxu3 %v3759_v21  ;;  %1754 = vmatpush.bf16.msra.mxu0 %v3689_v28 }
 0x317   :  { %1621 = vmatpush.bf16.msrb.mxu1 %v3881_v1  ;;  %1729 = vmatpush.bf16.msrb.mxu2 %v4920_v4 }
 0x319   :  { %1742 = vmatpush.bf16.msra.mxu3 %v3771_v61  ;;  %1755 = vmatpush.bf16.msra.mxu0 %v3712_v51 }
 0x31b   :  { %1622 = vmatpush.bf16.msrb.mxu1 %v3889_v32  ;;  %1730 = vmatpush.bf16.msrb.mxu2 %v5062_v37 }
 0x31d   :  { %1743 = vmatpush.bf16.msra.mxu3 %v5065_v18  ;;  %1756 = vmatpush.bf16.msra.mxu0 %v5066_v16  ;;  %v5111_v18 = vld [vmem:[#allocation79_spill] sm:$0xff] }
 0x31e   :  { %1623 = vmatmul.bf16.vlgmr.msrb.gmra.mxu1 %v1588_v26  ;;  %v5087_v26 = vld [vmem:[#allocation58_spill] sm:$0xff] }
 0x31f   :  { %1762 = vmatpush.bf16.msra.mxu1 %v5063_v45  ;;  %1775 = vmatpush.bf16.msra.mxu2 %v5064_v20 }
 0x321   :  { %1788 = vmatpush.bf16.msrb.mxu3 %v5067_v54  ;;  %1802 = vmatpush.bf16.msrb.mxu0 %v5068_v14 }
 0x323   :  { %1763 = vmatpush.bf16.msra.mxu1 %v5069_v60  ;;  %1776 = vmatpush.bf16.msra.mxu2 %v5070_v24 }
 0x325   :  { %1789 = vmatpush.bf16.msrb.mxu3 %v5071_v2  ;;  %1803 = vmatpush.bf16.msrb.mxu0 %v5072_v11  ;;  %v5108_v11 = vld [vmem:[#allocation23_spill] sm:$0xff] }
 0x327   :  { %1764 = vmatpush.bf16.msra.mxu1 %v5073_v55  ;;  %1777 = vmatpush.bf16.msra.mxu2 %v5074_v22 }
 0x329   :  { %1790 = vmatpush.bf16.msrb.mxu3 %v5075_v31  ;;  %1804 = vmatpush.bf16.msrb.mxu0 %v5076_v10  ;;  %v5106_v10 = vld [vmem:[#allocation66_spill] sm:$0xff] }
 0x32a   :  { %v5107_v31 = vld [vmem:[#allocation78_spill] sm:$0xff] }
 0x32b   :  { %1765 = vmatpush.bf16.msra.mxu1 %v5077_v36  ;;  %1778 = vmatpush.bf16.msra.mxu2 %v5078_v52  ;;  %v5088_v36 = vld [vmem:[#allocation44_spill] sm:$0xff]  ;;  %v5089_v52 = vld [vmem:[#allocation25_spill] sm:$0xff] }
 0x32d   :  { %1791 = vmatpush.bf16.msrb.mxu3 %v5079_v56  ;;  %1805 = vmatpush.bf16.msrb.mxu0 %v5080_v40  ;;  %v5090_v56 = vld [vmem:[#allocation35_spill] sm:$0xff] }
 0x32e   :  { %v5091_v40 = vld [vmem:[#allocation59_spill] sm:$0xff] }
 0x32f   :  { %1766 = vmatpush.bf16.msra.mxu1 %v5081_v8  ;;  %1779 = vmatpush.bf16.msra.mxu2 %v5082_v7  ;;  %v5092_v8 = vld [vmem:[#allocation47_spill] sm:$0xff]  ;;  %v5093_v7 = vld [vmem:[#allocation28_spill] sm:$0xff] }
 0x331   :  { %1792 = vmatpush.bf16.msrb.mxu3 %v5083_v48  ;;  %1806 = vmatpush.bf16.msrb.mxu0 %v5084_v58  ;;  %v5094_v48 = vld [vmem:[#allocation38_spill] sm:$0xff]  ;;  %v5095_v58 = vld [vmem:[#allocation31_spill] sm:$0xff] }
 0x333   :  { %1767 = vmatpush.bf16.msra.mxu1 %v5085_v46  ;;  %1780 = vmatpush.bf16.msra.mxu2 %v5086_v30  ;;  %v5096_v46 = vld [vmem:[#allocation60_spill] sm:$0xff]  ;;  %v5097_v30 = vld [vmem:[#allocation50_spill] sm:$0xff] }
 0x335   :  { %1793 = vmatpush.bf16.msrb.mxu3 %v5087_v26  ;;  %1807 = vmatpush.bf16.msrb.mxu0 %v5088_v36  ;;  %v5098_v26 = vld [vmem:[#allocation34_spill] sm:$0xff]  ;;  %v5099_v36 = vld [vmem:[#allocation37_spill] sm:$0xff] }
 0x337   :  { %1768 = vmatpush.bf16.msra.mxu1 %v5089_v52  ;;  %1781 = vmatpush.bf16.msra.mxu2 %v5090_v56  ;;  %v5100_v52 = vld [vmem:[#allocation40_spill] sm:$0xff]  ;;  %v5101_v56 = vld [vmem:[#allocation43_spill] sm:$0xff] }
 0x339   :  { %1794 = vmatpush.bf16.msrb.mxu3 %v5091_v40  ;;  %1808 = vmatpush.bf16.msrb.mxu0 %v5092_v8  ;;  %v5102_v40 = vld [vmem:[#allocation45_spill] sm:$0xff]  ;;  %v5103_v8 = vld [vmem:[#allocation48_spill] sm:$0xff] }
 0x33b   :  { %1769 = vmatpush.bf16.msra.mxu1 %v5093_v7  ;;  %1782 = vmatpush.bf16.msra.mxu2 %v5094_v48  ;;  %v5104_v7 = vld [vmem:[#allocation51_spill] sm:$0xff] }
 0x33d   :  { %1795 = vmatpush.bf16.msrb.mxu3 %v5096_v46  ;;  %1809 = vmatpush.bf16.msrb.mxu0 %v5097_v30 }
 0x33f   :  { %1815 = vmatpush.bf16.msrb.mxu1 %v5095_v58  ;;  %v5105_v58 = vld [vmem:[#allocation22_spill] sm:$0xff] }
 0x340   :  { %v281_v46 = vadd.f32 %v5106_v10, %v5105_v58 }
 0x343   :  { %1816 = vmatpush.bf16.msrb.mxu1 %v5098_v26 }
 0x347   :  { %1817 = vmatpush.bf16.msrb.mxu1 %v5099_v36 }
 0x34b   :  { %1818 = vmatpush.bf16.msrb.mxu1 %v5100_v52  ;;  %v5109_v52 = vld [vmem:[#allocation67_spill] sm:$0xff] }
 0x34c   :  { %v310_v2 = vadd.f32 %v5109_v52, %v5108_v11 }
 0x34f   :  { %1819 = vmatpush.bf16.msrb.mxu1 %v5101_v56  ;;  %v5110_v56 = vld [vmem:[#allocation83_spill] sm:$0xff] }
 0x353   :  { %1820 = vmatpush.bf16.msrb.mxu1 %v5102_v40 }
 0x357   :  { %1821 = vmatpush.bf16.msrb.mxu1 %v5103_v8 }
 0x35b   :  { %1822 = vmatpush.bf16.msrb.mxu1 %v5104_v7 }
 0x37a   :  { %v1519_v48 = vpop.f32.mrf.mxu1 }
 0x37b   :  { %v1520_v30 = vadd.f32 %v1519_v48, %v5107_v31  ;;  %v1558_v22 = vpop.f32.mrf.mxu0 }
 0x37c   :  { %v1559_v20 = vadd.f32 %v1558_v22, %v5111_v18 }
 0x37d   :  { %v1675_v26 = vadd.f32 %v1520_v30, %v281_v46 }
 0x37f   :  { %v3022_v55 = vmul.f32 -1.442695, %v1675_v26 }
 0x380   :  { %v1532_v36 = vpop.f32.mrf.mxu2 }
 0x381   :  { %3252 = vpow2.f32 %v3022_v55  ;;  %v1533_v40 = vadd.f32 %v1532_v36, %v5110_v56  ;;  %v1545_v24 = vpop.f32.mrf.mxu3 }
 0x382   :  { %v1521_v8 = vpop.f32.mrf.mxu1 }
 0x383   :  { %v1695_v60 = vadd.f32 %v1533_v40, %v310_v2  ;;  %v1560_v7 = vpop.f32.mrf.mxu0 }
 0x385   :  { %v3023_v14 = vmul.f32 -1.442695, %v1695_v60 }
 0x387   :  { %v3253_v54 = vpop.eup %3252  ;;  %3254 = vpow2.f32 %v3023_v14 }
 0x388   :  { %v1679_v10 = vadd.f32 1.0, %v3253_v54  ;;  %v1534_v58 = vpop.f32.mrf.mxu2 }
 0x389   :  { %v1547_v48 = vpop.f32.mrf.mxu3 }
 0x38a   :  { %3256 = vrcp.f32 %v1679_v10  ;;  %v1571_v46 = vpop.f32.mrf.mxu1  ;;  %v1691_v14 = vand.u32 2147483648, %v1679_v10  ;;  %v1689_v58 = vand.u32 2147483647, %v1679_v10  ;;  %vm1685_vm9 = vweird.f32 %v1679_v10 }
 0x38b   :  { %v1572_v8 = vadd.f32 %v1571_v46, %v5056_v17 }
 0x38c   :  { %v1692_v45 = vor.u32 1.1754944e-38, %v1691_v14  ;;  %vm1690_vm11 = vcmp.eq.f32.partialorder %v1689_v58, 8.507059e+37 }
 0x38d   :  { %v3255_v30 = vpop.eup %3254 }
 0x38e   :  { %v1699_v26 = vadd.f32 1.0, %v3255_v30 }
 0x390   :  { %v3257_v31 = vpop.eup %3256  ;;  %3258 = vrcp.f32 %v1699_v26  ;;  %v4367_v52 = vpop.f32.mrf.mxu2  ;;  %v1711_v22 = vand.u32 2147483648, %v1699_v26  ;;  %vm1705_vm13 = vweird.f32 %v1699_v26 }
 0x391   :  { %v1681_v55 = vmul.f32 %v3257_v31, %v1679_v10  ;;  %v1611_v36 = vpop.f32.mrf.mxu0  ;;  %vm1686_vm8 = vweird.f32 %v3257_v31 }
 0x392   :  { %v1612_v2 = vadd.f32 %v1611_v36, %v5058_v53  ;;  %v1573_v60 = vpop.f32.mrf.mxu1  ;;  %vm1687_vm10 = vmor %vm1685_vm9, %vm1686_vm8 }
 0x393   :  { %v1682_v40 = vsub.f32 1.0, %v1681_v55 }
 0x394   :  { %v1648_v54 = vadd.f32 %v1612_v2, %v1572_v8  ;;  %v1546_v8 = vadd.f32 %v1545_v24, %v5059_v12  ;;  %v1712_v24 = vor.u32 1.1754944e-38, %v1711_v22 }
 0x395   :  { %v1683_v7 = vmul.f32 %v3257_v31, %v1682_v40  ;;  %v5112_v40 = vld [vmem:[#allocation68_spill] sm:$0xff] }
 0x396   :  { %v3259_v48 = vpop.eup %3258  ;;  %v3021_v56 = vmul.f32 -1.442695, %v1648_v54  ;;  %v339_v54 = vadd.f32 %v5112_v40, %v5060_v42 }
 0x397   :  { %v1701_v30 = vmul.f32 %v3259_v48, %v1699_v26  ;;  %v1684_v11 = vadd.f32 %v3257_v31, %v1683_v7  ;;  %v1598_v16 = vpop.f32.mrf.mxu3  ;;  %vm1706_vm12 = vweird.f32 %v3259_v48 }
 0x398   :  { %3260 = vpow2.f32 %v3021_v56  ;;  %v1599_v46 = vadd.f32 %v1598_v16, %v5057_v59  ;;  %v1586_v36 = vpop.f32.mrf.mxu2  ;;  %v1709_v56 = vand.u32 2147483647, %v1699_v26  ;;  %vm1707_vm14 = vmor %vm1705_vm13, %vm1706_vm12 }
 0x399   :  { %v1702_v55 = vsub.f32 1.0, %v1701_v30  ;;  %v1688_v2 = vsel %vm1687_vm10, %v3257_v31, %v1684_v11  ;;  %v1613_v60 = vpop.f32.mrf.mxu0 }
 0x39a   :  { %v1693_v7 = vsel %vm1690_vm11, %v1692_v45, %v1688_v2  ;;  %v1628_v10 = vadd.f32 %v1599_v46, %v1559_v20  ;;  %vm1710_vm15 = vcmp.eq.f32.partialorder %v1709_v56, 8.507059e+37 }
 0x39b   :  { %v1703_v53 = vmul.f32 %v3259_v48, %v1702_v55  ;;  %v1715_v17 = vmul.f32 %v1693_v7, %v1546_v8  ;;  %v1624_v14 = vpop.f32.mrf.mxu1 }
 0x39c   :  { %v3020_v18 = vmul.f32 -1.442695, %v1628_v10 }
 0x39d   :  { %v1704_v16 = vadd.f32 %v3259_v48, %v1703_v53  ;;  %v1716_v30 = vadd.f32 %v1715_v17, %v339_v54 }
 0x39e   :  { %v3261_v36 = vpop.eup %3260  ;;  %3262 = vpow2.f32 %v3020_v18 }
 0x39f   :  { %v1708_v11 = vsel %vm1707_vm14, %v3259_v48, %v1704_v16  ;;  %3264 = vtanh.f32 %v1716_v30  ;;  %v4376_v31 = vadd.f32 1.0, %v3261_v36  ;;  %v1600_v45 = vpop.f32.mrf.mxu3 }
 0x3a0   :  { %v1713_v20 = vsel %vm1710_vm15, %v1712_v24, %v1708_v11  ;;  %v1625_v24 = vadd.f32 %v1624_v14, %v4062_v49 }
 0x3a1   :  { %3266 = vrcp.f32 %v4376_v31  ;;  %v1718_v55 = vsub.f32 1.0, %v1713_v20  ;;  %v1720_v17 = vmul.f32 %v1713_v20, %v4277_v63  ;;  %vm1658_vm5 = vweird.f32 %v4376_v31 }
 0x3a2   :  { %v1662_v14 = vand.u32 2147483647, %v4376_v31 }
 0x3a3   :  { %v1626_v58 = vpop.f32.mrf.mxu1 }
 0x3a4   :  { %v3263_v46 = vpop.eup %3262  ;;  %v1585_v58 = vadd.f32 %v4367_v52, %v4067_v35  ;;  %vm1663_vm7 = vcmp.eq.f32.partialorder %v1662_v14, 8.507059e+37  ;;  %v5130_v14 = vld [vmem:[#allocation39_spill] sm:$0xff] }
 0x3a5   :  { %v3265_v8 = vpop.eup %3264  ;;  %v1632_v26 = vadd.f32 1.0, %v3263_v46  ;;  %v1664_v46 = vand.u32 2147483648, %v4376_v31 }
 0x3a6   :  { %v1719_v53 = vmul.f32 %v3265_v8, %v1718_v55 }
 0x3a7   :  { %3268 = vrcp.f32 %v1632_v26  ;;  %v3267_v18 = vpop.eup %3266  ;;  %v1644_v10 = vand.u32 2147483648, %v1632_v26  ;;  %v1642_v56 = vand.u32 2147483647, %v1632_v26  ;;  %vm1638_vm1 = vweird.f32 %v1632_v26 }
 0x3a8   :  { %v4380_v2 = vadd.f32 %v1720_v17, %v1719_v53  ;;  %v1654_v60 = vmul.f32 %v3267_v18, %v4376_v31  ;;  %vm1659_vm4 = vweird.f32 %v3267_v18  ;;  %v1665_v53 = vor.u32 1.1754944e-38, %v1664_v46  ;;  %v5128_v46 = vld [vmem:[#allocation26_spill] sm:$0xff] }
 0x3a9   :  { %v1645_v36 = vor.u32 1.1754944e-38, %v1644_v10  ;;  %vm1643_vm3 = vcmp.eq.f32.partialorder %v1642_v56, 8.507059e+37  ;;  %vm1660_vm6 = vmor %vm1658_vm5, %vm1659_vm4  ;;  %v5117_v10 = vld [vmem:[#allocation52_spill] sm:$0xff] }
 0x3aa   :  { %v1722_v48 = vpack.c.bf16 %v4380_v2, %v4380_v2  ;;  %v1655_v63 = vsub.f32 1.0, %v1654_v60  ;;  %v5119_v56 = vld [vmem:[#allocation12_spill] sm:$0xff] }
 0x3ac   :  { %1731 = vmatmul.bf16.vlgmr.msrb.gmra.mxu2 %v1722_v48  ;;  %1744 = vmatmul.bf16.vlgmr.msra.gmra.mxu3 %v1722_v48  ;;  %v1656_v16 = vmul.f32 %v3267_v18, %v1655_v63  ;;  %v5115_v63 = vld [vmem:[#allocation41_spill] sm:$0xff] }
 0x3ad   :  { %v3269_v40 = vpop.eup %3268  ;;  %1757 = vmatmul.bf16.vlgmr.msra.gmra.mxu0 %v1722_v48  ;;  %1770 = vmatmul.bf16.vlgmr.msra.gmra.mxu1 %v1722_v48 }
 0x3ae   :  { %v1634_v54 = vmul.f32 %v3269_v40, %v1632_v26  ;;  %1828 = vmatpush.bf16.msrb.mxu2 %v4960_v39  ;;  %1936 = vmatpush.bf16.msra.mxu3 %v3553_v50  ;;  %vm1639_vm0 = vweird.f32 %v3269_v40  ;;  %v1657_v20 = vadd.f32 %v3267_v18, %v1656_v16  ;;  %v5120_v16 = vld [vmem:[#allocation19_spill] sm:$0xff] }
 0x3af   :  { %1949 = vmatpush.bf16.msra.mxu0 %v3669_v9  ;;  %1962 = vmatpush.bf16.msra.mxu1 %v3624_v29  ;;  %vm1640_vm2 = vmor %vm1638_vm1, %vm1639_vm0 }
 0x3b0   :  { %v1635_v7 = vsub.f32 1.0, %v1634_v54  ;;  %v1661_v26 = vsel %vm1660_vm6, %v3267_v18, %v1657_v20  ;;  %v5114_v54 = vld [vmem:[#allocation16_spill] sm:$0xff] }
 0x3b1   :  { %v1666_v52 = vsel %vm1663_vm7, %v1665_v53, %v1661_v26  ;;  %v5126_v20 = vld [vmem:[#allocation36_spill] sm:$0xff]  ;;  %v5132_v26 = vld [vmem:[#allocation29_spill] sm:$0xff] }
 0x3b2   :  { %v1636_v22 = vmul.f32 %v3269_v40, %v1635_v7  ;;  %1829 = vmatpush.bf16.msrb.mxu2 %v3839_v5  ;;  %1937 = vmatpush.bf16.msra.mxu3 %v3568_v57  ;;  %v1671_v31 = vsub.f32 1.0, %v1666_v52  ;;  %v1673_v60 = vmul.f32 %v1666_v52, %v4303_v33  ;;  %v5113_v33 = vld [vmem:[#allocation11_spill] sm:$0xff]  ;;  %v5133_v53 = vld [vmem:[#allocation57_spill] sm:$0xff]  ;;  %v5134_v52 = vld [vmem:[#allocation42_spill] sm:$0xff] }
 0x3b3   :  { %1950 = vmatpush.bf16.msra.mxu0 %v3687_v23  ;;  %1963 = vmatpush.bf16.msra.mxu1 %v3633_v38  ;;  %v5116_v7 = vld [vmem:[#allocation27_spill] sm:$0xff] }
 0x3b4   :  { %v1637_v30 = vadd.f32 %v3269_v40, %v1636_v22  ;;  %v5118_v22 = vld [vmem:[#allocation30_spill] sm:$0xff] }
 0x3b6   :  { %v1641_v11 = vsel %vm1640_vm2, %v3269_v40, %v1637_v30  ;;  %1830 = vmatpush.bf16.msrb.mxu2 %v3852_v27  ;;  %1938 = vmatpush.bf16.msra.mxu3 %v3613_v19  ;;  %v5121_v30 = vld [vmem:[#allocation53_spill] sm:$0xff] }
 0x3b7   :  { %v1646_v45 = vsel %vm1643_vm3, %v1645_v36, %v1641_v11  ;;  %1951 = vmatpush.bf16.msra.mxu0 %v3710_v44  ;;  %1964 = vmatpush.bf16.msra.mxu1 %v3642_v47  ;;  %v5122_v36 = vld [vmem:[#allocation33_spill] sm:$0xff] }
 0x3b8   :  { %v1668_v55 = vmul.f32 %v1646_v45, %v1625_v24  ;;  %v5123_v24 = vld [vmem:[#allocation13_spill] sm:$0xff]  ;;  %v5125_v45 = vld [vmem:[#allocation54_spill] sm:$0xff] }
 0x3b9   :  { %v5124_v11 = vld [vmem:[#allocation21_spill] sm:$0xff] }
 0x3ba   :  { %v1669_v8 = vadd.f32 %v1668_v55, %v1585_v58  ;;  %1831 = vmatpush.bf16.msrb.mxu2 %v3857_v41  ;;  %1939 = vmatpush.bf16.msra.mxu3 %v3622_v25  ;;  %v5127_v58 = vld [vmem:[#allocation15_spill] sm:$0xff]  ;;  %v5129_v55 = vld [vmem:[#allocation56_spill] sm:$0xff] }
 0x3bb   :  { %1952 = vmatpush.bf16.msra.mxu0 %v3732_v15  ;;  %1965 = vmatpush.bf16.msra.mxu1 %v3658_v62 }
 0x3bc   :  { %3270 = vtanh.f32 %v1669_v8  ;;  %1783 = vmatmul.bf16.vlgmr.msra.gmra.mxu2 %v1722_v48  ;;  %1796 = vmatmul.bf16.vlgmr.msrb.gmra.mxu3 %v1722_v48  ;;  %v5131_v8 = vld [vmem:[#allocation18_spill] sm:$0xff] }
 0x3be   :  { %1832 = vmatpush.bf16.msrb.mxu2 %v3860_v3  ;;  %1940 = vmatpush.bf16.msra.mxu3 %v3631_v34 }
 0x3bf   :  { %1953 = vmatpush.bf16.msra.mxu0 %v3749_v0  ;;  %1966 = vmatpush.bf16.msra.mxu1 %v3672_v13 }
 0x3c2   :  { %v3271_v17 = vpop.eup %3270  ;;  %1833 = vmatpush.bf16.msrb.mxu2 %v3871_v6  ;;  %1941 = vmatpush.bf16.msra.mxu3 %v3640_v43 }
 0x3c3   :  { %v1672_v18 = vmul.f32 %v3271_v17, %v1671_v31  ;;  %1954 = vmatpush.bf16.msra.mxu0 %v3759_v21  ;;  %1967 = vmatpush.bf16.msra.mxu1 %v3689_v28  ;;  %v5135_v31 = vld [vmem:[#allocation20_spill] sm:$0xff] }
 0x3c4   :  { %v5136_v17 = vld [vmem:[#allocation32_spill] sm:$0xff] }
 0x3c5   :  { %v4416_v48 = vadd.f32 %v1673_v60, %v1672_v18  ;;  %v5137_v18 = vld [vmem:[#allocation58_spill] sm:$0xff]  ;;  %v5138_v60 = vld [vmem:[#allocation44_spill] sm:$0xff] }
 0x3c6   :  { %1834 = vmatpush.bf16.msrb.mxu2 %v3881_v1  ;;  %1942 = vmatpush.bf16.msra.mxu3 %v4920_v4 }
 0x3c7   :  { %v1801_v40 = vpack.c.bf16 %v4416_v48, %v4416_v48  ;;  %1955 = vmatpush.bf16.msra.mxu0 %v3771_v61  ;;  %1968 = vmatpush.bf16.msra.mxu1 %v3712_v51 }
 0x3c9   :  { %1810 = vmatmul.bf16.vlgmr.msrb.gmra.mxu0 %v1801_v40  ;;  %1823 = vmatmul.bf16.vlgmr.msrb.gmra.mxu1 %v1801_v40 }
 0x3ca   :  { %1835 = vmatpush.bf16.msrb.mxu2 %v3889_v32  ;;  %1943 = vmatpush.bf16.msra.mxu3 %v5062_v37 }
 0x3cb   :  { %1956 = vmatpush.bf16.msra.mxu0 %v5115_v63  ;;  %1969 = vmatpush.bf16.msra.mxu1 %v5116_v7 }
 0x3cd   :  { %1836 = vmatmul.bf16.vlgmr.msrb.gmra.mxu2 %v1801_v40  ;;  %v5139_v40 = vld [vmem:[#allocation25_spill] sm:$0xff] }
 0x3ce   :  { %1975 = vmatpush.bf16.msra.mxu2 %v5113_v33  ;;  %1988 = vmatpush.bf16.msrb.mxu3 %v5114_v54 }
 0x3cf   :  { %2001 = vmatpush.bf16.msrb.mxu0 %v5117_v10  ;;  %2015 = vmatpush.bf16.msrb.mxu1 %v5118_v22 }
 0x3d2   :  { %1976 = vmatpush.bf16.msra.mxu2 %v5119_v56  ;;  %1989 = vmatpush.bf16.msrb.mxu3 %v5120_v16 }
 0x3d3   :  { %2002 = vmatpush.bf16.msrb.mxu0 %v5121_v30  ;;  %2016 = vmatpush.bf16.msrb.mxu1 %v5122_v36 }
 0x3d6   :  { %1977 = vmatpush.bf16.msra.mxu2 %v5123_v24  ;;  %1990 = vmatpush.bf16.msrb.mxu3 %v5124_v11  ;;  %v5159_v11 = vld [vmem:[#allocation78_spill] sm:$0xff]  ;;  %v5160_v24 = vld [vmem:[#allocation83_spill] sm:$0xff] }
 0x3d7   :  { %2003 = vmatpush.bf16.msrb.mxu0 %v5125_v45  ;;  %2017 = vmatpush.bf16.msrb.mxu1 %v5126_v20  ;;  %v5158_v45 = vld [vmem:[#allocation70_spill] sm:$0xff] }
 0x3da   :  { %1978 = vmatpush.bf16.msra.mxu2 %v5127_v58  ;;  %1991 = vmatpush.bf16.msrb.mxu3 %v5128_v46  ;;  %v5155_v58 = vld [vmem:[#allocation22_spill] sm:$0xff] }
 0x3db   :  { %2004 = vmatpush.bf16.msrb.mxu0 %v5129_v55  ;;  %2018 = vmatpush.bf16.msrb.mxu1 %v5130_v14  ;;  %v5140_v55 = vld [vmem:[#allocation35_spill] sm:$0xff] }
 0x3dc   :  { %v5141_v14 = vld [vmem:[#allocation59_spill] sm:$0xff] }
 0x3de   :  { %1979 = vmatpush.bf16.msra.mxu2 %v5131_v8  ;;  %1992 = vmatpush.bf16.msrb.mxu3 %v5132_v26  ;;  %v5142_v8 = vld [vmem:[#allocation47_spill] sm:$0xff]  ;;  %v5143_v26 = vld [vmem:[#allocation28_spill] sm:$0xff] }
 0x3df   :  { %2005 = vmatpush.bf16.msrb.mxu0 %v5133_v53  ;;  %2019 = vmatpush.bf16.msrb.mxu1 %v5134_v52  ;;  %v5144_v53 = vld [vmem:[#allocation38_spill] sm:$0xff]  ;;  %v5145_v52 = vld [vmem:[#allocation31_spill] sm:$0xff] }
 0x3e2   :  { %1980 = vmatpush.bf16.msra.mxu2 %v5135_v31  ;;  %1993 = vmatpush.bf16.msrb.mxu3 %v5136_v17  ;;  %v5146_v31 = vld [vmem:[#allocation60_spill] sm:$0xff]  ;;  %v5147_v17 = vld [vmem:[#allocation50_spill] sm:$0xff] }
 0x3e3   :  { %2006 = vmatpush.bf16.msrb.mxu0 %v5137_v18  ;;  %2020 = vmatpush.bf16.msrb.mxu1 %v5138_v60  ;;  %v5148_v18 = vld [vmem:[#allocation34_spill] sm:$0xff]  ;;  %v5149_v60 = vld [vmem:[#allocation37_spill] sm:$0xff] }
 0x3e6   :  { %1981 = vmatpush.bf16.msra.mxu2 %v5139_v40  ;;  %1994 = vmatpush.bf16.msrb.mxu3 %v5140_v55  ;;  %v5150_v40 = vld [vmem:[#allocation40_spill] sm:$0xff]  ;;  %v5151_v55 = vld [vmem:[#allocation43_spill] sm:$0xff] }
 0x3e7   :  { %2007 = vmatpush.bf16.msrb.mxu0 %v5141_v14  ;;  %2021 = vmatpush.bf16.msrb.mxu1 %v5142_v8  ;;  %v5152_v14 = vld [vmem:[#allocation45_spill] sm:$0xff]  ;;  %v5153_v8 = vld [vmem:[#allocation48_spill] sm:$0xff] }
 0x3ea   :  { %1982 = vmatpush.bf16.msra.mxu2 %v5143_v26  ;;  %1995 = vmatpush.bf16.msrb.mxu3 %v5144_v53  ;;  %v5154_v26 = vld [vmem:[#allocation51_spill] sm:$0xff] }
 0x3eb   :  { %2008 = vmatpush.bf16.msrb.mxu0 %v5146_v31  ;;  %2022 = vmatpush.bf16.msrb.mxu1 %v5147_v17  ;;  %v5156_v17 = vld [vmem:[#allocation69_spill] sm:$0xff] }
 0x3ec   :  { %v283_v20 = vadd.f32 %v5156_v17, %v5155_v58 }
 0x3ee   :  { %2028 = vmatpush.bf16.msrb.mxu2 %v5145_v52 }
 0x3f2   :  { %2029 = vmatpush.bf16.msrb.mxu2 %v5148_v18  ;;  %v5157_v18 = vld [vmem:[#allocation23_spill] sm:$0xff] }
 0x3f6   :  { %2030 = vmatpush.bf16.msrb.mxu2 %v5149_v60  ;;  %v312_v60 = vadd.f32 %v5158_v45, %v5157_v18 }
 0x3fa   :  { %2031 = vmatpush.bf16.msrb.mxu2 %v5150_v40 }
 0x3fe   :  { %2032 = vmatpush.bf16.msrb.mxu2 %v5151_v55 }
 0x402   :  { %2033 = vmatpush.bf16.msrb.mxu2 %v5152_v14 }
 0x406   :  { %2034 = vmatpush.bf16.msrb.mxu2 %v5153_v8 }
 0x40a   :  { %2035 = vmatpush.bf16.msrb.mxu2 %v5154_v26 }
 0x42a   :  { %v1758_v53 = vpop.f32.mrf.mxu0  ;;  %v1771_v52 = vpop.f32.mrf.mxu1 }
 0x42f   :  { %v1732_v46 = vpop.f32.mrf.mxu2  ;;  %v1745_v31 = vpop.f32.mrf.mxu3 }
 0x430   :  { %v1733_v40 = vadd.f32 %v1732_v46, %v5159_v11  ;;  %v1746_v55 = vadd.f32 %v1745_v31, %v5160_v24  ;;  %v5163_v31 = vld [vmem:[#allocation82_spill] sm:$0xff] }
 0x432   :  { %v1888_v36 = vadd.f32 %v1733_v40, %v283_v20  ;;  %v1908_v14 = vadd.f32 %v1746_v55, %v312_v60  ;;  %v1760_v30 = vpop.f32.mrf.mxu0  ;;  %v1773_v8 = vpop.f32.mrf.mxu1  ;;  %v5161_v55 = vld [vmem:[#allocation79_spill] sm:$0xff] }
 0x433   :  { %v1772_v30 = vadd.f32 %v1771_v52, %v5161_v55 }
 0x434   :  { %v3026_v16 = vmul.f32 -1.442695, %v1888_v36  ;;  %v3027_v26 = vmul.f32 -1.442695, %v1908_v14 }
 0x436   :  { %3272 = vpow2.f32 %v3026_v16 }
 0x437   :  { %3274 = vpow2.f32 %v3027_v26  ;;  %v1734_v56 = vpop.f32.mrf.mxu2  ;;  %v1747_v22 = vpop.f32.mrf.mxu3  ;;  %v5162_v26 = vld [vmem:[#allocation81_spill] sm:$0xff] }
 0x43c   :  { %v3273_v10 = vpop.eup %3272 }
 0x43d   :  { %v3275_v7 = vpop.eup %3274  ;;  %v1892_v17 = vadd.f32 1.0, %v3273_v10 }
 0x43e   :  { %v1912_v58 = vadd.f32 1.0, %v3275_v7 }
 0x43f   :  { %3276 = vrcp.f32 %v1892_v17  ;;  %v1784_v45 = vpop.f32.mrf.mxu2  ;;  %v4474_v18 = vpop.f32.mrf.mxu3  ;;  %v1904_v11 = vand.u32 2147483648, %v1892_v17  ;;  %v1902_v52 = vand.u32 2147483647, %v1892_v17  ;;  %vm1898_vm9 = vweird.f32 %v1892_v17 }
 0x440   :  { %3278 = vrcp.f32 %v1912_v58  ;;  %v1785_v56 = vadd.f32 %v1784_v45, %v5162_v26  ;;  %vm1918_vm13 = vweird.f32 %v1912_v58 }
 0x441   :  { %v1905_v45 = vor.u32 1.1754944e-38, %v1904_v11  ;;  %vm1903_vm11 = vcmp.eq.f32.partialorder %v1902_v52, 8.507059e+37 }
 0x445   :  { %v3277_v46 = vpop.eup %3276 }
 0x446   :  { %v3279_v20 = vpop.eup %3278  ;;  %v1894_v8 = vmul.f32 %v3277_v46, %v1892_v17  ;;  %v1811_v36 = vpop.f32.mrf.mxu0  ;;  %vm1899_vm8 = vweird.f32 %v3277_v46  ;;  %v1922_v17 = vand.u32 2147483647, %v1912_v58 }
 0x447   :  { %v1824_v14 = vpop.f32.mrf.mxu1  ;;  %v1914_v16 = vmul.f32 %v3279_v20, %v1912_v58  ;;  %v1812_v22 = vadd.f32 %v1811_v36, %v5057_v59  ;;  %v1786_v7 = vpop.f32.mrf.mxu2  ;;  %vm1900_vm10 = vmor %vm1898_vm9, %vm1899_vm8  ;;  %v1759_v36 = vadd.f32 %v1758_v53, %v5059_v12  ;;  %vm1919_vm12 = vweird.f32 %v3279_v20 }
 0x448   :  { %v1825_v10 = vadd.f32 %v1824_v14, %v5163_v31  ;;  %v1799_v60 = vpop.f32.mrf.mxu3  ;;  %v1895_v40 = vsub.f32 1.0, %v1894_v8  ;;  %vm1920_vm14 = vmor %vm1918_vm13, %vm1919_vm12  ;;  %vm1923_vm15 = vcmp.eq.f32.partialorder %v1922_v17, 8.507059e+37 }
 0x449   :  { %v1915_v24 = vsub.f32 1.0, %v1914_v16  ;;  %v1841_v63 = vadd.f32 %v1812_v22, %v1772_v30  ;;  %v5164_v22 = vld [vmem:[#allocation71_spill] sm:$0xff] }
 0x44a   :  { %v1861_v54 = vadd.f32 %v1825_v10, %v1785_v56  ;;  %v1896_v33 = vmul.f32 %v3277_v46, %v1895_v40 }
 0x44b   :  { %v1916_v55 = vmul.f32 %v3279_v20, %v1915_v24  ;;  %v3024_v37 = vmul.f32 -1.442695, %v1841_v63  ;;  %v341_v24 = vadd.f32 %v5164_v22, %v5060_v42 }
 0x44c   :  { %v3025_v32 = vmul.f32 -1.442695, %v1861_v54  ;;  %v1897_v51 = vadd.f32 %v3277_v46, %v1896_v33  ;;  %v1924_v54 = vand.u32 2147483648, %v1912_v58 }
 0x44d   :  { %3280 = vpow2.f32 %v3024_v37  ;;  %v1917_v56 = vadd.f32 %v3279_v20, %v1916_v55 }
 0x44e   :  { %v1901_v14 = vsel %vm1900_vm10, %v3277_v46, %v1897_v51  ;;  %3282 = vpow2.f32 %v3025_v32  ;;  %v1813_v8 = vpop.f32.mrf.mxu0  ;;  %v1925_v32 = vor.u32 1.1754944e-38, %v1924_v54 }
 0x44f   :  { %v1826_v16 = vpop.f32.mrf.mxu1  ;;  %v1906_v30 = vsel %vm1903_vm11, %v1905_v45, %v1901_v14  ;;  %v1921_v53 = vsel %vm1920_vm14, %v3279_v20, %v1917_v56 }
 0x450   :  { %v1928_v63 = vmul.f32 %v1906_v30, %v1759_v36  ;;  %v1837_v33 = vpop.f32.mrf.mxu2  ;;  %v1926_v55 = vsel %vm1923_vm15, %v1925_v32, %v1921_v53  ;;  %v1798_v32 = vadd.f32 %v4474_v18, %v4067_v35 }
 0x451   :  { %v1931_v60 = vsub.f32 1.0, %v1926_v55  ;;  %v1933_v45 = vmul.f32 %v1926_v55, %v4380_v2 }
 0x452   :  { %v1929_v11 = vadd.f32 %v1928_v63, %v341_v24 }
 0x453   :  { %v3281_v37 = vpop.eup %3280 }
 0x454   :  { %v3283_v51 = vpop.eup %3282  ;;  %3284 = vtanh.f32 %v1929_v11  ;;  %v1845_v46 = vadd.f32 1.0, %v3281_v37  ;;  %v1838_v11 = vadd.f32 %v1837_v33, %v4062_v49 }
 0x455   :  { %v1865_v10 = vadd.f32 1.0, %v3283_v51 }
 0x456   :  { %3286 = vrcp.f32 %v1845_v46  ;;  %v1857_v22 = vand.u32 2147483648, %v1845_v46  ;;  %v1855_v63 = vand.u32 2147483647, %v1845_v46  ;;  %vm1851_vm1 = vweird.f32 %v1845_v46 }
 0x457   :  { %3288 = vrcp.f32 %v1865_v10  ;;  %vm1871_vm5 = vweird.f32 %v1865_v10 }
 0x458   :  { %v1839_v7 = vpop.f32.mrf.mxu2  ;;  %v1858_v17 = vor.u32 1.1754944e-38, %v1857_v22  ;;  %vm1856_vm3 = vcmp.eq.f32.partialorder %v1855_v63, 8.507059e+37  ;;  %v5170_v22 = vld [vmem:[#allocation41_spill] sm:$0xff]  ;;  %v5172_v63 = vld [vmem:[#allocation52_spill] sm:$0xff] }
 0x459   :  { %v1875_v7 = vand.u32 2147483647, %v1865_v10 }
 0x45a   :  { %v3285_v40 = vpop.eup %3284 }
 0x45b   :  { %v1932_v52 = vmul.f32 %v3285_v40, %v1931_v60  ;;  %vm1876_vm7 = vcmp.eq.f32.partialorder %v1875_v7, 8.507059e+37  ;;  %v5183_v7 = vld [vmem:[#allocation26_spill] sm:$0xff] }
 0x45c   :  { %v3287_v58 = vpop.eup %3286 }
 0x45d   :  { %v3289_v36 = vpop.eup %3288  ;;  %v1847_v14 = vmul.f32 %v3287_v58, %v1845_v46  ;;  %v4484_v8 = vadd.f32 %v1933_v45, %v1932_v52  ;;  %vm1852_vm0 = vweird.f32 %v3287_v58  ;;  %v1877_v46 = vand.u32 2147483648, %v1865_v10 }
 0x45e   :  { %v1867_v20 = vmul.f32 %v3289_v36, %v1865_v10  ;;  %vm1853_vm2 = vmor %vm1851_vm1, %vm1852_vm0  ;;  %vm1872_vm4 = vweird.f32 %v3289_v36 }
 0x45f   :  { %v1848_v16 = vsub.f32 1.0, %v1847_v14  ;;  %v1935_v30 = vpack.c.bf16 %v4484_v8, %v4484_v8  ;;  %vm1873_vm6 = vmor %vm1871_vm5, %vm1872_vm4  ;;  %v1878_v40 = vor.u32 1.1754944e-38, %v1877_v46  ;;  %v5181_v46 = vld [vmem:[#allocation36_spill] sm:$0xff] }
 0x460   :  { %v1868_v56 = vsub.f32 1.0, %v1867_v20  ;;  %v5166_v20 = vld [vmem:[#allocation55_spill] sm:$0xff] }
 0x461   :  { %v1849_v24 = vmul.f32 %v3287_v58, %v1848_v16  ;;  %1944 = vmatmul.bf16.vlgmr.msra.gmra.mxu3 %v1935_v30  ;;  %1957 = vmatmul.bf16.vlgmr.msra.gmra.mxu0 %v1935_v30  ;;  %v5167_v16 = vld [vmem:[#allocation17_spill] sm:$0xff] }
 0x462   :  { %v1869_v54 = vmul.f32 %v3289_v36, %v1868_v56  ;;  %1970 = vmatmul.bf16.vlgmr.msra.gmra.mxu1 %v1935_v30  ;;  %1983 = vmatmul.bf16.vlgmr.msra.gmra.mxu2 %v1935_v30  ;;  %v5169_v56 = vld [vmem:[#allocation16_spill] sm:$0xff] }
 0x463   :  { %v1850_v2 = vadd.f32 %v3287_v58, %v1849_v24  ;;  %2041 = vmatpush.bf16.msra.mxu3 %v4960_v39  ;;  %2149 = vmatpush.bf16.msra.mxu0 %v3553_v50  ;;  %v5171_v24 = vld [vmem:[#allocation27_spill] sm:$0xff] }
 0x464   :  { %2162 = vmatpush.bf16.msra.mxu1 %v3669_v9  ;;  %2175 = vmatpush.bf16.msra.mxu2 %v3624_v29  ;;  %v1870_v51 = vadd.f32 %v3289_v36, %v1869_v54  ;;  %v5173_v54 = vld [vmem:[#allocation30_spill] sm:$0xff] }
 0x465   :  { %v1854_v37 = vsel %vm1853_vm2, %v3287_v58, %v1850_v2  ;;  %v5174_v2 = vld [vmem:[#allocation12_spill] sm:$0xff] }
 0x466   :  { %v1859_v53 = vsel %vm1856_vm3, %v1858_v17, %v1854_v37  ;;  %v1874_v60 = vsel %vm1873_vm6, %v3289_v36, %v1870_v51  ;;  %v5175_v17 = vld [vmem:[#allocation19_spill] sm:$0xff]  ;;  %v5177_v37 = vld [vmem:[#allocation33_spill] sm:$0xff] }
 0x467   :  { %v1881_v55 = vmul.f32 %v1859_v53, %v1838_v11  ;;  %2042 = vmatpush.bf16.msra.mxu3 %v3839_v5  ;;  %2150 = vmatpush.bf16.msra.mxu0 %v3568_v57  ;;  %v1879_v18 = vsel %vm1876_vm7, %v1878_v40, %v1874_v60  ;;  %v5176_v11 = vld [vmem:[#allocation53_spill] sm:$0xff]  ;;  %v5185_v60 = vld [vmem:[#allocation39_spill] sm:$0xff]  ;;  %v5186_v40 = vld [vmem:[#allocation18_spill] sm:$0xff] }
 0x468   :  { %2163 = vmatpush.bf16.msra.mxu1 %v3687_v23  ;;  %2176 = vmatpush.bf16.msra.mxu2 %v3633_v38  ;;  %v1884_v10 = vsub.f32 1.0, %v1879_v18  ;;  %v1886_v58 = vmul.f32 %v1879_v18, %v4416_v48  ;;  %v5165_v48 = vld [vmem:[#allocation24_spill] sm:$0xff]  ;;  %v5178_v53 = vld [vmem:[#allocation13_spill] sm:$0xff] }
 0x469   :  { %v1882_v33 = vadd.f32 %v1881_v55, %v1798_v32  ;;  %v5179_v51 = vld [vmem:[#allocation21_spill] sm:$0xff]  ;;  %v5180_v32 = vld [vmem:[#allocation54_spill] sm:$0xff]  ;;  %v5182_v55 = vld [vmem:[#allocation15_spill] sm:$0xff] }
 0x46a   :  { %v5187_v18 = vld [vmem:[#allocation29_spill] sm:$0xff] }
 0x46b   :  { %3290 = vtanh.f32 %v1882_v33  ;;  %2043 = vmatpush.bf16.msra.mxu3 %v3852_v27  ;;  %2151 = vmatpush.bf16.msra.mxu0 %v3613_v19  ;;  %v5184_v33 = vld [vmem:[#allocation56_spill] sm:$0xff] }
 0x46c   :  { %2164 = vmatpush.bf16.msra.mxu1 %v3710_v44  ;;  %2177 = vmatpush.bf16.msra.mxu2 %v3642_v47 }
 0x46f   :  { %2044 = vmatpush.bf16.msra.mxu3 %v3857_v41  ;;  %2152 = vmatpush.bf16.msra.mxu0 %v3622_v25 }
 0x470   :  { %2165 = vmatpush.bf16.msra.mxu1 %v3732_v15  ;;  %2178 = vmatpush.bf16.msra.mxu2 %v3658_v62 }
 0x471   :  { %v3291_v52 = vpop.eup %3290  ;;  %1996 = vmatmul.bf16.vlgmr.msrb.gmra.mxu3 %v1935_v30  ;;  %2009 = vmatmul.bf16.vlgmr.msrb.gmra.mxu0 %v1935_v30  ;;  %v5168_v30 = vld [vmem:[#allocation11_spill] sm:$0xff] }
 0x472   :  { %v1885_v45 = vmul.f32 %v3291_v52, %v1884_v10  ;;  %v5188_v10 = vld [vmem:[#allocation57_spill] sm:$0xff]  ;;  %v5189_v52 = vld [vmem:[#allocation42_spill] sm:$0xff] }
 0x473   :  { %2045 = vmatpush.bf16.msra.mxu3 %v3860_v3  ;;  %2153 = vmatpush.bf16.msra.mxu0 %v3631_v34 }
 0x474   :  { %v4510_v36 = vadd.f32 %v1886_v58, %v1885_v45  ;;  %2166 = vmatpush.bf16.msra.mxu1 %v3749_v0  ;;  %2179 = vmatpush.bf16.msra.mxu2 %v3672_v13  ;;  %v5190_v45 = vld [vmem:[#allocation20_spill] sm:$0xff] }
 0x475   :  { %v5191_v58 = vld [vmem:[#allocation32_spill] sm:$0xff] }
 0x476   :  { %v2014_v14 = vpack.c.bf16 %v4510_v36, %v4510_v36 }
 0x477   :  { %2046 = vmatpush.bf16.msra.mxu3 %v3871_v6  ;;  %2154 = vmatpush.bf16.msra.mxu0 %v3640_v43 }
 0x478   :  { %2023 = vmatmul.bf16.vlgmr.msrb.gmra.mxu1 %v2014_v14  ;;  %2036 = vmatmul.bf16.vlgmr.msrb.gmra.mxu2 %v2014_v14 }
 0x479   :  { %2167 = vmatpush.bf16.msra.mxu1 %v3759_v21  ;;  %2180 = vmatpush.bf16.msra.mxu2 %v3689_v28 }
 0x47b   :  { %2047 = vmatpush.bf16.msra.mxu3 %v3881_v1  ;;  %2155 = vmatpush.bf16.msra.mxu0 %v4920_v4 }
 0x47d   :  { %2168 = vmatpush.bf16.msra.mxu1 %v3771_v61  ;;  %2181 = vmatpush.bf16.msra.mxu2 %v5165_v48 }
 0x47f   :  { %2048 = vmatpush.bf16.msra.mxu3 %v5166_v20  ;;  %2156 = vmatpush.bf16.msra.mxu0 %v5167_v16 }
 0x481   :  { %2169 = vmatpush.bf16.msra.mxu1 %v5170_v22  ;;  %2182 = vmatpush.bf16.msra.mxu2 %v5171_v24 }
 0x482   :  { %2049 = vmatmul.bf16.vlgmr.msra.gmra.mxu3 %v2014_v14  ;;  %v5192_v14 = vld [vmem:[#allocation58_spill] sm:$0xff] }
 0x483   :  { %2188 = vmatpush.bf16.msrb.mxu3 %v5168_v30  ;;  %2201 = vmatpush.bf16.msrb.mxu0 %v5169_v56 }
 0x485   :  { %2214 = vmatpush.bf16.msrb.mxu1 %v5172_v63  ;;  %2228 = vmatpush.bf16.msrb.mxu2 %v5173_v54 }
 0x487   :  { %2189 = vmatpush.bf16.msrb.mxu3 %v5174_v2  ;;  %2202 = vmatpush.bf16.msrb.mxu0 %v5175_v17 }
 0x489   :  { %2215 = vmatpush.bf16.msrb.mxu1 %v5176_v11  ;;  %2229 = vmatpush.bf16.msrb.mxu2 %v5177_v37  ;;  %v5213_v37 = vld [vmem:[#allocation22_spill] sm:$0xff] }
 0x48b   :  { %2190 = vmatpush.bf16.msrb.mxu3 %v5178_v53  ;;  %2203 = vmatpush.bf16.msrb.mxu0 %v5179_v51 }
 0x48d   :  { %2216 = vmatpush.bf16.msrb.mxu1 %v5180_v32  ;;  %2230 = vmatpush.bf16.msrb.mxu2 %v5181_v46  ;;  %v5211_v46 = vld [vmem:[#allocation73_spill] sm:$0xff]  ;;  %v5212_v32 = vld [vmem:[#allocation83_spill] sm:$0xff] }
 0x48f   :  { %2191 = vmatpush.bf16.msrb.mxu3 %v5182_v55  ;;  %2204 = vmatpush.bf16.msrb.mxu0 %v5183_v7  ;;  %v5193_v55 = vld [vmem:[#allocation44_spill] sm:$0xff]  ;;  %v5194_v7 = vld [vmem:[#allocation25_spill] sm:$0xff] }
 0x491   :  { %2217 = vmatpush.bf16.msrb.mxu1 %v5184_v33  ;;  %2231 = vmatpush.bf16.msrb.mxu2 %v5185_v60  ;;  %v5195_v33 = vld [vmem:[#allocation35_spill] sm:$0xff] }
 0x492   :  { %v5196_v60 = vld [vmem:[#allocation59_spill] sm:$0xff] }
 0x493   :  { %2192 = vmatpush.bf16.msrb.mxu3 %v5186_v40  ;;  %2205 = vmatpush.bf16.msrb.mxu0 %v5187_v18  ;;  %v5197_v40 = vld [vmem:[#allocation47_spill] sm:$0xff]  ;;  %v5198_v18 = vld [vmem:[#allocation28_spill] sm:$0xff] }
 0x495   :  { %2218 = vmatpush.bf16.msrb.mxu1 %v5188_v10  ;;  %2232 = vmatpush.bf16.msrb.mxu2 %v5189_v52  ;;  %v5199_v10 = vld [vmem:[#allocation38_spill] sm:$0xff]  ;;  %v5200_v52 = vld [vmem:[#allocation31_spill] sm:$0xff] }
 0x497   :  { %2193 = vmatpush.bf16.msrb.mxu3 %v5190_v45  ;;  %2206 = vmatpush.bf16.msrb.mxu0 %v5191_v58  ;;  %v5201_v45 = vld [vmem:[#allocation60_spill] sm:$0xff]  ;;  %v5202_v58 = vld [vmem:[#allocation50_spill] sm:$0xff] }
 0x499   :  { %2219 = vmatpush.bf16.msrb.mxu1 %v5192_v14  ;;  %2233 = vmatpush.bf16.msrb.mxu2 %v5193_v55  ;;  %v5203_v14 = vld [vmem:[#allocation34_spill] sm:$0xff]  ;;  %v5204_v55 = vld [vmem:[#allocation37_spill] sm:$0xff] }
 0x49b   :  { %2194 = vmatpush.bf16.msrb.mxu3 %v5194_v7  ;;  %2207 = vmatpush.bf16.msrb.mxu0 %v5195_v33  ;;  %v5205_v7 = vld [vmem:[#allocation40_spill] sm:$0xff]  ;;  %v5206_v33 = vld [vmem:[#allocation43_spill] sm:$0xff] }
 0x49d   :  { %2220 = vmatpush.bf16.msrb.mxu1 %v5196_v60  ;;  %2234 = vmatpush.bf16.msrb.mxu2 %v5197_v40  ;;  %v5207_v60 = vld [vmem:[#allocation45_spill] sm:$0xff]  ;;  %v5208_v40 = vld [vmem:[#allocation48_spill] sm:$0xff] }
 0x49f   :  { %2195 = vmatpush.bf16.msrb.mxu3 %v5198_v18  ;;  %2208 = vmatpush.bf16.msrb.mxu0 %v5199_v10  ;;  %v5209_v18 = vld [vmem:[#allocation51_spill] sm:$0xff] }
 0x4a1   :  { %2221 = vmatpush.bf16.msrb.mxu1 %v5201_v45  ;;  %2235 = vmatpush.bf16.msrb.mxu2 %v5202_v58 }
 0x4a3   :  { %2241 = vmatpush.bf16.msra.mxu3 %v5200_v52  ;;  %v5210_v52 = vld [vmem:[#allocation23_spill] sm:$0xff] }
 0x4a4   :  { %v315_v45 = vadd.f32 %v5211_v46, %v5210_v52 }
 0x4a7   :  { %2242 = vmatpush.bf16.msra.mxu3 %v5203_v14 }
 0x4ab   :  { %2243 = vmatpush.bf16.msra.mxu3 %v5204_v55 }
 0x4af   :  { %2244 = vmatpush.bf16.msra.mxu3 %v5205_v7  ;;  %v5214_v7 = vld [vmem:[#allocation72_spill] sm:$0xff] }
 0x4b0   :  { %v286_v11 = vadd.f32 %v5214_v7, %v5213_v37 }
 0x4b3   :  { %2245 = vmatpush.bf16.msra.mxu3 %v5206_v33  ;;  %v5215_v33 = vld [vmem:[#allocation78_spill] sm:$0xff] }
 0x4b7   :  { %2246 = vmatpush.bf16.msra.mxu3 %v5207_v60 }
 0x4bb   :  { %2247 = vmatpush.bf16.msra.mxu3 %v5208_v40 }
 0x4bf   :  { %2248 = vmatpush.bf16.msra.mxu3 %v5209_v18 }
 0x4de   :  { %v1958_v10 = vpop.f32.mrf.mxu0 }
 0x4df   :  { %v1959_v58 = vadd.f32 %v1958_v10, %v5212_v32  ;;  %v1971_v51 = vpop.f32.mrf.mxu1 }
 0x4e1   :  { %v2121_v14 = vadd.f32 %v1959_v58, %v315_v45 }
 0x4e3   :  { %v3031_v53 = vmul.f32 -1.442695, %v2121_v14 }
 0x4e4   :  { %v1945_v55 = vpop.f32.mrf.mxu3 }
 0x4e5   :  { %3292 = vpow2.f32 %v3031_v53  ;;  %v1946_v60 = vadd.f32 %v1945_v55, %v5215_v33  ;;  %v1984_v17 = vpop.f32.mrf.mxu2  ;;  %v5216_v55 = vld [vmem:[#allocation79_spill] sm:$0xff] }
 0x4e6   :  { %v1960_v40 = vpop.f32.mrf.mxu0  ;;  %v1985_v33 = vadd.f32 %v1984_v17, %v5216_v55 }
 0x4e7   :  { %v2101_v2 = vadd.f32 %v1946_v60, %v286_v11  ;;  %v1973_v18 = vpop.f32.mrf.mxu1 }
 0x4e9   :  { %v3030_v54 = vmul.f32 -1.442695, %v2101_v2 }
 0x4eb   :  { %v3293_v63 = vpop.eup %3292  ;;  %3294 = vpow2.f32 %v3030_v54 }
 0x4ec   :  { %v2125_v46 = vadd.f32 1.0, %v3293_v63  ;;  %v1947_v52 = vpop.f32.mrf.mxu3 }
 0x4ed   :  { %v1986_v10 = vpop.f32.mrf.mxu2 }
 0x4ee   :  { %v4574_v32 = vpop.f32.mrf.mxu0  ;;  %3296 = vrcp.f32 %v2125_v46  ;;  %vm2131_vm13 = vweird.f32 %v2125_v46 }
 0x4f1   :  { %v3295_v45 = vpop.eup %3294 }
 0x4f2   :  { %v2105_v58 = vadd.f32 1.0, %v3295_v45 }
 0x4f4   :  { %3298 = vrcp.f32 %v2105_v58  ;;  %v1997_v7 = vpop.f32.mrf.mxu3  ;;  %v3297_v53 = vpop.eup %3296  ;;  %v2117_v30 = vand.u32 2147483648, %v2105_v58  ;;  %vm2111_vm9 = vweird.f32 %v2105_v58 }
 0x4f5   :  { %v2024_v14 = vpop.f32.mrf.mxu1  ;;  %v2127_v2 = vmul.f32 %v3297_v53, %v2125_v46  ;;  %v1998_v37 = vadd.f32 %v1997_v7, %v5162_v26  ;;  %v1972_v7 = vadd.f32 %v1971_v51, %v5059_v12  ;;  %vm2132_vm12 = vweird.f32 %v3297_v53 }
 0x4f6   :  { %v2025_v11 = vadd.f32 %v2024_v14, %v5057_v59  ;;  %v2012_v60 = vpop.f32.mrf.mxu0  ;;  %v2115_v14 = vand.u32 2147483647, %v2105_v58  ;;  %vm2133_vm14 = vmor %vm2131_vm13, %vm2132_vm12 }
 0x4f7   :  { %v2128_v10 = vsub.f32 1.0, %v2127_v2  ;;  %v2118_v2 = vor.u32 1.1754944e-38, %v2117_v30 }
 0x4f8   :  { %v2054_v40 = vadd.f32 %v2025_v11, %v1985_v33  ;;  %vm2116_vm11 = vcmp.eq.f32.partialorder %v2115_v14, 8.507059e+37 }
 0x4f9   :  { %v2129_v60 = vmul.f32 %v3297_v53, %v2128_v10  ;;  %v2137_v10 = vand.u32 2147483648, %v2125_v46 }
 0x4fa   :  { %v3299_v54 = vpop.eup %3298  ;;  %v3028_v63 = vmul.f32 -1.442695, %v2054_v40 }
 0x4fb   :  { %v2107_v18 = vmul.f32 %v3299_v54, %v2105_v58  ;;  %v2037_v52 = vpop.f32.mrf.mxu2  ;;  %vm2112_vm8 = vweird.f32 %v3299_v54 }
 0x4fc   :  { %3300 = vpow2.f32 %v3028_v63  ;;  %v2038_v45 = vadd.f32 %v2037_v52, %v5163_v31  ;;  %v1999_v24 = vpop.f32.mrf.mxu3  ;;  %vm2113_vm10 = vmor %vm2111_vm9, %vm2112_vm8 }
 0x4fd   :  { %v2108_v22 = vsub.f32 1.0, %v2107_v18  ;;  %v2026_v56 = vpop.f32.mrf.mxu1 }
 0x4fe   :  { %v2074_v17 = vadd.f32 %v2038_v45, %v1998_v37  ;;  %v2130_v56 = vadd.f32 %v3297_v53, %v2129_v60 }
 0x4ff   :  { %v2109_v55 = vmul.f32 %v3299_v54, %v2108_v22  ;;  %v5217_v22 = vld [vmem:[#allocation74_spill] sm:$0xff] }
 0x500   :  { %v3029_v33 = vmul.f32 -1.442695, %v2074_v17  ;;  %v344_v52 = vadd.f32 %v5217_v22, %v5060_v42  ;;  %v2134_v51 = vsel %vm2133_vm14, %v3297_v53, %v2130_v56 }
 0x501   :  { %v2110_v11 = vadd.f32 %v3299_v54, %v2109_v55  ;;  %v2135_v55 = vand.u32 2147483647, %v2125_v46 }
 0x502   :  { %v3301_v40 = vpop.eup %3300  ;;  %3302 = vpow2.f32 %v3029_v33 }
 0x503   :  { %v2114_v63 = vsel %vm2113_vm10, %v3299_v54, %v2110_v11  ;;  %v2058_v24 = vadd.f32 1.0, %v3301_v40  ;;  %v2039_v18 = vpop.f32.mrf.mxu2  ;;  %v2138_v54 = vor.u32 1.1754944e-38, %v2137_v10  ;;  %vm2136_vm15 = vcmp.eq.f32.partialorder %v2135_v55, 8.507059e+37 }
 0x504   :  { %v2119_v37 = vsel %vm2116_vm11, %v2118_v2, %v2114_v63 }
 0x505   :  { %v2141_v45 = vmul.f32 %v2119_v37, %v1972_v7  ;;  %3304 = vrcp.f32 %v2058_v24  ;;  %v2050_v58 = vpop.f32.mrf.mxu3  ;;  %v2139_v33 = vsel %vm2136_vm15, %v2138_v54, %v2134_v51  ;;  %v2070_v18 = vand.u32 2147483648, %v2058_v24 }
 0x506   :  { %v2144_v2 = vsub.f32 1.0, %v2139_v33  ;;  %v2146_v37 = vmul.f32 %v2139_v33, %v4484_v8  ;;  %v2068_v22 = vand.u32 2147483647, %v2058_v24  ;;  %vm2064_vm1 = vweird.f32 %v2058_v24 }
 0x507   :  { %v2142_v30 = vadd.f32 %v2141_v45, %v344_v52  ;;  %v2051_v55 = vadd.f32 %v2050_v58, %v4062_v49  ;;  %v2011_v54 = vadd.f32 %v4574_v32, %v4067_v35 }
 0x508   :  { %v3303_v17 = vpop.eup %3302  ;;  %vm2069_vm3 = vcmp.eq.f32.partialorder %v2068_v22, 8.507059e+37  ;;  %v5239_v22 = vld [vmem:[#allocation42_spill] sm:$0xff] }
 0x509   :  { %3306 = vtanh.f32 %v2142_v30  ;;  %v2078_v14 = vadd.f32 1.0, %v3303_v17  ;;  %v2071_v30 = vor.u32 1.1754944e-38, %v2070_v18 }
 0x50b   :  { %v3305_v60 = vpop.eup %3304  ;;  %3308 = vrcp.f32 %v2078_v14  ;;  %vm2084_vm5 = vweird.f32 %v2078_v14 }
 0x50c   :  { %v2060_v11 = vmul.f32 %v3305_v60, %v2058_v24  ;;  %vm2065_vm0 = vweird.f32 %v3305_v60 }
 0x50d   :  { %v2052_v40 = vpop.f32.mrf.mxu3  ;;  %vm2066_vm2 = vmor %vm2064_vm1, %vm2065_vm0 }
 0x50e   :  { %v2061_v63 = vsub.f32 1.0, %v2060_v11  ;;  %v2090_v40 = vand.u32 2147483648, %v2078_v14 }
 0x50f   :  { %v3307_v7 = vpop.eup %3306 }
 0x510   :  { %v2062_v46 = vmul.f32 %v3305_v60, %v2061_v63  ;;  %v2145_v52 = vmul.f32 %v3307_v7, %v2144_v2  ;;  %v2088_v2 = vand.u32 2147483647, %v2078_v14  ;;  %v2091_v32 = vor.u32 1.1754944e-38, %v2090_v40  ;;  %v5252_v40 = vld [vmem:[#allocation50_spill] sm:$0xff] }
 0x511   :  { %v3309_v53 = vpop.eup %3308 }
 0x512   :  { %v2080_v56 = vmul.f32 %v3309_v53, %v2078_v14  ;;  %v2063_v10 = vadd.f32 %v3305_v60, %v2062_v46  ;;  %v4584_v45 = vadd.f32 %v2146_v37, %v2145_v52  ;;  %vm2085_vm4 = vweird.f32 %v3309_v53  ;;  %v5237_v37 = vld [vmem:[#allocation29_spill] sm:$0xff]  ;;  %v5240_v52 = vld [vmem:[#allocation20_spill] sm:$0xff] }
 0x513   :  { %vm2086_vm6 = vmor %vm2084_vm5, %vm2085_vm4  ;;  %vm2089_vm7 = vcmp.eq.f32.partialorder %v2088_v2, 8.507059e+37  ;;  %v5238_v46 = vld [vmem:[#allocation57_spill] sm:$0xff] }
 0x514   :  { %v2081_v17 = vsub.f32 1.0, %v2080_v56  ;;  %v2067_v51 = vsel %vm2066_vm2, %v3305_v60, %v2063_v10  ;;  %v2148_v8 = vpack.c.bf16 %v4584_v45, %v4584_v45  ;;  %v5242_v56 = vld [vmem:[#allocation58_spill] sm:$0xff]  ;;  %v5243_v10 = vld [vmem:[#allocation44_spill] sm:$0xff]  ;;  %v5254_v2 = vld [vmem:[#allocation37_spill] sm:$0xff] }
 0x515   :  { %v2072_v33 = vsel %vm2069_vm3, %v2071_v30, %v2067_v51  ;;  %v5245_v30 = vld [vmem:[#allocation35_spill] sm:$0xff] }
 0x516   :  { %v2082_v11 = vmul.f32 %v3309_v53, %v2081_v17  ;;  %v2094_v24 = vmul.f32 %v2072_v33, %v2051_v55  ;;  %2157 = vmatmul.bf16.vlgmr.msra.gmra.mxu0 %v2148_v8  ;;  %2170 = vmatmul.bf16.vlgmr.msra.gmra.mxu1 %v2148_v8  ;;  %v5244_v55 = vld [vmem:[#allocation25_spill] sm:$0xff]  ;;  %v5246_v17 = vld [vmem:[#allocation59_spill] sm:$0xff] }
 0x517   :  { %2183 = vmatmul.bf16.vlgmr.msra.gmra.mxu2 %v2148_v8  ;;  %2196 = vmatmul.bf16.vlgmr.msrb.gmra.mxu3 %v2148_v8  ;;  %v5247_v51 = vld [vmem:[#allocation47_spill] sm:$0xff] }
 0x518   :  { %v2083_v58 = vadd.f32 %v3309_v53, %v2082_v11  ;;  %v2095_v60 = vadd.f32 %v2094_v24, %v2011_v54  ;;  %2254 = vmatpush.bf16.msra.mxu0 %v4960_v39  ;;  %2362 = vmatpush.bf16.msra.mxu1 %v3553_v50  ;;  %v5249_v54 = vld [vmem:[#allocation38_spill] sm:$0xff]  ;;  %v5250_v33 = vld [vmem:[#allocation31_spill] sm:$0xff]  ;;  %v5251_v11 = vld [vmem:[#allocation60_spill] sm:$0xff] }
 0x519   :  { %2375 = vmatpush.bf16.msra.mxu2 %v3669_v9  ;;  %2388 = vmatpush.bf16.msrb.mxu3 %v3624_v29  ;;  %v5253_v24 = vld [vmem:[#allocation34_spill] sm:$0xff] }
 0x51a   :  { %v2087_v63 = vsel %vm2086_vm6, %v3309_v53, %v2083_v58  ;;  %3310 = vtanh.f32 %v2095_v60  ;;  %v5241_v53 = vld [vmem:[#allocation32_spill] sm:$0xff]  ;;  %v5256_v60 = vld [vmem:[#allocation43_spill] sm:$0xff] }
 0x51b   :  { %v2092_v7 = vsel %vm2089_vm7, %v2091_v32, %v2087_v63  ;;  %v5255_v58 = vld [vmem:[#allocation40_spill] sm:$0xff]  ;;  %v5257_v32 = vld [vmem:[#allocation45_spill] sm:$0xff] }
 0x51c   :  { %2255 = vmatpush.bf16.msra.mxu0 %v3839_v5  ;;  %2363 = vmatpush.bf16.msra.mxu1 %v3568_v57  ;;  %v2097_v14 = vsub.f32 1.0, %v2092_v7  ;;  %v2099_v9 = vmul.f32 %v2092_v7, %v4510_v36  ;;  %v5234_v36 = vld [vmem:[#allocation56_spill] sm:$0xff]  ;;  %v5259_v7 = vld [vmem:[#allocation51_spill] sm:$0xff] }
 0x51d   :  { %2376 = vmatpush.bf16.msra.mxu2 %v3687_v23  ;;  %2389 = vmatpush.bf16.msrb.mxu3 %v3633_v38  ;;  %v5221_v38 = vld [vmem:[#allocation27_spill] sm:$0xff]  ;;  %v5226_v23 = vld [vmem:[#allocation53_spill] sm:$0xff]  ;;  %v5258_v63 = vld [vmem:[#allocation48_spill] sm:$0xff] }
 0x520   :  { %v3311_v50 = vpop.eup %3310  ;;  %2256 = vmatpush.bf16.msra.mxu0 %v3852_v27  ;;  %2364 = vmatpush.bf16.msra.mxu1 %v3613_v19  ;;  %v5218_v19 = vld [vmem:[#allocation11_spill] sm:$0xff] }
 0x521   :  { %v2098_v29 = vmul.f32 %v3311_v50, %v2097_v14  ;;  %2377 = vmatpush.bf16.msra.mxu2 %v3710_v44  ;;  %2390 = vmatpush.bf16.msrb.mxu3 %v3642_v47  ;;  %v5223_v47 = vld [vmem:[#allocation30_spill] sm:$0xff]  ;;  %v5228_v44 = vld [vmem:[#allocation13_spill] sm:$0xff] }
 0x523   :  { %v4604_v18 = vadd.f32 %v2099_v9, %v2098_v29  ;;  %v5260_v29 = vld [vmem:[#allocation22_spill] sm:$0xff]  ;;  %v5261_v9 = vld [vmem:[#allocation75_spill] sm:$0xff] }
 0x524   :  { %2257 = vmatpush.bf16.msra.mxu0 %v3857_v41  ;;  %2365 = vmatpush.bf16.msra.mxu1 %v3622_v25  ;;  %v5219_v25 = vld [vmem:[#allocation16_spill] sm:$0xff] }
 0x525   :  { %v2227_v57 = vpack.c.bf16 %v4604_v18, %v4604_v18  ;;  %2378 = vmatpush.bf16.msra.mxu2 %v3732_v15  ;;  %2391 = vmatpush.bf16.msrb.mxu3 %v3658_v62  ;;  %v5224_v62 = vld [vmem:[#allocation12_spill] sm:$0xff]  ;;  %v5229_v15 = vld [vmem:[#allocation21_spill] sm:$0xff] }
 0x526   :  { %2209 = vmatmul.bf16.vlgmr.msrb.gmra.mxu0 %v2148_v8  ;;  %2222 = vmatmul.bf16.vlgmr.msrb.gmra.mxu1 %v2148_v8  ;;  %v5248_v8 = vld [vmem:[#allocation28_spill] sm:$0xff] }
 0x527   :  { %2236 = vmatmul.bf16.vlgmr.msrb.gmra.mxu2 %v2227_v57  ;;  %2249 = vmatmul.bf16.vlgmr.msra.gmra.mxu3 %v2227_v57 }
 0x528   :  { %2258 = vmatpush.bf16.msra.mxu0 %v3860_v3  ;;  %2366 = vmatpush.bf16.msra.mxu1 %v3631_v34  ;;  %v5220_v34 = vld [vmem:[#allocation41_spill] sm:$0xff] }
 0x529   :  { %2379 = vmatpush.bf16.msra.mxu2 %v3749_v0  ;;  %2392 = vmatpush.bf16.msrb.mxu3 %v3672_v13  ;;  %v5225_v13 = vld [vmem:[#allocation19_spill] sm:$0xff]  ;;  %v5230_v0 = vld [vmem:[#allocation54_spill] sm:$0xff] }
 0x52c   :  { %2259 = vmatpush.bf16.msra.mxu0 %v3871_v6  ;;  %2367 = vmatpush.bf16.msra.mxu1 %v3640_v43  ;;  %v5222_v43 = vld [vmem:[#allocation52_spill] sm:$0xff] }
 0x52d   :  { %2380 = vmatpush.bf16.msra.mxu2 %v3759_v21  ;;  %2393 = vmatpush.bf16.msrb.mxu3 %v3689_v28  ;;  %v5227_v28 = vld [vmem:[#allocation33_spill] sm:$0xff]  ;;  %v5231_v21 = vld [vmem:[#allocation36_spill] sm:$0xff] }
 0x530   :  { %2260 = vmatpush.bf16.msra.mxu0 %v3881_v1  ;;  %2368 = vmatpush.bf16.msra.mxu1 %v4920_v4  ;;  %v5233_v4 = vld [vmem:[#allocation26_spill] sm:$0xff] }
 0x531   :  { %2381 = vmatpush.bf16.msra.mxu2 %v3771_v61  ;;  %2394 = vmatpush.bf16.msrb.mxu3 %v5165_v48  ;;  %v5232_v61 = vld [vmem:[#allocation15_spill] sm:$0xff] }
 0x532   :  { %v5235_v48 = vld [vmem:[#allocation39_spill] sm:$0xff] }
 0x534   :  { %2261 = vmatpush.bf16.msra.mxu0 %v5166_v20  ;;  %2369 = vmatpush.bf16.msra.mxu1 %v5167_v16  ;;  %v5236_v16 = vld [vmem:[#allocation18_spill] sm:$0xff] }
 0x535   :  { %2382 = vmatpush.bf16.msra.mxu2 %v5220_v34  ;;  %2395 = vmatpush.bf16.msrb.mxu3 %v5221_v38  ;;  %v5264_v38 = vld [vmem:[#allocation78_spill] sm:$0xff] }
 0x537   :  { %2262 = vmatmul.bf16.vlgmr.msra.gmra.mxu0 %v2227_v57  ;;  %v288_v57 = vadd.f32 %v5261_v9, %v5260_v29 }
 0x538   :  { %2401 = vmatpush.bf16.msrb.mxu0 %v5218_v19  ;;  %2414 = vmatpush.bf16.msrb.mxu1 %v5219_v25  ;;  %v5262_v19 = vld [vmem:[#allocation23_spill] sm:$0xff]  ;;  %v5263_v25 = vld [vmem:[#allocation76_spill] sm:$0xff] }
 0x539   :  { %2427 = vmatpush.bf16.msrb.mxu2 %v5222_v43  ;;  %2441 = vmatpush.bf16.msra.mxu3 %v5223_v47  ;;  %v317_v34 = vadd.f32 %v5263_v25, %v5262_v19  ;;  %v5265_v47 = vld [vmem:[#allocation83_spill] sm:$0xff] }
 0x53c   :  { %2402 = vmatpush.bf16.msrb.mxu0 %v5224_v62  ;;  %2415 = vmatpush.bf16.msrb.mxu1 %v5225_v13 }
 0x53d   :  { %2428 = vmatpush.bf16.msrb.mxu2 %v5226_v23  ;;  %2442 = vmatpush.bf16.msra.mxu3 %v5227_v28 }
 0x540   :  { %2403 = vmatpush.bf16.msrb.mxu0 %v5228_v44  ;;  %2416 = vmatpush.bf16.msrb.mxu1 %v5229_v15 }
 0x541   :  { %2429 = vmatpush.bf16.msrb.mxu2 %v5230_v0  ;;  %2443 = vmatpush.bf16.msra.mxu3 %v5231_v21 }
 0x544   :  { %2404 = vmatpush.bf16.msrb.mxu0 %v5232_v61  ;;  %2417 = vmatpush.bf16.msrb.mxu1 %v5233_v4 }
 0x545   :  { %2430 = vmatpush.bf16.msrb.mxu2 %v5234_v36  ;;  %2444 = vmatpush.bf16.msra.mxu3 %v5235_v48 }
 0x548   :  { %2405 = vmatpush.bf16.msrb.mxu0 %v5236_v16  ;;  %2418 = vmatpush.bf16.msrb.mxu1 %v5237_v37 }
 0x549   :  { %2431 = vmatpush.bf16.msrb.mxu2 %v5238_v46  ;;  %2445 = vmatpush.bf16.msra.mxu3 %v5239_v22 }
 0x54c   :  { %2406 = vmatpush.bf16.msrb.mxu0 %v5240_v52  ;;  %2419 = vmatpush.bf16.msrb.mxu1 %v5241_v53 }
 0x54d   :  { %2432 = vmatpush.bf16.msrb.mxu2 %v5242_v56  ;;  %2446 = vmatpush.bf16.msra.mxu3 %v5243_v10 }
 0x550   :  { %2407 = vmatpush.bf16.msrb.mxu0 %v5244_v55  ;;  %2420 = vmatpush.bf16.msrb.mxu1 %v5245_v30  ;;  %v5266_v55 = vld [vmem:[#allocation79_spill] sm:$0xff] }
 0x551   :  { %2433 = vmatpush.bf16.msrb.mxu2 %v5246_v17  ;;  %2447 = vmatpush.bf16.msra.mxu3 %v5247_v51 }
 0x554   :  { %2408 = vmatpush.bf16.msrb.mxu0 %v5248_v8  ;;  %2421 = vmatpush.bf16.msrb.mxu1 %v5249_v54 }
 0x555   :  { %2434 = vmatpush.bf16.msrb.mxu2 %v5251_v11  ;;  %2448 = vmatpush.bf16.msra.mxu3 %v5252_v40 }
 0x558   :  { %2454 = vmatpush.bf16.msra.mxu0 %v5250_v33 }
 0x55c   :  { %2455 = vmatpush.bf16.msra.mxu0 %v5253_v24 }
 0x560   :  { %2456 = vmatpush.bf16.msra.mxu0 %v5254_v2 }
 0x564   :  { %2457 = vmatpush.bf16.msra.mxu0 %v5255_v58 }
 0x568   :  { %2458 = vmatpush.bf16.msra.mxu0 %v5256_v60 }
 0x56c   :  { %2459 = vmatpush.bf16.msra.mxu0 %v5257_v32 }
 0x570   :  { %2460 = vmatpush.bf16.msra.mxu0 %v5258_v63 }
 0x574   :  { %2461 = vmatpush.bf16.msra.mxu0 %v5259_v7 }
 0x593   :  { %v2158_v14 = vpop.f32.mrf.mxu0  ;;  %v2171_v50 = vpop.f32.mrf.mxu1 }
 0x594   :  { %v2159_v43 = vadd.f32 %v2158_v14, %v5264_v38  ;;  %v2172_v62 = vadd.f32 %v2171_v50, %v5265_v47 }
 0x596   :  { %v2314_v13 = vadd.f32 %v2159_v43, %v288_v57  ;;  %v2334_v23 = vadd.f32 %v2172_v62, %v317_v34 }
 0x598   :  { %v3034_v28 = vmul.f32 -1.442695, %v2314_v13  ;;  %v3035_v44 = vmul.f32 -1.442695, %v2334_v23  ;;  %v5267_v13 = vld [vmem:[#allocation77_spill] sm:$0xff] }
 0x599   :  { %v346_v23 = vadd.f32 %v5267_v13, %v5060_v42 }
 0x59a   :  { %3312 = vpow2.f32 %v3034_v28  ;;  %v2184_v15 = vpop.f32.mrf.mxu2  ;;  %v2197_v0 = vpop.f32.mrf.mxu3 }
 0x59b   :  { %3314 = vpow2.f32 %v3035_v44  ;;  %v2160_v21 = vpop.f32.mrf.mxu0  ;;  %v2173_v61 = vpop.f32.mrf.mxu1  ;;  %v2198_v30 = vadd.f32 %v2197_v0, %v5266_v55  ;;  %v2185_v25 = vadd.f32 %v2184_v15, %v5059_v12 }
 0x5a0   :  { %v3313_v4 = vpop.eup %3312 }
 0x5a1   :  { %v3315_v36 = vpop.eup %3314  ;;  %v2318_v48 = vadd.f32 1.0, %v3313_v4 }
 0x5a2   :  { %v2338_v16 = vadd.f32 1.0, %v3315_v36  ;;  %v2186_v37 = vpop.f32.mrf.mxu2  ;;  %v2199_v46 = vpop.f32.mrf.mxu3 }
 0x5a3   :  { %3316 = vrcp.f32 %v2318_v48  ;;  %v2210_v22 = vpop.f32.mrf.mxu0  ;;  %v4674_v52 = vpop.f32.mrf.mxu1  ;;  %v2330_v60 = vand.u32 2147483648, %v2318_v48  ;;  %v2328_v14 = vand.u32 2147483647, %v2318_v48  ;;  %vm2324_vm9 = vweird.f32 %v2318_v48 }
 0x5a4   :  { %3318 = vrcp.f32 %v2338_v16  ;;  %v2211_v54 = vadd.f32 %v2210_v22, %v5162_v26  ;;  %v2350_v28 = vand.u32 2147483648, %v2338_v16  ;;  %vm2344_vm13 = vweird.f32 %v2338_v16 }
 0x5a5   :  { %v2331_v19 = vor.u32 1.1754944e-38, %v2330_v60  ;;  %vm2329_vm11 = vcmp.eq.f32.partialorder %v2328_v14, 8.507059e+37  ;;  %v2348_v21 = vand.u32 2147483647, %v2338_v16 }
 0x5a6   :  { %v2351_v36 = vor.u32 1.1754944e-38, %v2350_v28 }
 0x5a7   :  { %vm2349_vm15 = vcmp.eq.f32.partialorder %v2348_v21, 8.507059e+37 }
 0x5a9   :  { %v3317_v53 = vpop.eup %3316 }
 0x5aa   :  { %v3319_v56 = vpop.eup %3318  ;;  %v2320_v10 = vmul.f32 %v3317_v53, %v2318_v48  ;;  %v2237_v17 = vpop.f32.mrf.mxu2  ;;  %vm2325_vm8 = vweird.f32 %v3317_v53 }
 0x5ab   :  { %v2250_v51 = vpop.f32.mrf.mxu3  ;;  %v2340_v8 = vmul.f32 %v3319_v56, %v2338_v16  ;;  %v2238_v33 = vadd.f32 %v2237_v17, %v5057_v59  ;;  %v2212_v40 = vpop.f32.mrf.mxu0  ;;  %vm2326_vm10 = vmor %vm2324_vm9, %vm2325_vm8  ;;  %vm2345_vm12 = vweird.f32 %v3319_v56 }
 0x5ac   :  { %v2251_v11 = vadd.f32 %v2250_v51, %v5163_v31  ;;  %v2225_v24 = vpop.f32.mrf.mxu1  ;;  %v2321_v2 = vsub.f32 1.0, %v2320_v10  ;;  %vm2346_vm14 = vmor %vm2344_vm13, %vm2345_vm12 }
 0x5ad   :  { %v2341_v58 = vsub.f32 1.0, %v2340_v8  ;;  %v2267_v32 = vadd.f32 %v2238_v33, %v2198_v30 }
 0x5ae   :  { %v2287_v63 = vadd.f32 %v2251_v11, %v2211_v54  ;;  %v2322_v7 = vmul.f32 %v3317_v53, %v2321_v2 }
 0x5af   :  { %v2342_v50 = vmul.f32 %v3319_v56, %v2341_v58  ;;  %v3032_v29 = vmul.f32 -1.442695, %v2267_v32 }
 0x5b0   :  { %v3033_v9 = vmul.f32 -1.442695, %v2287_v63  ;;  %v2323_v57 = vadd.f32 %v3317_v53, %v2322_v7 }
 0x5b1   :  { %3320 = vpow2.f32 %v3032_v29  ;;  %v2343_v62 = vadd.f32 %v3319_v56, %v2342_v50  ;;  %v2224_v50 = vadd.f32 %v4674_v52, %v4067_v35 }
 0x5b2   :  { %v2327_v34 = vsel %vm2326_vm10, %v3317_v53, %v2323_v57  ;;  %3322 = vpow2.f32 %v3033_v9  ;;  %v2239_v38 = vpop.f32.mrf.mxu2 }
 0x5b3   :  { %v2252_v43 = vpop.f32.mrf.mxu3  ;;  %v2332_v47 = vsel %vm2329_vm11, %v2331_v19, %v2327_v34  ;;  %v2347_v12 = vsel %vm2346_vm14, %v3319_v56, %v2343_v62 }
 0x5b4   :  { %v2354_v44 = vmul.f32 %v2332_v47, %v2185_v25  ;;  %v2263_v0 = vpop.f32.mrf.mxu0  ;;  %v2352_v46 = vsel %vm2349_vm15, %v2351_v36, %v2347_v12  ;;  %v3171_v36 = vld [vmem:[%s4744_s7 + $0x28] sm:$0xff] }
 0x5b5   :  { %v2357_v42 = vsub.f32 1.0, %v2352_v46  ;;  %v2359_v30 = vmul.f32 %v2352_v46, %v4584_v45  ;;  %v2264_v32 = vadd.f32 %v2263_v0, %v4062_v49 }
 0x5b6   :  { %v2355_v61 = vadd.f32 %v2354_v44, %v346_v23 }
 0x5b7   :  { %v3321_v4 = vpop.eup %3320 }
 0x5b8   :  { %v3323_v15 = vpop.eup %3322  ;;  %3324 = vtanh.f32 %v2355_v61  ;;  %v2271_v48 = vadd.f32 1.0, %v3321_v4 }
 0x5b9   :  { %v2291_v37 = vadd.f32 1.0, %v3323_v15 }
 0x5ba   :  { %3326 = vrcp.f32 %v2271_v48  ;;  %v2283_v40 = vand.u32 2147483648, %v2271_v48  ;;  %v2281_v2 = vand.u32 2147483647, %v2271_v48  ;;  %vm2277_vm1 = vweird.f32 %v2271_v48 }
 0x5bb   :  { %3328 = vrcp.f32 %v2291_v37  ;;  %v2303_v29 = vand.u32 2147483648, %v2291_v37  ;;  %vm2297_vm5 = vweird.f32 %v2291_v37  ;;  %v2301_v57 = vand.u32 2147483647, %v2291_v37 }
 0x5bc   :  { %v2265_v22 = vpop.f32.mrf.mxu0  ;;  %v2284_v45 = vor.u32 1.1754944e-38, %v2283_v40  ;;  %vm2282_vm3 = vcmp.eq.f32.partialorder %v2281_v2, 8.507059e+37 }
 0x5bd   :  { %v2304_v25 = vor.u32 1.1754944e-38, %v2303_v29  ;;  %vm2302_vm7 = vcmp.eq.f32.partialorder %v2301_v57, 8.507059e+37 }
 0x5be   :  { %v3325_v53 = vpop.eup %3324 }
 0x5bf   :  { %v2358_v10 = vmul.f32 %v3325_v53, %v2357_v42 }
 0x5c0   :  { %v3327_v16 = vpop.eup %3326 }
 0x5c1   :  { %v3329_v17 = vpop.eup %3328  ;;  %v2360_v51 = vadd.f32 %v2359_v30, %v2358_v10  ;;  %v2273_v8 = vmul.f32 %v3327_v16, %v2271_v48  ;;  %vm2278_vm0 = vweird.f32 %v3327_v16 }
 0x5c2   :  { %v2293_v56 = vmul.f32 %v3329_v17, %v2291_v37  ;;  %vm2279_vm2 = vmor %vm2277_vm1, %vm2278_vm0  ;;  %vm2298_vm4 = vweird.f32 %v3329_v17 }
 0x5c3   :  { %v2361_v54 = vpack.c.bf16 %v2360_v51, %v2360_v51  ;;  %v2274_v33 = vsub.f32 1.0, %v2273_v8  ;;  %vm2299_vm6 = vmor %vm2297_vm5, %vm2298_vm4 }
 0x5c4   :  { %v2294_v11 = vsub.f32 1.0, %v2293_v56  ;;  %v3167_v56 = vld [vmem:[%s4744_s7 + $0x8] sm:$0xff] }
 0x5c5   :  { %v2275_v24 = vmul.f32 %v3327_v16, %v2274_v33  ;;  %2370 = vmatmul.bf16.vlgmr.msra.gmra.mxu1 %v2361_v54  ;;  %2383 = vmatmul.bf16.vlgmr.msra.gmra.mxu2 %v2361_v54 }
 0x5c6   :  { %v2295_v58 = vmul.f32 %v3329_v17, %v2294_v11  ;;  %2396 = vmatmul.bf16.vlgmr.msrb.gmra.mxu3 %v2361_v54  ;;  %2409 = vmatmul.bf16.vlgmr.msrb.gmra.mxu0 %v2361_v54  ;;  %v3166_v11 = vld [vmem:[%s4744_s7] sm:$0xff] }
 0x5c7   :  { %v2276_v60 = vadd.f32 %v3327_v16, %v2275_v24  ;;  %2467 = vmatpush.bf16.msra.mxu1 %v4960_v39 }
 0x5c8   :  { %v2296_v14 = vadd.f32 %v3329_v17, %v2295_v58 }
 0x5c9   :  { %v2280_v63 = vsel %vm2279_vm2, %v3327_v16, %v2276_v60  ;;  %v3169_v16 = vld [vmem:[%s4744_s7 + $0x18] sm:$0xff] }
 0x5ca   :  { %v2285_v7 = vsel %vm2282_vm3, %v2284_v45, %v2280_v63  ;;  %v2300_v19 = vsel %vm2299_vm6, %v3329_v17, %v2296_v14 }
 0x5cb   :  { %v2307_v9 = vmul.f32 %v2285_v7, %v2264_v32  ;;  %2468 = vmatpush.bf16.msra.mxu1 %v3839_v5  ;;  %v2305_v34 = vsel %vm2302_vm7, %v2304_v25, %v2300_v19 }
 0x5cc   :  { %v2310_v38 = vsub.f32 1.0, %v2305_v34  ;;  %v2312_v5 = vmul.f32 %v2305_v34, %v4604_v18 }
 0x5cd   :  { %v2308_v39 = vadd.f32 %v2307_v9, %v2224_v50 }
 0x5cf   :  { %3330 = vtanh.f32 %v2308_v39  ;;  %2469 = vmatpush.bf16.msra.mxu1 %v3852_v27 }
 0x5d3   :  { %2470 = vmatpush.bf16.msra.mxu1 %v3857_v41 }
 0x5d5   :  { %v3331_v43 = vpop.eup %3330  ;;  %2422 = vmatmul.bf16.vlgmr.msrb.gmra.mxu1 %v2361_v54  ;;  %2435 = vmatmul.bf16.vlgmr.msrb.gmra.mxu2 %v2361_v54 }
 0x5d6   :  { %v2311_v52 = vmul.f32 %v3331_v43, %v2310_v38 }
 0x5d7   :  { %2471 = vmatpush.bf16.msra.mxu1 %v3860_v3 }
 0x5d8   :  { %v4693_v47 = vadd.f32 %v2312_v5, %v2311_v52 }
 0x5da   :  { %v2440_v62 = vpack.c.bf16 %v4693_v47, %v4693_v47 }
 0x5db   :  { %2472 = vmatpush.bf16.msra.mxu1 %v3871_v6  ;;  %v3173_v6 = vld [vmem:[%s4744_s7 + $0x38] sm:$0xff] }
 0x5dc   :  { %2449 = vmatmul.bf16.vlgmr.msra.gmra.mxu3 %v2440_v62  ;;  %2462 = vmatmul.bf16.vlgmr.msra.gmra.mxu0 %v2440_v62 }
 0x5dd   :  { %2602 = vmatpush.bf16.msra.mxu2 %v3173_v6 }
 0x5df   :  { %2473 = vmatpush.bf16.msra.mxu1 %v3881_v1  ;;  %v3172_v1 = vld [vmem:[%s4744_s7 + $0x30] sm:$0xff] }
 0x5e1   :  { %2603 = vmatpush.bf16.msra.mxu2 %v3172_v1 }
 0x5e3   :  { %2474 = vmatpush.bf16.msra.mxu1 %v5166_v20 }
 0x5e5   :  { %2604 = vmatpush.bf16.msra.mxu2 %v3171_v36 }
 0x5e6   :  { %2475 = vmatmul.bf16.vlgmr.msra.gmra.mxu1 %v2440_v62 }
 0x642   :  { %v2371_v27 = vpop.f32.mrf.mxu1 }
 0x643   :  { %v2410_v41 = vpop.f32.mrf.mxu0 }
 0x644   :  { %v2411_v46 = vadd.f32 %v2410_v41, %v5266_v55 }
 0x648   :  { %v2384_v13 = vpop.f32.mrf.mxu2 }
 0x649   :  { %v2397_v18 = vpop.f32.mrf.mxu3 }
 0x64a   :  { %v2373_v23 = vpop.f32.mrf.mxu1 }
 0x64b   :  { %v2412_v3 = vpop.f32.mrf.mxu0 }
 0x650   :  { %v2386_v28 = vpop.f32.mrf.mxu2 }
 0x651   :  { %v2399_v44 = vpop.f32.mrf.mxu3 }
 0x652   :  { %v2423_v0 = vpop.f32.mrf.mxu1 }
 0x653   :  { %v2424_v61 = vadd.f32 %v2423_v0, %v5162_v26  ;;  %v3170_v26 = vld [vmem:[%s4744_s7 + $0x20] sm:$0xff] }
 0x654   :  { %2605 = vmatpush.bf16.msra.mxu2 %v3170_v26 }
 0x658   :  { %v2436_v21 = vpop.f32.mrf.mxu2  ;;  %2606 = vmatpush.bf16.msra.mxu2 %v3169_v16 }
 0x659   :  { %v2463_v20 = vpop.f32.mrf.mxu0  ;;  %v2437_v25 = vadd.f32 %v2436_v21, %v4067_v35  ;;  %v3181_v35 = vld [vmem:[%s4745_s8] ss:$0 sm:$0xff] }
 0x65a   :  { %v2464_v4 = vadd.f32 %v2463_v20, %v5163_v31  ;;  %v2425_v12 = vpop.f32.mrf.mxu1 }
 0x65c   :  { %v2500_v15 = vadd.f32 %v2464_v4, %v2424_v61 }
 0x65e   :  { %v3037_v48 = vmul.f32 -1.442695, %v2500_v15 }
 0x65f   :  { %v2450_v37 = vpop.f32.mrf.mxu3 }
 0x660   :  { %3332 = vpow2.f32 %v3037_v48  ;;  %v2451_v22 = vadd.f32 %v2450_v37, %v5057_v59  ;;  %v2438_v42 = vpop.f32.mrf.mxu2  ;;  %v3168_v59 = vld [vmem:[%s4744_s7 + $0x10] sm:$0xff] }
 0x661   :  { %v2465_v31 = vpop.f32.mrf.mxu0  ;;  %2607 = vmatpush.bf16.msra.mxu2 %v3168_v59 }
 0x662   :  { %v2480_v53 = vadd.f32 %v2451_v22, %v2411_v46 }
 0x663   :  { %v2476_v10 = vpop.f32.mrf.mxu1 }
 0x664   :  { %v3036_v30 = vmul.f32 -1.442695, %v2480_v53  ;;  %v2477_v9 = vadd.f32 %v2476_v10, %v4062_v49 }
 0x665   :  { %2608 = vmatpush.bf16.msra.mxu2 %v3167_v56 }
 0x666   :  { %v3333_v17 = vpop.eup %3332  ;;  %3334 = vpow2.f32 %v3036_v30 }
 0x667   :  { %v2504_v55 = vadd.f32 1.0, %v3333_v17  ;;  %v2452_v51 = vpop.f32.mrf.mxu3 }
 0x669   :  { %3336 = vrcp.f32 %v2504_v55  ;;  %2609 = vmatpush.bf16.msra.mxu2 %v3166_v11  ;;  %v2516_v34 = vand.u32 2147483648, %v2504_v55  ;;  %vm2510_vm13 = vweird.f32 %v2504_v55  ;;  %v2514_v43 = vand.u32 2147483647, %v2504_v55 }
 0x66b   :  { %v2478_v8 = vpop.f32.mrf.mxu1  ;;  %v2517_v62 = vor.u32 1.1754944e-38, %v2516_v34  ;;  %vm2515_vm15 = vcmp.eq.f32.partialorder %v2514_v43, 8.507059e+37 }
 0x66c   :  { %v3335_v54 = vpop.eup %3334 }
 0x66d   :  { %v2484_v33 = vadd.f32 1.0, %v3335_v54 }
 0x66f   :  { %3338 = vrcp.f32 %v2484_v33  ;;  %v3337_v40 = vpop.eup %3336  ;;  %v2496_v32 = vand.u32 2147483648, %v2484_v33  ;;  %v2494_v7 = vand.u32 2147483647, %v2484_v33  ;;  %vm2490_vm9 = vweird.f32 %v2484_v33 }
 0x670   :  { %v2506_v24 = vmul.f32 %v3337_v40, %v2504_v55  ;;  %vm2511_vm12 = vweird.f32 %v3337_v40 }
 0x671   :  { %v2497_v29 = vor.u32 1.1754944e-38, %v2496_v32  ;;  %vm2495_vm11 = vcmp.eq.f32.partialorder %v2494_v7, 8.507059e+37  ;;  %vm2512_vm14 = vmor %vm2510_vm13, %vm2511_vm12 }
 0x672   :  { %v2507_v60 = vsub.f32 1.0, %v2506_v24 }
 0x674   :  { %v2508_v14 = vmul.f32 %v3337_v40, %v2507_v60 }
 0x675   :  { %v3339_v2 = vpop.eup %3338 }
 0x676   :  { %v2486_v58 = vmul.f32 %v3339_v2, %v2484_v33  ;;  %vm2491_vm8 = vweird.f32 %v3339_v2  ;;  %v2509_v19 = vadd.f32 %v3337_v40, %v2508_v14 }
 0x677   :  { %vm2492_vm10 = vmor %vm2490_vm9, %vm2491_vm8 }
 0x678   :  { %v2487_v45 = vsub.f32 1.0, %v2486_v58  ;;  %v2513_v5 = vsel %vm2512_vm14, %v3337_v40, %v2509_v19 }
 0x679   :  { %v2518_v27 = vsel %vm2515_vm15, %v2517_v62, %v2513_v5 }
 0x67a   :  { %v2488_v63 = vmul.f32 %v3339_v2, %v2487_v45  ;;  %v2523_v41 = vsub.f32 1.0, %v2518_v27  ;;  %v2525_v18 = vmul.f32 %v2518_v27, %v4693_v47 }
 0x67c   :  { %v2489_v50 = vadd.f32 %v3339_v2, %v2488_v63 }
 0x67e   :  { %v2493_v57 = vsel %vm2492_vm10, %v3339_v2, %v2489_v50 }
 0x67f   :  { %v2498_v39 = vsel %vm2495_vm11, %v2497_v29, %v2493_v57 }
 0x680   :  { %v2520_v38 = vmul.f32 %v2498_v39, %v2477_v9 }
 0x682   :  { %v2521_v52 = vadd.f32 %v2520_v38, %v2437_v25 }
 0x684   :  { %3340 = vtanh.f32 %v2521_v52 }
 0x68a   :  { %v3341_v49 = vpop.eup %3340 }
 0x68b   :  { %v2524_v13 = vmul.f32 %v3341_v49, %v2523_v41 }
 0x68d   :  { %v2526_v23 = vadd.f32 %v2525_v18, %v2524_v13 }
 0x68f   :  { %v2532_v3 = vmax.f32 %v2526_v23, 0.0 }
 0x691   :  { %v2533_v28 = vpack.c.bf16 %v2532_v3, %v2532_v3 }
 0x693   :  { %2610 = vmatmul.bf16.vlgmr.msra.gmra.mxu2 %v2533_v28 }
 0x716   :  { %v2611_v44 = vpop.f32.mrf.mxu2 }
 0x717   :  { %v2612_v0 = vadd.f32 %v3181_v35, %v2611_v44 }
 0x719   :  { %2615 = vst [vmem:[%s4746_s9] sm:$0xff] %v2612_v0 }
 0x71e   :  { %v2613_v6 = vpop.f32.mrf.mxu2 }
 0x71f   :  { %2620 = vsyncpa [#allocation6], 1 }
 0x720   :  { %2621 = vsyncpa [#allocation8], 1 }

</bundles_post_ra>
